<compile_context>
chip_gen: v6e
topology: v6e:2x2x1
jax: 0.10.0
libtpu: 0.0.40
codegen_flags: <defaults>
</compile_context>

<pallas_src>
import functools

import jax
import jax.numpy as jnp
from jax.experimental import pallas as pl
from jax.experimental.pallas import tpu as pltpu

EPS = 1e-5


def fused_conv_bn_relu_kernel(x_ref, w_ref, gamma_ref, beta_ref, o_ref,
                              sum_sc, *, inv_m, eps):
    # x_ref:     (Cin, HW)       f32   current batch element (channel-major pixels)
    # w_ref:     (Cout, Cin)     f32   1x1-conv weight (resident, fetched once)
    # gamma/beta:(Cout, 1)       f32   BN affine params (resident)
    # o_ref:     (N, Cout, HW)   f32   FULL output array, resident across the grid
    #                                  (holds pre-BN y until the finalize step)
    # sum_sc:    (Cout, 1)       f32   running per-channel sum
    b = pl.program_id(0)

    @pl.when(b == 0)
    def _init():
        sum_sc[...] = jnp.zeros_like(sum_sc)

    # 1x1 convolution == channel-major matmul on the MXU (bf16 in, f32 accumulate).
    y = jnp.dot(w_ref[...].astype(jnp.bfloat16),
                x_ref[...].astype(jnp.bfloat16),
                preferred_element_type=jnp.float32)          # (Cout, HW)
    o_ref[b] = y                                             # stash pre-BN y in VMEM
    sum_sc[...] += jnp.sum(y, axis=1, keepdims=True)         # per-channel sum

    @pl.when(b == pl.num_programs(0) - 1)
    def _finalize():
        mean = sum_sc[...] * inv_m                           # (Cout, 1)
        yc = o_ref[...] - mean                               # (N, Cout, HW), centered
        # Two-pass (centered) biased variance straight from resident VMEM: avoids the
        # E[y^2] - mean^2 cancellation of the single-pass formula.
        var = jnp.sum(jnp.sum(yc * yc, axis=2, keepdims=True), axis=0) * inv_m
        scale = gamma_ref[...] * jax.lax.rsqrt(var + eps)    # (Cout, 1)
        # out = relu(gamma * (y - mean) / sqrt(var + eps) + beta), written in place.
        o_ref[...] = jnp.maximum(yc * scale + beta_ref[...],
                                 jnp.float32(0.0)).astype(o_ref.dtype)


def conv_bn_relu(x_nchw, weight, gamma, beta):
    """x_nchw: (N, Cin, H, W); weight: (Cout, Cin) from a 1x1 conv (Cout, Cin, 1, 1)."""
    n, cin, h, w = x_nchw.shape
    cout = weight.shape[0]
    hw = h * w
    m = n * hw

    # Free, contiguous reshapes only -- no transpose / pad / cast passes in the wrapper.
    x3d = x_nchw.reshape(n, cin, hw)
    gamma2d = gamma.reshape(cout, 1).astype(jnp.float32)
    beta2d = beta.reshape(cout, 1).astype(jnp.float32)

    out3d = pl.pallas_call(
        functools.partial(fused_conv_bn_relu_kernel,
                          inv_m=1.0 / float(m), eps=float(EPS)),
        out_shape=jax.ShapeDtypeStruct((n, cout, hw), jnp.float32),
        grid_spec=pltpu.PrefetchScalarGridSpec(
            num_scalar_prefetch=0,
            grid=(n,),
            in_specs=[
                pl.BlockSpec((None, cin, hw), lambda b: (b, 0, 0)),   # one batch elem
                pl.BlockSpec((cout, cin), lambda b: (0, 0)),          # weight, resident
                pl.BlockSpec((cout, 1), lambda b: (0, 0)),            # gamma
                pl.BlockSpec((cout, 1), lambda b: (0, 0)),            # beta
            ],
            # Constant index_map => whole output stays resident in VMEM across the
            # grid (accumulator pattern); DMA'd to HBM only after the last step.
            out_specs=pl.BlockSpec((n, cout, hw), lambda b: (0, 0, 0)),
            scratch_shapes=[pltpu.VMEM((cout, 1), jnp.float32)],
        ),
        compiler_params=pltpu.CompilerParams(
            dimension_semantics=("arbitrary",),
        ),
    )(x3d, weight, gamma2d, beta2d)

    return out3d.reshape(n, cout, h, w).astype(x_nchw.dtype)


def reference(x_nchw, weight, gamma, beta):
    """Pure-JAX reference with the same bf16 matmul-input quantization, f32 BN/ReLU."""
    n, cin, h, w = x_nchw.shape
    cout = weight.shape[0]
    x3 = x_nchw.reshape(n, cin, h * w).astype(jnp.bfloat16)
    y = jnp.einsum("oc,ncm->nom", weight.astype(jnp.bfloat16), x3,
                   preferred_element_type=jnp.float32)
    mean = jnp.mean(y, axis=(0, 2), keepdims=True)
    var = jnp.mean((y - mean) ** 2, axis=(0, 2), keepdims=True)
    out = (y - mean) * jax.lax.rsqrt(var + EPS) * gamma.reshape(1, cout, 1) \
        + beta.reshape(1, cout, 1)
    out = jnp.maximum(out, 0.0)
    return out.reshape(n, cout, h, w)


if __name__ == "__main__":
    key = jax.random.PRNGKey(0)
    k_x, k_w, k_g, k_b = jax.random.split(key, 4)

    # Channel counts fixed by Conv2d(288, 128, 1x1); spatial dims match the spec input.
    N, CIN, COUT, H, W = 1, 288, 128, 28, 28

    x = jax.random.normal(k_x, (N, CIN, H, W), dtype=jnp.float32)
    weight = jax.random.normal(k_w, (COUT, CIN), dtype=jnp.float32) * 0.05
    # Non-trivial affine params to exercise the fused scale/shift path.
    gamma = 1.0 + 0.1 * jax.random.normal(k_g, (COUT,), dtype=jnp.float32)
    beta = 0.1 * jax.random.normal(k_b, (COUT,), dtype=jnp.float32)

    fused = jax.jit(conv_bn_relu)
    out = jax.block_until_ready(fused(x, weight, gamma, beta))
    ref = jax.block_until_ready(reference(x, weight, gamma, beta))

    assert out.shape == (N, COUT, H, W), out.shape
    max_err = float(jnp.max(jnp.abs(out - ref)))
    assert jnp.allclose(out, ref, atol=2e-3, rtol=2e-3), max_err
    print("KERNEL_OK")
</pallas_src>

<mosaic_0001>
module attributes {stable_mosaic.version = 11 : i64} {
  func.func @fused_conv_bn_relu_kernel(%arg0: i32, %arg1: memref<1x288x784xf32, #tpu.memory_space<vmem>>, %arg2: memref<128x288xf32, #tpu.memory_space<vmem>>, %arg3: memref<128x1xf32, #tpu.memory_space<vmem>>, %arg4: memref<128x1xf32, #tpu.memory_space<vmem>>, %arg5: memref<1x128x784xf32, #tpu.memory_space<vmem>>, %arg6: memref<128x1xf32, #tpu.memory_space<vmem>>) attributes {dimension_semantics = [#tpu.dimension_semantics<arbitrary>], iteration_bounds = array<i64: 1>, scalar_prefetch = 0 : i64, scratch_operands = 1 : i64, tpu.core_type = #tpu.core_type<tc>, window_params = [{transform_indices = @transform_0, window_bounds = array<i64: 1, 288, 784>}, {pipeline_mode = #tpu.pipeline_mode<synchronous>, transform_indices = @transform_1, window_bounds = array<i64: 128, 288>}, {pipeline_mode = #tpu.pipeline_mode<synchronous>, transform_indices = @transform_2, window_bounds = array<i64: 128, 1>}, {pipeline_mode = #tpu.pipeline_mode<synchronous>, transform_indices = @transform_3, window_bounds = array<i64: 128, 1>}, {pipeline_mode = #tpu.pipeline_mode<synchronous>, transform_indices = @transform_4, window_bounds = array<i64: 1, 128, 784>}]} {
    %c0_i32 = arith.constant 0 : i32
    %0 = arith.cmpi eq, %arg0, %c0_i32 : i32
    %1 = arith.extui %0 : i1 to i32
    %c0_i32_0 = arith.constant 0 : i32
    %2 = arith.cmpi ne, %1, %c0_i32_0 : i32
    scf.if %2 {
      %cst_14 = arith.constant 0.000000e+00 : f32
      %21 = vector.broadcast %cst_14 : f32 to vector<128x1xf32>
      %c0_15 = arith.constant 0 : index
      %c0_16 = arith.constant 0 : index
      %22 = vector.load %arg6[%c0_15, %c0_16] : memref<128x1xf32, #tpu.memory_space<vmem>>, vector<128x1xf32>
      tpu.vector_store %arg6[%c0_15, %c0_16], %21 {strides = array<i32>} : memref<128x1xf32, #tpu.memory_space<vmem>>, vector<128x1xf32>,
    } else {
    }
    %c0 = arith.constant 0 : index
    %c0_1 = arith.constant 0 : index
    %3 = vector.load %arg2[%c0, %c0_1] : memref<128x288xf32, #tpu.memory_space<vmem>>, vector<128x288xf32>
    %4 = arith.truncf %3 : vector<128x288xf32> to vector<128x288xbf16>
    %c0_2 = arith.constant 0 : index
    %c0_3 = arith.constant 0 : index
    %c0_4 = arith.constant 0 : index
    %5 = vector.load %arg1[%c0_2, %c0_3, %c0_4] : memref<1x288x784xf32, #tpu.memory_space<vmem>>, vector<1x288x784xf32>
    %6 = vector.shape_cast %5 : vector<1x288x784xf32> to vector<288x784xf32>
    %7 = arith.truncf %6 : vector<288x784xf32> to vector<288x784xbf16>
    %cst = arith.constant dense<0.000000e+00> : vector<128x784xf32>
    %8 = tpu.matmul %4, %7, %cst {dimension_numbers = #tpu.dot_dimension_numbers<[1], [0], [0], [1], [0, 0, 1, 1], [], []>} : vector<128x288xbf16>, vector<288x784xbf16>, vector<128x784xf32> -> vector<128x784xf32>
    %9 = arith.index_cast %arg0 : i32 to index
    %c0_5 = arith.constant 0 : index
    %c0_6 = arith.constant 0 : index
    %10 = vector.load %arg5[%9, %c0_5, %c0_6] : memref<1x128x784xf32, #tpu.memory_space<vmem>>, vector<1x128x784xf32>
    %11 = vector.shape_cast %10 : vector<1x128x784xf32> to vector<128x784xf32>
    %12 = vector.shape_cast %8 : vector<128x784xf32> to vector<1x128x784xf32>
    tpu.vector_store %arg5[%9, %c0_5, %c0_6], %12 {strides = array<i32>} : memref<1x128x784xf32, #tpu.memory_space<vmem>>, vector<1x128x784xf32>,
    %c0_7 = arith.constant 0 : index
    %c0_8 = arith.constant 0 : index
    %13 = vector.load %arg6[%c0_7, %c0_8] : memref<128x1xf32, #tpu.memory_space<vmem>>, vector<128x1xf32>
    %cst_9 = arith.constant dense<0.000000e+00> : vector<128xf32>
    %14 = vector.multi_reduction <add>, %8, %cst_9 [1] : vector<128x784xf32> to vector<128xf32>
    %15 = vector.shape_cast %14 : vector<128xf32> to vector<128x1xf32>
    %16 = arith.addf %13, %15 : vector<128x1xf32>
    %c0_10 = arith.constant 0 : index
    %c0_11 = arith.constant 0 : index
    %17 = vector.load %arg6[%c0_10, %c0_11] : memref<128x1xf32, #tpu.memory_space<vmem>>, vector<128x1xf32>
    tpu.vector_store %arg6[%c0_10, %c0_11], %16 {strides = array<i32>} : memref<128x1xf32, #tpu.memory_space<vmem>>, vector<128x1xf32>,
    %c0_i32_12 = arith.constant 0 : i32
    %18 = arith.cmpi eq, %arg0, %c0_i32_12 : i32
    %19 = arith.extui %18 : i1 to i32
    %c0_i32_13 = arith.constant 0 : i32
    %20 = arith.cmpi ne, %19, %c0_i32_13 : i32
    scf.if %20 {
      %c0_14 = arith.constant 0 : index
      %c0_15 = arith.constant 0 : index
      %21 = vector.load %arg6[%c0_14, %c0_15] : memref<128x1xf32, #tpu.memory_space<vmem>>, vector<128x1xf32>
      %cst_16 = arith.constant 0.00127551018 : f32
      %22 = vector.broadcast %cst_16 : f32 to vector<128x1xf32>
      %23 = arith.mulf %21, %22 : vector<128x1xf32>
      %c0_17 = arith.constant 0 : index
      %c0_18 = arith.constant 0 : index
      %c0_19 = arith.constant 0 : index
      %24 = vector.load %arg5[%c0_17, %c0_18, %c0_19] : memref<1x128x784xf32, #tpu.memory_space<vmem>>, vector<1x128x784xf32>
      %25 = vector.shape_cast %23 : vector<128x1xf32> to vector<1x128x1xf32>
      %26 = vector.broadcast %25 : vector<1x128x1xf32> to vector<1x128x784xf32>
      %27 = arith.subf %24, %26 : vector<1x128x784xf32>
      %28 = arith.mulf %27, %27 : vector<1x128x784xf32>
      %cst_20 = arith.constant dense<0.000000e+00> : vector<1x128xf32>
      %29 = vector.multi_reduction <add>, %28, %cst_20 [2] : vector<1x128x784xf32> to vector<1x128xf32>
      %30 = vector.shape_cast %29 : vector<1x128xf32> to vector<1x128x1xf32>
      %cst_21 = arith.constant dense<0.000000e+00> : vector<128x1xf32>
      %31 = vector.multi_reduction <add>, %30, %cst_21 [0] : vector<1x128x1xf32> to vector<128x1xf32>
      %cst_22 = arith.constant 0.00127551018 : f32
      %32 = vector.broadcast %cst_22 : f32 to vector<128x1xf32>
      %33 = arith.mulf %31, %32 : vector<128x1xf32>
      %c0_23 = arith.constant 0 : index
      %c0_24 = arith.constant 0 : index
      %34 = vector.load %arg3[%c0_23, %c0_24] : memref<128x1xf32, #tpu.memory_space<vmem>>, vector<128x1xf32>
      %cst_25 = arith.constant 9.99999974E-6 : f32
      %35 = vector.broadcast %cst_25 : f32 to vector<128x1xf32>
      %36 = arith.addf %33, %35 : vector<128x1xf32>
      %37 = math.rsqrt %36 : vector<128x1xf32>
      %38 = arith.mulf %34, %37 : vector<128x1xf32>
      %39 = vector.shape_cast %38 : vector<128x1xf32> to vector<1x128x1xf32>
      %40 = vector.broadcast %39 : vector<1x128x1xf32> to vector<1x128x784xf32>
      %41 = arith.mulf %27, %40 : vector<1x128x784xf32>
      %c0_26 = arith.constant 0 : index
      %c0_27 = arith.constant 0 : index
      %42 = vector.load %arg4[%c0_26, %c0_27] : memref<128x1xf32, #tpu.memory_space<vmem>>, vector<128x1xf32>
      %43 = vector.shape_cast %42 : vector<128x1xf32> to vector<1x128x1xf32>
      %44 = vector.broadcast %43 : vector<1x128x1xf32> to vector<1x128x784xf32>
      %45 = arith.addf %41, %44 : vector<1x128x784xf32>
      %cst_28 = arith.constant 0.000000e+00 : f32
      %46 = vector.broadcast %cst_28 : f32 to vector<1x128x784xf32>
      %47 = arith.maximumf %45, %46 : vector<1x128x784xf32>
      %c0_29 = arith.constant 0 : index
      %c0_30 = arith.constant 0 : index
      %c0_31 = arith.constant 0 : index
      %48 = vector.load %arg5[%c0_29, %c0_30, %c0_31] : memref<1x128x784xf32, #tpu.memory_space<vmem>>, vector<1x128x784xf32>
      tpu.vector_store %arg5[%c0_29, %c0_30, %c0_31], %47 {strides = array<i32>} : memref<1x128x784xf32, #tpu.memory_space<vmem>>, vector<1x128x784xf32>,
    } else {
    }
    return
  }
  func.func @transform_0(%arg0: i32) -> (i32, i32, i32) {
    %c0_i32 = arith.constant 0 : i32
    %c0_i32_0 = arith.constant 0 : i32
    %c0_i32_1 = arith.constant 0 : i32
    return %arg0, %c0_i32, %c0_i32_0 : i32, i32, i32
  }
  func.func @transform_1(%arg0: i32) -> (i32, i32) {
    %c0_i32 = arith.constant 0 : i32
    %c0_i32_0 = arith.constant 0 : i32
    %c0_i32_1 = arith.constant 0 : i32
    return %c0_i32, %c0_i32_0 : i32, i32
  }
  func.func @transform_2(%arg0: i32) -> (i32, i32) {
    %c0_i32 = arith.constant 0 : i32
    %c0_i32_0 = arith.constant 0 : i32
    %c0_i32_1 = arith.constant 0 : i32
    return %c0_i32, %c0_i32_0 : i32, i32
  }
  func.func @transform_3(%arg0: i32) -> (i32, i32) {
    %c0_i32 = arith.constant 0 : i32
    %c0_i32_0 = arith.constant 0 : i32
    %c0_i32_1 = arith.constant 0 : i32
    return %c0_i32, %c0_i32_0 : i32, i32
  }
  func.func @transform_4(%arg0: i32) -> (i32, i32, i32) {
    %c0_i32 = arith.constant 0 : i32
    %c0_i32_0 = arith.constant 0 : i32
    %c0_i32_1 = arith.constant 0 : i32
    %c0_i32_2 = arith.constant 0 : i32
    return %c0_i32, %c0_i32_0, %c0_i32_1 : i32, i32, i32
  }
}

</mosaic_0001>

<bundles_post_ra>
// kernel: conv_bn_relu.1
= control target key start
LH: loop header
LB: loop body
LE: loop exit
PB: predicated region body
PF: predicated region fallthrough
CT: control target
= control target key end

     0   :  { %v3180_v3 = vmov 0   ;;  %vm489_vm0 = vcmask 261120   ;;  %vm22_vm1 = vcmask 7168   ;;  %vm1395_vm2 = vcmask 130048   ;;  %s6825_s0 = inlined_call_operand.vmem [shape: f32[1,288,784], index: 0, kind: input, shape index: {}]   ;;  %s6826_s1 = inlined_call_operand.vmem [shape: f32[128,288], index: 1, kind: input, shape index: {}]   ;;  %s6827_s4 = inlined_call_operand.vmem [shape: f32[1,128,784], index: 4, kind: output, shape index: {}]   ;;  %s6828_s3 = inlined_call_operand.vmem [shape: f32[128,1], index: 3, kind: input, shape index: {}]   ;;  %s6829_s2 = inlined_call_operand.vmem [shape: f32[128,1], index: 2, kind: input, shape index: {}]  }
   0x1   :  { %v210_v0 = vld [vmem:[%s6825_s0 + $0x318] sm:$0xff]  ;;  %v217_v1 = vld [vmem:[%s6825_s0 + $0x350] sm:$0xff]  ;;  %659 = vmatprep.mubr.bf16.mxu1 %v3180_v3  ;;  %3146 = vset.pattern.permute.xlu1 %v3180_v3  ;;  %v216_v7 = vld [vmem:[%s6825_s0 + $0x348] sm:$0xff] }
   0x2   :  { %v350_v2 = vld [vmem:[%s6825_s0 + $0x778] sm:$0xff]  ;;  %v413_v4 = vpack.c.bf16 %v217_v1, %v210_v0  ;;  %v357_v5 = vld [vmem:[%s6825_s0 + $0x7b0] sm:$0xff]  ;;  %3147 = vset.pattern.permute.xlu0 %v3180_v3  ;;  %v356_v11 = vld [vmem:[%s6825_s0 + $0x7a8] sm:$0xff] }
   0x3   :  { %v209_v6 = vld [vmem:[%s6825_s0 + $0x310] sm:$0xff]  ;;  %v483_v8 = vpack.c.bf16 %v357_v5, %v350_v2  ;;  %v196_v12 = vld [vmem:[%s6825_s0 + $0x2a8] sm:$0xff]  ;;  %v203_v14 = vld [vmem:[%s6825_s0 + $0x2e0] sm:$0xff] }
   0x4   :  { %v412_v9 = vpack.c.bf16 %v216_v7, %v209_v6  ;;  %v349_v10 = vld [vmem:[%s6825_s0 + $0x770] sm:$0xff]  ;;  %514 = vmatprep.subr.bf16.mxu0 %v413_v4  ;;  %v336_v15 = vld [vmem:[%s6825_s0 + $0x708] sm:$0xff]  ;;  %v343_v16 = vld [vmem:[%s6825_s0 + $0x740] sm:$0xff]  ;;  %v406_v17 = vpack.c.bf16 %v203_v14, %v196_v12 }
   0x5   :  { %v482_v13 = vpack.c.bf16 %v356_v11, %v349_v10  ;;  %639 = vmatprep.subr.bf16.mxu1 %v483_v8  ;;  %v476_v18 = vpack.c.bf16 %v343_v16, %v336_v15  ;;  %v195_v19 = vld [vmem:[%s6825_s0 + $0x2a0] sm:$0xff]  ;;  %v202_v20 = vld [vmem:[%s6825_s0 + $0x2d8] sm:$0xff]  ;;  %v189_v25 = vld [vmem:[%s6825_s0 + $0x270] sm:$0xff] }
   0x6   :  { %515 = vmatpush1.bf16.msra.mxu0 %v412_v9  ;;  %v335_v21 = vld [vmem:[%s6825_s0 + $0x700] sm:$0xff]  ;;  %v405_v22 = vpack.c.bf16 %v202_v20, %v195_v19  ;;  %v342_v23 = vld [vmem:[%s6825_s0 + $0x738] sm:$0xff]  ;;  %v41_v28 = vld [vmem:[%s6826_s1 + $0x10] sm:$0xff] }
   0x7   :  { %640 = vmatpush1.bf16.msra.mxu1 %v482_v13  ;;  %v182_v24 = vld [vmem:[%s6825_s0 + $0x238] sm:$0xff]  ;;  %516 = vmatprep.subr.bf16.mxu0 %v406_v17  ;;  %v475_v26 = vpack.c.bf16 %v342_v23, %v335_v21  ;;  %v44_v29 = vld [vmem:[%s6826_s1 + $0x28] sm:$0xff]  ;;  %v219_v31 = vld [vmem:[%s6825_s0 + $0x360] sm:$0xff] }
   0x8   :  { %641 = vmatprep.subr.bf16.mxu1 %v476_v18  ;;  %v399_v27 = vpack.c.bf16 %v189_v25, %v182_v24  ;;  %v212_v30 = vld [vmem:[%s6825_s0 + $0x328] sm:$0xff]  ;;  %v181_v32 = vld [vmem:[%s6825_s0 + $0x230] sm:$0xff]  ;;  %v3282_v34 = vpack.c.bf16 %v44_v29, %v41_v28  ;;  %v211_v37 = vld [vmem:[%s6825_s0 + $0x320] sm:$0xff] }
   0x9   :  { %v188_v33 = vld [vmem:[%s6825_s0 + $0x268] sm:$0xff]  ;;  %v415_v35 = vpack.c.bf16 %v219_v31, %v212_v30  ;;  %v218_v38 = vld [vmem:[%s6825_s0 + $0x358] sm:$0xff]  ;;  %v175_v41 = vld [vmem:[%s6825_s0 + $0x200] sm:$0xff] }
   0xa   :  { %517 = vmatpush1.bf16.msra.mxu0 %v405_v22  ;;  %v398_v36 = vpack.c.bf16 %v188_v33, %v181_v32  ;;  %v168_v39 = vld [vmem:[%s6825_s0 + $0x1c8] sm:$0xff]  ;;  %v414_v40 = vpack.c.bf16 %v218_v38, %v211_v37  ;;  %v198_v42 = vld [vmem:[%s6825_s0 + $0x2b8] sm:$0xff]  ;;  %v205_v43 = vld [vmem:[%s6825_s0 + $0x2f0] sm:$0xff] }
   0xb   :  { %642 = vmatpush1.bf16.msra.mxu1 %v475_v26  ;;  %518 = vmatprep.subr.bf16.mxu0 %v399_v27  ;;  %v392_v44 = vpack.c.bf16 %v175_v41, %v168_v39  ;;  %v408_v45 = vpack.c.bf16 %v205_v43, %v198_v42  ;;  %v167_v46 = vld [vmem:[%s6825_s0 + $0x1c0] sm:$0xff]  ;;  %v174_v47 = vld [vmem:[%s6825_s0 + $0x1f8] sm:$0xff]  ;;  %v197_v48 = vld [vmem:[%s6825_s0 + $0x2b0] sm:$0xff] }
   0xc   :  { %740 = vmatprep.subr.bf16.mxu1 %v415_v35  ;;  %v204_v49 = vld [vmem:[%s6825_s0 + $0x2e8] sm:$0xff]  ;;  %v154_v50 = vld [vmem:[%s6825_s0 + $0x158] sm:$0xff]  ;;  %v161_v51 = vld [vmem:[%s6825_s0 + $0x190] sm:$0xff]  ;;  %v391_v52 = vpack.c.bf16 %v174_v47, %v167_v46 }
   0xd   :  { %v47_v53 = vld [vmem:[%s6826_s1 + $0x40] sm:$0xff]  ;;  %v50_v54 = vld [vmem:[%s6826_s1 + $0x58] sm:$0xff]  ;;  %v184_v55 = vld [vmem:[%s6825_s0 + $0x248] sm:$0xff]  ;;  %v407_v56 = vpack.c.bf16 %v204_v49, %v197_v48  ;;  %v385_v57 = vpack.c.bf16 %v161_v51, %v154_v50 }
   0xe   :  { %3014 = vmatmul.mubr.msk.bf16.vlgmr.msra.gmra.mxu1 %vm489_vm0, %v3282_v34  ;;  %519 = vmatpush1.bf16.msra.mxu0 %v398_v36  ;;  %v191_v58 = vld [vmem:[%s6825_s0 + $0x280] sm:$0xff]  ;;  %v153_v59 = vld [vmem:[%s6825_s0 + $0x150] sm:$0xff]  ;;  %v160_v60 = vld [vmem:[%s6825_s0 + $0x188] sm:$0xff]  ;;  %v3359_v5 = vpack.c.bf16 %v50_v54, %v47_v53 }
   0xf   :  { %741 = vmatpush1.bf16.msra.mxu1 %v414_v40  ;;  %520 = vmatprep.subr.bf16.mxu0 %v392_v44  ;;  %v401_v61 = vpack.c.bf16 %v191_v58, %v184_v55  ;;  %v183_v62 = vld [vmem:[%s6825_s0 + $0x240] sm:$0xff]  ;;  %v190_v63 = vld [vmem:[%s6825_s0 + $0x278] sm:$0xff]  ;;  %v140_v0 = vld [vmem:[%s6825_s0 + $0xe8] sm:$0xff]  ;;  %v384_v6 = vpack.c.bf16 %v160_v60, %v153_v59 }
  0x10   :  { %742 = vmatprep.subr.bf16.mxu1 %v408_v45  ;;  %669 = vmatprep.mubr.bf16.mxu1 %v3180_v3  ;;  %v147_v1 = vld [vmem:[%s6825_s0 + $0x120] sm:$0xff]  ;;  %v170_v2 = vld [vmem:[%s6825_s0 + $0x1d8] sm:$0xff]  ;;  %v177_v4 = vld [vmem:[%s6825_s0 + $0x210] sm:$0xff]  ;;  %v400_v7 = vpack.c.bf16 %v190_v63, %v183_v62 }
  0x11   :  { %v378_v8 = vpack.c.bf16 %v147_v1, %v140_v0  ;;  %v139_v9 = vld [vmem:[%s6825_s0 + $0xe0] sm:$0xff]  ;;  %v146_v10 = vld [vmem:[%s6825_s0 + $0x118] sm:$0xff]  ;;  %v169_v11 = vld [vmem:[%s6825_s0 + $0x1d0] sm:$0xff]  ;;  %v394_v12 = vpack.c.bf16 %v177_v4, %v170_v2 }
  0x12   :  { %521 = vmatpush1.bf16.msra.mxu0 %v391_v52  ;;  %v176_v13 = vld [vmem:[%s6825_s0 + $0x208] sm:$0xff]  ;;  %v126_v14 = vld [vmem:[%s6825_s0 + $0x78] sm:$0xff]  ;;  %v133_v15 = vld [vmem:[%s6825_s0 + $0xb0] sm:$0xff]  ;;  %v377_v18 = vpack.c.bf16 %v146_v10, %v139_v9 }
  0x13   :  { %743 = vmatpush1.bf16.msra.mxu1 %v407_v56  ;;  %522 = vmatprep.subr.bf16.mxu0 %v385_v57  ;;  %v156_v16 = vld [vmem:[%s6825_s0 + $0x168] sm:$0xff]  ;;  %v163_v17 = vld [vmem:[%s6825_s0 + $0x1a0] sm:$0xff]  ;;  %v53_v19 = vld [vmem:[%s6826_s1 + $0x70] sm:$0xff]  ;;  %v393_v21 = vpack.c.bf16 %v176_v13, %v169_v11  ;;  %v371_v22 = vpack.c.bf16 %v133_v15, %v126_v14 }
  0x14   :  { %744 = vmatprep.subr.bf16.mxu1 %v401_v61  ;;  %v56_v20 = vld [vmem:[%s6826_s1 + $0x88] sm:$0xff]  ;;  %v125_v23 = vld [vmem:[%s6825_s0 + $0x70] sm:$0xff]  ;;  %v155_v25 = vld [vmem:[%s6825_s0 + $0x160] sm:$0xff]  ;;  %v387_v26 = vpack.c.bf16 %v163_v17, %v156_v16 }
  0x15   :  { %v132_v24 = vld [vmem:[%s6825_s0 + $0xa8] sm:$0xff]  ;;  %v162_v27 = vld [vmem:[%s6825_s0 + $0x198] sm:$0xff]  ;;  %v119_v29 = vld [vmem:[%s6825_s0 + $0x40] sm:$0xff]  ;;  %v3418_v32 = vpack.c.bf16 %v56_v20, %v53_v19 }
  0x16   :  { %3015 = vmatmul.mubr.msk.bf16.gmra.mxu1 %vm489_vm0, %v3359_v5  ;;  %523 = vmatpush1.bf16.msra.mxu0 %v384_v6  ;;  %v112_v28 = vld [vmem:[%s6825_s0 + $0x8] sm:$0xff]  ;;  %v142_v30 = vld [vmem:[%s6825_s0 + $0xf8] sm:$0xff]  ;;  %v149_v31 = vld [vmem:[%s6825_s0 + $0x130] sm:$0xff]  ;;  %v370_v33 = vpack.c.bf16 %v132_v24, %v125_v23  ;;  %v386_v35 = vpack.c.bf16 %v162_v27, %v155_v25 }
  0x17   :  { %745 = vmatpush1.bf16.msra.mxu1 %v400_v7  ;;  %524 = vmatprep.subr.bf16.mxu0 %v378_v8  ;;  %v364_v36 = vpack.c.bf16 %v119_v29, %v112_v28  ;;  %v111_v37 = vld [vmem:[%s6825_s0] sm:$0xff]  ;;  %v118_v38 = vld [vmem:[%s6825_s0 + $0x38] sm:$0xff]  ;;  %v141_v39 = vld [vmem:[%s6825_s0 + $0xf0] sm:$0xff]  ;;  %v380_v40 = vpack.c.bf16 %v149_v31, %v142_v30 }
  0x18   :  { %746 = vmatprep.subr.bf16.mxu1 %v394_v12  ;;  %679 = vmatprep.mubr.bf16.mxu1 %v3180_v3  ;;  %v148_v41 = vld [vmem:[%s6825_s0 + $0x128] sm:$0xff]  ;;  %v322_v42 = vld [vmem:[%s6825_s0 + $0x698] sm:$0xff]  ;;  %v329_v43 = vld [vmem:[%s6825_s0 + $0x6d0] sm:$0xff]  ;;  %v363_v46 = vpack.c.bf16 %v118_v38, %v111_v37 }
  0x19   :  { %v128_v44 = vld [vmem:[%s6825_s0 + $0x88] sm:$0xff]  ;;  %v135_v45 = vld [vmem:[%s6825_s0 + $0xc0] sm:$0xff]  ;;  %v62_v48 = vld [vmem:[%s6826_s1 + $0xb8] sm:$0xff]  ;;  %v379_v49 = vpack.c.bf16 %v148_v41, %v141_v39  ;;  %v469_v50 = vpack.c.bf16 %v329_v43, %v322_v42 }
  0x1a   :  { %525 = vmatpush1.bf16.msra.mxu0 %v377_v18  ;;  %v59_v47 = vld [vmem:[%s6826_s1 + $0xa0] sm:$0xff]  ;;  %v321_v51 = vld [vmem:[%s6825_s0 + $0x690] sm:$0xff]  ;;  %v328_v52 = vld [vmem:[%s6825_s0 + $0x6c8] sm:$0xff]  ;;  %v373_v54 = vpack.c.bf16 %v135_v45, %v128_v44 }
  0x1b   :  { %747 = vmatpush1.bf16.msra.mxu1 %v393_v21  ;;  %526 = vmatprep.subr.bf16.mxu0 %v371_v22  ;;  %v127_v53 = vld [vmem:[%s6825_s0 + $0x80] sm:$0xff]  ;;  %v134_v55 = vld [vmem:[%s6825_s0 + $0xb8] sm:$0xff]  ;;  %v308_v56 = vld [vmem:[%s6825_s0 + $0x628] sm:$0xff]  ;;  %v3477_v60 = vpack.c.bf16 %v62_v48, %v59_v47  ;;  %v468_v61 = vpack.c.bf16 %v328_v52, %v321_v51 }
  0x1c   :  { %748 = vmatprep.subr.bf16.mxu1 %v387_v26  ;;  %v315_v57 = vld [vmem:[%s6825_s0 + $0x660] sm:$0xff]  ;;  %v114_v58 = vld [vmem:[%s6825_s0 + $0x18] sm:$0xff]  ;;  %v121_v59 = vld [vmem:[%s6825_s0 + $0x50] sm:$0xff]  ;;  %v372_v62 = vpack.c.bf16 %v134_v55, %v127_v53 }
  0x1d   :  { %v462_v63 = vpack.c.bf16 %v315_v57, %v308_v56  ;;  %v307_v0 = vld [vmem:[%s6825_s0 + $0x620] sm:$0xff]  ;;  %v314_v1 = vld [vmem:[%s6825_s0 + $0x658] sm:$0xff]  ;;  %v113_v2 = vld [vmem:[%s6825_s0 + $0x10] sm:$0xff]  ;;  %v366_v4 = vpack.c.bf16 %v121_v59, %v114_v58 }
  0x1e   :  { %3016 = vmatmul.mubr.msk.bf16.gmra.mxu1 %vm489_vm0, %v3418_v32  ;;  %527 = vmatpush1.bf16.msra.mxu0 %v370_v33  ;;  %v120_v6 = vld [vmem:[%s6825_s0 + $0x48] sm:$0xff]  ;;  %v294_v7 = vld [vmem:[%s6825_s0 + $0x5b8] sm:$0xff]  ;;  %v301_v8 = vld [vmem:[%s6825_s0 + $0x5f0] sm:$0xff]  ;;  %v461_v11 = vpack.c.bf16 %v314_v1, %v307_v0 }
  0x1f   :  { %749 = vmatpush1.bf16.msra.mxu1 %v386_v35  ;;  %528 = vmatprep.subr.bf16.mxu0 %v364_v36  ;;  %v324_v9 = vld [vmem:[%s6825_s0 + $0x6a8] sm:$0xff]  ;;  %v331_v10 = vld [vmem:[%s6825_s0 + $0x6e0] sm:$0xff]  ;;  %v65_v12 = vld [vmem:[%s6826_s1 + $0xd0] sm:$0xff]  ;;  %v365_v14 = vpack.c.bf16 %v120_v6, %v113_v2  ;;  %v455_v15 = vpack.c.bf16 %v301_v8, %v294_v7 }
  0x20   :  { %750 = vmatprep.subr.bf16.mxu1 %v380_v40  ;;  %689 = vmatprep.mubr.bf16.mxu1 %v3180_v3  ;;  %v68_v13 = vld [vmem:[%s6826_s1 + $0xe8] sm:$0xff]  ;;  %v293_v16 = vld [vmem:[%s6825_s0 + $0x5b0] sm:$0xff]  ;;  %v323_v18 = vld [vmem:[%s6825_s0 + $0x6a0] sm:$0xff]  ;;  %v471_v19 = vpack.c.bf16 %v331_v10, %v324_v9 }
  0x21   :  { %v300_v17 = vld [vmem:[%s6825_s0 + $0x5e8] sm:$0xff]  ;;  %v330_v20 = vld [vmem:[%s6825_s0 + $0x6d8] sm:$0xff]  ;;  %v287_v22 = vld [vmem:[%s6825_s0 + $0x580] sm:$0xff]  ;;  %v3536_v25 = vpack.c.bf16 %v68_v13, %v65_v12 }
  0x22   :  { %529 = vmatpush1.bf16.msra.mxu0 %v363_v46  ;;  %v280_v21 = vld [vmem:[%s6825_s0 + $0x548] sm:$0xff]  ;;  %v310_v23 = vld [vmem:[%s6825_s0 + $0x638] sm:$0xff]  ;;  %v317_v24 = vld [vmem:[%s6825_s0 + $0x670] sm:$0xff]  ;;  %v454_v26 = vpack.c.bf16 %v300_v17, %v293_v16  ;;  %v470_v27 = vpack.c.bf16 %v330_v20, %v323_v18 }
  0x23   :  { %751 = vmatpush1.bf16.msra.mxu1 %v379_v49  ;;  %530 = vmatprep.subr.bf16.mxu0 %v469_v50  ;;  %v448_v28 = vpack.c.bf16 %v287_v22, %v280_v21  ;;  %v279_v29 = vld [vmem:[%s6825_s0 + $0x540] sm:$0xff]  ;;  %v286_v30 = vld [vmem:[%s6825_s0 + $0x578] sm:$0xff]  ;;  %v309_v31 = vld [vmem:[%s6825_s0 + $0x630] sm:$0xff]  ;;  %v464_v33 = vpack.c.bf16 %v317_v24, %v310_v23 }
  0x24   :  { %752 = vmatprep.subr.bf16.mxu1 %v373_v54  ;;  %v316_v35 = vld [vmem:[%s6825_s0 + $0x668] sm:$0xff]  ;;  %v266_v36 = vld [vmem:[%s6825_s0 + $0x4d8] sm:$0xff]  ;;  %v273_v37 = vld [vmem:[%s6825_s0 + $0x510] sm:$0xff]  ;;  %v447_v40 = vpack.c.bf16 %v286_v30, %v279_v29 }
  0x25   :  { %v296_v38 = vld [vmem:[%s6825_s0 + $0x5c8] sm:$0xff]  ;;  %v303_v39 = vld [vmem:[%s6825_s0 + $0x600] sm:$0xff]  ;;  %v74_v42 = vld [vmem:[%s6826_s1 + $0x118] sm:$0xff]  ;;  %v463_v44 = vpack.c.bf16 %v316_v35, %v309_v31  ;;  %v441_v45 = vpack.c.bf16 %v273_v37, %v266_v36 }
  0x26   :  { %3017 = vmatmul.mubr.msk.bf16.gmra.mxu1 %vm489_vm0, %v3477_v60  ;;  %531 = vmatpush2.bf16.msra.mxu0 %v468_v61  ;;  %v71_v41 = vld [vmem:[%s6826_s1 + $0x100] sm:$0xff]  ;;  %v265_v43 = vld [vmem:[%s6825_s0 + $0x4d0] sm:$0xff]  ;;  %v272_v46 = vld [vmem:[%s6825_s0 + $0x508] sm:$0xff]  ;;  %v457_v49 = vpack.c.bf16 %v303_v39, %v296_v38 }
  0x27   :  { %753 = vmatpush1.bf16.msra.mxu1 %v372_v62  ;;  %532 = vmatprep.subr.bf16.mxu0 %v462_v63  ;;  %v295_v47 = vld [vmem:[%s6825_s0 + $0x5c0] sm:$0xff]  ;;  %v302_v48 = vld [vmem:[%s6825_s0 + $0x5f8] sm:$0xff]  ;;  %v252_v50 = vld [vmem:[%s6825_s0 + $0x468] sm:$0xff]  ;;  %v3601_v56 = vpack.c.bf16 %v74_v42, %v71_v41  ;;  %v440_v57 = vpack.c.bf16 %v272_v46, %v265_v43 }
  0x28   :  { %754 = vmatprep.subr.bf16.mxu1 %v366_v4  ;;  %699 = vmatprep.mubr.bf16.mxu1 %v3180_v3  ;;  %v259_v51 = vld [vmem:[%s6825_s0 + $0x4a0] sm:$0xff]  ;;  %v282_v52 = vld [vmem:[%s6825_s0 + $0x558] sm:$0xff]  ;;  %v289_v53 = vld [vmem:[%s6825_s0 + $0x590] sm:$0xff]  ;;  %v456_v59 = vpack.c.bf16 %v302_v48, %v295_v47 }
  0x29   :  { %v40_v54 = vld [vmem:[%s6826_s1 + $0x8] sm:$0xff]  ;;  %v43_v55 = vld [vmem:[%s6826_s1 + $0x20] sm:$0xff]  ;;  %v434_v61 = vpack.c.bf16 %v259_v51, %v252_v50  ;;  %v258_v63 = vld [vmem:[%s6825_s0 + $0x498] sm:$0xff]  ;;  %v450_v1 = vpack.c.bf16 %v289_v53, %v282_v52 }
  0x2a   :  { %533 = vmatpush2.bf16.msra.mxu0 %v461_v11  ;;  %v3603_v58 = vpack.c.bf16 %v43_v55, %v40_v54  ;;  %v251_v62 = vld [vmem:[%s6825_s0 + $0x460] sm:$0xff]  ;;  %v281_v0 = vld [vmem:[%s6825_s0 + $0x550] sm:$0xff]  ;;  %v288_v2 = vld [vmem:[%s6825_s0 + $0x588] sm:$0xff] }
  0x2b   :  { %755 = vmatpush1.bf16.msra.mxu1 %v365_v14  ;;  %534 = vmatprep.subr.bf16.mxu0 %v455_v15  ;;  %v238_v4 = vld [vmem:[%s6825_s0 + $0x3f8] sm:$0xff]  ;;  %v245_v6 = vld [vmem:[%s6825_s0 + $0x430] sm:$0xff]  ;;  %v268_v7 = vld [vmem:[%s6825_s0 + $0x4e8] sm:$0xff]  ;;  %v433_v9 = vpack.c.bf16 %v258_v63, %v251_v62  ;;  %v449_v12 = vpack.c.bf16 %v288_v2, %v281_v0 }
  0x2c   :  { %756 = vmatprep.subr.bf16.mxu1 %v471_v19  ;;  %546 = vmatprep.mubr.bf16.mxu0 %v3603_v58  ;;  %v275_v8 = vld [vmem:[%s6825_s0 + $0x520] sm:$0xff]  ;;  %v77_v10 = vld [vmem:[%s6826_s1 + $0x130] sm:$0xff]  ;;  %v80_v11 = vld [vmem:[%s6826_s1 + $0x148] sm:$0xff]  ;;  %v427_v13 = vpack.c.bf16 %v245_v6, %v238_v4 }
  0x2d   :  { %v237_v14 = vld [vmem:[%s6825_s0 + $0x3f0] sm:$0xff]  ;;  %v244_v15 = vld [vmem:[%s6825_s0 + $0x428] sm:$0xff]  ;;  %v267_v16 = vld [vmem:[%s6825_s0 + $0x4e0] sm:$0xff]  ;;  %v443_v17 = vpack.c.bf16 %v275_v8, %v268_v7  ;;  %v3663_v23 = vpack.c.bf16 %v80_v11, %v77_v10 }
  0x2e   :  { %3018 = vmatmul.mubr.msk.bf16.gmra.mxu1 %vm489_vm0, %v3536_v25  ;;  %535 = vmatpush2.bf16.msra.mxu0 %v454_v26  ;;  %v274_v18 = vld [vmem:[%s6825_s0 + $0x518] sm:$0xff]  ;;  %v224_v19 = vld [vmem:[%s6825_s0 + $0x388] sm:$0xff]  ;;  %v231_v20 = vld [vmem:[%s6825_s0 + $0x3c0] sm:$0xff]  ;;  %v426_v24 = vpack.c.bf16 %v244_v15, %v237_v14 }
  0x2f   :  { %757 = vmatpush2.bf16.msra.mxu1 %v470_v27  ;;  %536 = vmatprep.subr.bf16.mxu0 %v448_v28  ;;  %v254_v21 = vld [vmem:[%s6825_s0 + $0x478] sm:$0xff]  ;;  %v261_v22 = vld [vmem:[%s6825_s0 + $0x4b0] sm:$0xff]  ;;  %v442_v26 = vpack.c.bf16 %v274_v18, %v267_v16  ;;  %v420_v27 = vpack.c.bf16 %v231_v20, %v224_v19  ;;  %v223_v28 = vld [vmem:[%s6825_s0 + $0x380] sm:$0xff] }
  0x30   :  { %758 = vmatprep.subr.bf16.mxu1 %v464_v33  ;;  %709 = vmatprep.mubr.bf16.mxu1 %v3180_v3  ;;  %v230_v29 = vld [vmem:[%s6825_s0 + $0x3b8] sm:$0xff]  ;;  %v253_v30 = vld [vmem:[%s6825_s0 + $0x470] sm:$0xff]  ;;  %v436_v31 = vpack.c.bf16 %v261_v22, %v254_v21  ;;  %v260_v33 = vld [vmem:[%s6825_s0 + $0x4a8] sm:$0xff] }
  0x31   :  { %v352_v35 = vld [vmem:[%s6825_s0 + $0x788] sm:$0xff]  ;;  %v359_v36 = vld [vmem:[%s6825_s0 + $0x7c0] sm:$0xff]  ;;  %v42_v41 = vld [vmem:[%s6826_s1 + $0x18] sm:$0xff] }
  0x32   :  { %537 = vmatpush2.bf16.msra.mxu0 %v447_v40  ;;  %v39_v37 = vld [vmem:[%s6826_s1] sm:$0xff]  ;;  %v240_v38 = vld [vmem:[%s6825_s0 + $0x408] sm:$0xff]  ;;  %v419_v40 = vpack.c.bf16 %v230_v29, %v223_v28  ;;  %v86_v43 = vld [vmem:[%s6826_s1 + $0x178] sm:$0xff] }
  0x33   :  { %759 = vmatpush2.bf16.msra.mxu1 %v463_v44  ;;  %538 = vmatprep.subr.bf16.mxu0 %v441_v45  ;;  %v247_v39 = vld [vmem:[%s6825_s0 + $0x440] sm:$0xff]  ;;  %v435_v44 = vpack.c.bf16 %v260_v33, %v253_v30  ;;  %v485_v45 = vpack.c.bf16 %v359_v36, %v352_v35  ;;  %v358_v48 = vld [vmem:[%s6825_s0 + $0x7b8] sm:$0xff]  ;;  %v49_v52 = vld [vmem:[%s6826_s1 + $0x50] sm:$0xff]  ;;  %v3722_v53 = vpack.c.bf16 %v42_v41, %v39_v37 }
  0x34   :  { %760 = vmatprep.subr.bf16.mxu1 %v457_v49  ;;  %v83_v42 = vld [vmem:[%s6826_s1 + $0x160] sm:$0xff]  ;;  %v429_v49 = vpack.c.bf16 %v247_v39, %v240_v38  ;;  %v246_v50 = vld [vmem:[%s6825_s0 + $0x438] sm:$0xff]  ;;  %v233_v55 = vld [vmem:[%s6825_s0 + $0x3d0] sm:$0xff] }
  0x35   :  { %v239_v46 = vld [vmem:[%s6825_s0 + $0x400] sm:$0xff]  ;;  %v46_v51 = vld [vmem:[%s6826_s1 + $0x38] sm:$0xff]  ;;  %v225_v62 = vld [vmem:[%s6825_s0 + $0x390] sm:$0xff] }
  0x36   :  { %3019 = vmatmul.mubr.msk.bf16.gmra.mxu1 %vm489_vm0, %v3601_v56  ;;  %539 = vmatpush2.bf16.msra.mxu0 %v440_v57  ;;  %v351_v47 = vld [vmem:[%s6825_s0 + $0x780] sm:$0xff]  ;;  %v226_v54 = vld [vmem:[%s6825_s0 + $0x398] sm:$0xff]  ;;  %v3730_v57 = vpack.c.bf16 %v86_v43, %v83_v42  ;;  %v3735_v63 = vpack.c.bf16 %v49_v52, %v46_v51  ;;  %v45_v2 = vld [vmem:[%s6826_s1 + $0x30] sm:$0xff] }
  0x37   :  { %761 = vmatpush2.bf16.msra.mxu1 %v456_v59  ;;  %540 = vmatprep.subr.bf16.mxu0 %v434_v61  ;;  %v484_v59 = vpack.c.bf16 %v358_v48, %v351_v47  ;;  %v428_v61 = vpack.c.bf16 %v246_v50, %v239_v46  ;;  %v422_v0 = vpack.c.bf16 %v233_v55, %v226_v54  ;;  %v338_v4 = vld [vmem:[%s6825_s0 + $0x718] sm:$0xff]  ;;  %v221_v7 = vld [vmem:[%s6825_s0 + $0x370] sm:$0xff]  ;;  %v52_v14 = vld [vmem:[%s6826_s1 + $0x68] sm:$0xff] }
  0x38   :  { %762 = vmatprep.subr.bf16.mxu1 %v450_v1  ;;  %719 = vmatprep.mubr.bf16.mxu1 %v3180_v3  ;;  %v232_v1 = vld [vmem:[%s6825_s0 + $0x3c8] sm:$0xff]  ;;  %v214_v6 = vld [vmem:[%s6825_s0 + $0x338] sm:$0xff]  ;;  %v345_v8 = vld [vmem:[%s6825_s0 + $0x750] sm:$0xff] }
  0x39   :  { %v478_v10 = vpack.c.bf16 %v345_v8, %v338_v4  ;;  %v337_v11 = vld [vmem:[%s6825_s0 + $0x710] sm:$0xff]  ;;  %v55_v15 = vld [vmem:[%s6826_s1 + $0x80] sm:$0xff]  ;;  %v220_v19 = vld [vmem:[%s6825_s0 + $0x368] sm:$0xff] }
  0x3a   :  { %541 = vmatpush2.bf16.msra.mxu0 %v433_v9  ;;  %v48_v9 = vld [vmem:[%s6826_s1 + $0x48] sm:$0xff]  ;;  %v213_v18 = vld [vmem:[%s6825_s0 + $0x330] sm:$0xff]  ;;  %v207_v22 = vld [vmem:[%s6825_s0 + $0x300] sm:$0xff] }
  0x3b   :  { %763 = vmatpush2.bf16.msra.mxu1 %v449_v12  ;;  %542 = vmatprep.subr.bf16.mxu0 %v427_v13  ;;  %v344_v12 = vld [vmem:[%s6825_s0 + $0x748] sm:$0xff]  ;;  %v421_v13 = vpack.c.bf16 %v232_v1, %v225_v62  ;;  %v3781_v20 = vpack.c.bf16 %v48_v9, %v45_v2  ;;  %v199_v28 = vld [vmem:[%s6825_s0 + $0x2c0] sm:$0xff]  ;;  %v206_v29 = vld [vmem:[%s6825_s0 + $0x2f8] sm:$0xff] }
  0x3c   :  { %764 = vmatprep.subr.bf16.mxu1 %v443_v17  ;;  %v477_v16 = vpack.c.bf16 %v344_v12, %v337_v11  ;;  %v417_v17 = vpack.c.bf16 %v221_v7, %v214_v6  ;;  %v200_v21 = vld [vmem:[%s6825_s0 + $0x2c8] sm:$0xff]  ;;  %v186_v30 = vld [vmem:[%s6825_s0 + $0x258] sm:$0xff]  ;;  %v51_v33 = vld [vmem:[%s6826_s1 + $0x60] sm:$0xff]  ;;  %v409_v36 = vpack.c.bf16 %v206_v29, %v199_v28 }
  0x3d   :  { %v54_v35 = vld [vmem:[%s6826_s1 + $0x78] sm:$0xff]  ;;  %v61_v38 = vld [vmem:[%s6826_s1 + $0xb0] sm:$0xff]  ;;  %v192_v41 = vld [vmem:[%s6825_s0 + $0x288] sm:$0xff] }
  0x3e   :  { %3020 = vmatmul.mubr.msk.bf16.gmra.mxu1 %vm489_vm0, %v3663_v23  ;;  %543 = vmatpush2.bf16.msra.mxu0 %v426_v24  ;;  %v3789_v24 = vpack.c.bf16 %v55_v15, %v52_v14  ;;  %v58_v37 = vld [vmem:[%s6826_s1 + $0x98] sm:$0xff]  ;;  %v3825_v42 = vpack.c.bf16 %v54_v35, %v51_v33  ;;  %v172_v43 = vld [vmem:[%s6825_s0 + $0x1e8] sm:$0xff]  ;;  %v171_v48 = vld [vmem:[%s6825_s0 + $0x1e0] sm:$0xff] }
  0x3f   :  { %765 = vmatpush2.bf16.msra.mxu1 %v442_v26  ;;  %544 = vmatprep.subr.bf16.mxu0 %v420_v27  ;;  %v416_v26 = vpack.c.bf16 %v220_v19, %v213_v18  ;;  %v410_v27 = vpack.c.bf16 %v207_v22, %v200_v21  ;;  %v158_v50 = vld [vmem:[%s6825_s0 + $0x178] sm:$0xff]  ;;  %v165_v51 = vld [vmem:[%s6825_s0 + $0x1b0] sm:$0xff]  ;;  %v67_v1 = vld [vmem:[%s6826_s1 + $0xe0] sm:$0xff] }
  0x40   :  { %766 = vmatprep.subr.bf16.mxu1 %v436_v31  ;;  %729 = vmatprep.mubr.bf16.mxu1 %v3180_v3  ;;  %v193_v31 = vld [vmem:[%s6825_s0 + $0x290] sm:$0xff]  ;;  %v354_v52 = vld [vmem:[%s6825_s0 + $0x798] sm:$0xff]  ;;  %v389_v2 = vpack.c.bf16 %v165_v51, %v158_v50  ;;  %v164_v6 = vld [vmem:[%s6825_s0 + $0x1a8] sm:$0xff] }
  0x41   :  { %v403_v39 = vpack.c.bf16 %v193_v31, %v186_v30  ;;  %v361_v54 = vld [vmem:[%s6825_s0 + $0x7d0] sm:$0xff]  ;;  %v144_v8 = vld [vmem:[%s6825_s0 + $0x108] sm:$0xff]  ;;  %v151_v9 = vld [vmem:[%s6825_s0 + $0x140] sm:$0xff] }
  0x42   :  { %545 = vmatpush2.bf16.msra.mxu0 %v419_v40  ;;  %v185_v40 = vld [vmem:[%s6825_s0 + $0x250] sm:$0xff]  ;;  %v382_v12 = vpack.c.bf16 %v151_v9, %v144_v8  ;;  %v150_v14 = vld [vmem:[%s6825_s0 + $0x138] sm:$0xff]  ;;  %v136_v28 = vld [vmem:[%s6825_s0 + $0xc8] sm:$0xff] }
  0x43   :  { %767 = vmatpush2.bf16.msra.mxu1 %v435_v44  ;;  %865 = vmatprep.subr.bf16.mxu0 %v485_v45  ;;  %v179_v44 = vld [vmem:[%s6825_s0 + $0x220] sm:$0xff]  ;;  %v3833_v45 = vpack.c.bf16 %v61_v38, %v58_v37  ;;  %v402_v46 = vpack.c.bf16 %v192_v41, %v185_v40  ;;  %v57_v55 = vld [vmem:[%s6826_s1 + $0x90] sm:$0xff]  ;;  %v130_v15 = vld [vmem:[%s6825_s0 + $0x98] sm:$0xff] }
  0x44   :  { %768 = vmatprep.subr.bf16.mxu1 %v429_v49  ;;  %v396_v47 = vpack.c.bf16 %v179_v44, %v172_v43  ;;  %v178_v49 = vld [vmem:[%s6825_s0 + $0x218] sm:$0xff]  ;;  %v157_v4 = vld [vmem:[%s6825_s0 + $0x170] sm:$0xff]  ;;  %v116_v30 = vld [vmem:[%s6825_s0 + $0x28] sm:$0xff] }
  0x45   :  { %547 = vmatmul.mubr.bf16.vlgmr.msra.gmra.mxu0 %v3722_v53  ;;  %v395_v62 = vpack.c.bf16 %v178_v49, %v171_v48  ;;  %v388_v11 = vpack.c.bf16 %v164_v6, %v157_v4  ;;  %v66_v18 = vld [vmem:[%s6826_s1 + $0xd8] sm:$0xff]  ;;  %v73_v22 = vld [vmem:[%s6826_s1 + $0x110] sm:$0xff]  ;;  %v123_v31 = vld [vmem:[%s6825_s0 + $0x60] sm:$0xff] }
  0x46   :  { %3021 = vmatmul.mubr.msk.bf16.gmra.mxu1 %vm489_vm0, %v3730_v57  ;;  %866 = vmatpush1.bf16.msra.mxu0 %v484_v59  ;;  %v60_v59 = vld [vmem:[%s6826_s1 + $0xa8] sm:$0xff]  ;;  %v70_v21 = vld [vmem:[%s6826_s1 + $0xf8] sm:$0xff]  ;;  %v115_v37 = vld [vmem:[%s6825_s0 + $0x20] sm:$0xff] }
  0x47   :  { %769 = vmatpush2.bf16.msra.mxu1 %v428_v61  ;;  %556 = vmatprep.mubr.bf16.mxu0 %v3735_v63  ;;  %v487_v61 = vpack.c.bf16 %v361_v54, %v354_v52  ;;  %v3875_v7 = vpack.c.bf16 %v60_v59, %v57_v55  ;;  %v3927_v33 = vpack.c.bf16 %v73_v22, %v70_v21  ;;  %v122_v38 = vld [vmem:[%s6825_s0 + $0x58] sm:$0xff]  ;;  %v333_v40 = vld [vmem:[%s6825_s0 + $0x6f0] sm:$0xff]  ;;  %v72_v43 = vld [vmem:[%s6826_s1 + $0x108] sm:$0xff] }
  0x48   :  { %770 = vmatprep.subr.bf16.mxu1 %v422_v0  ;;  %772 = vmatprep.mubr.bf16.mxu1 %v3603_v58  ;;  %v64_v0 = vld [vmem:[%s6826_s1 + $0xc8] sm:$0xff]  ;;  %v69_v41 = vld [vmem:[%s6826_s1 + $0xf0] sm:$0xff]  ;;  %v367_v44 = vpack.c.bf16 %v122_v38, %v115_v37  ;;  %v319_v54 = vld [vmem:[%s6825_s0 + $0x680] sm:$0xff] }
  0x49   :  { %867 = vmatprep.subr.bf16.mxu0 %v478_v10  ;;  %v3883_v10 = vpack.c.bf16 %v67_v1, %v64_v0  ;;  %v325_v49 = vld [vmem:[%s6825_s0 + $0x6b0] sm:$0xff]  ;;  %v332_v50 = vld [vmem:[%s6825_s0 + $0x6e8] sm:$0xff]  ;;  %v3963_v51 = vpack.c.bf16 %v72_v43, %v69_v41  ;;  %v318_v0 = vld [vmem:[%s6825_s0 + $0x678] sm:$0xff] }
  0x4a   :  { %868 = vmatpush1.bf16.msra.mxu0 %v477_v16  ;;  %v137_v16 = vld [vmem:[%s6825_s0 + $0xd0] sm:$0xff]  ;;  %v312_v52 = vld [vmem:[%s6825_s0 + $0x648] sm:$0xff]  ;;  %v472_v59 = vpack.c.bf16 %v332_v50, %v325_v49  ;;  %v298_v1 = vld [vmem:[%s6825_s0 + $0x5d8] sm:$0xff] }
  0x4b   :  { %771 = vmatpush2.bf16.msra.mxu1 %v421_v13  ;;  %1091 = vmatprep.subr.bf16.mxu0 %v487_v61  ;;  %v143_v13 = vld [vmem:[%s6825_s0 + $0x100] sm:$0xff]  ;;  %v466_v61 = vpack.c.bf16 %v319_v54, %v312_v52  ;;  %v78_v6 = vld [vmem:[%s6826_s1 + $0x138] sm:$0xff]  ;;  %v269_v37 = vld [vmem:[%s6825_s0 + $0x4f0] sm:$0xff] }
  0x4c   :  { %966 = vmatprep.subr.bf16.mxu1 %v417_v17  ;;  %v63_v17 = vld [vmem:[%s6826_s1 + $0xc0] sm:$0xff]  ;;  %v381_v19 = vpack.c.bf16 %v150_v14, %v143_v13  ;;  %v82_v9 = vld [vmem:[%s6826_s1 + $0x158] sm:$0xff]  ;;  %v297_v13 = vld [vmem:[%s6825_s0 + $0x5d0] sm:$0xff] }
  0x4d   :  { %557 = vmatmul.mubr.bf16.gmra.mxu0 %v3781_v20  ;;  %v3919_v29 = vpack.c.bf16 %v66_v18, %v63_v17  ;;  %v75_v4 = vld [vmem:[%s6826_s1 + $0x120] sm:$0xff]  ;;  %v304_v14 = vld [vmem:[%s6825_s0 + $0x608] sm:$0xff]  ;;  %v249_v49 = vld [vmem:[%s6825_s0 + $0x450] sm:$0xff] }
  0x4e   :  { %773 = vmatmul.mubr.bf16.vlgmr.msra.gmra.mxu1 %v3722_v53  ;;  %566 = vmatprep.mubr.bf16.mxu0 %v3789_v24  ;;  %v291_v17 = vld [vmem:[%s6825_s0 + $0x5a0] sm:$0xff]  ;;  %v276_v38 = vld [vmem:[%s6825_s0 + $0x528] sm:$0xff]  ;;  %v353_v52 = vld [vmem:[%s6825_s0 + $0x790] sm:$0xff] }
  0x4f   :  { %967 = vmatpush1.bf16.msra.mxu1 %v416_v26  ;;  %782 = vmatprep.mubr.bf16.mxu1 %v3735_v63  ;;  %v375_v26 = vpack.c.bf16 %v137_v16, %v130_v15  ;;  %v4007_v15 = vpack.c.bf16 %v78_v6, %v75_v4  ;;  %v284_v16 = vld [vmem:[%s6825_s0 + $0x568] sm:$0xff]  ;;  %v283_v22 = vld [vmem:[%s6825_s0 + $0x560] sm:$0xff]  ;;  %v444_v43 = vpack.c.bf16 %v276_v38, %v269_v37 }
  0x50   :  { %968 = vmatprep.subr.bf16.mxu1 %v410_v27  ;;  %v129_v27 = vld [vmem:[%s6825_s0 + $0x90] sm:$0xff]  ;;  %v452_v21 = vpack.c.bf16 %v291_v17, %v284_v16  ;;  %v263_v41 = vld [vmem:[%s6825_s0 + $0x4c0] sm:$0xff]  ;;  %v360_v54 = vld [vmem:[%s6825_s0 + $0x7c8] sm:$0xff] }
  0x51   :  { %v374_v35 = vpack.c.bf16 %v136_v28, %v129_v27  ;;  %v270_v27 = vld [vmem:[%s6825_s0 + $0x4f8] sm:$0xff]  ;;  %v277_v28 = vld [vmem:[%s6825_s0 + $0x530] sm:$0xff]  ;;  %v340_v4 = vld [vmem:[%s6825_s0 + $0x728] sm:$0xff] }
  0x52   :  { %v347_v6 = vld [vmem:[%s6825_s0 + $0x760] sm:$0xff]  ;;  %v362_v17 = vld [vmem:[%s6825_s0 + $0x7d8] sm:$0xff]  ;;  %v320_v37 = vld [vmem:[%s6825_s0 + $0x688] sm:$0xff] }
  0x53   :  { %969 = vmatpush1.bf16.msra.mxu1 %v409_v36  ;;  %v368_v36 = vpack.c.bf16 %v123_v31, %v116_v30  ;;  %v81_v30 = vld [vmem:[%s6826_s1 + $0x150] sm:$0xff]  ;;  %v84_v31 = vld [vmem:[%s6826_s1 + $0x168] sm:$0xff]  ;;  %v355_v16 = vld [vmem:[%s6825_s0 + $0x7a0] sm:$0xff] }
  0x54   :  { %970 = vmatprep.subr.bf16.mxu1 %v403_v39  ;;  %v326_v39 = vld [vmem:[%s6825_s0 + $0x6b8] sm:$0xff] }
  0x55   :  { %567 = vmatmul.mubr.bf16.gmra.mxu0 %v3825_v42  ;;  %v473_v48 = vpack.c.bf16 %v333_v40, %v326_v39  ;;  %v4045_v39 = vpack.c.bf16 %v84_v31, %v81_v30  ;;  %v256_v40 = vld [vmem:[%s6825_s0 + $0x488] sm:$0xff]  ;;  %v215_v31 = vld [vmem:[%s6825_s0 + $0x340] sm:$0xff] }
  0x56   :  { %783 = vmatmul.mubr.bf16.gmra.mxu1 %v3781_v20  ;;  %576 = vmatprep.mubr.bf16.mxu0 %v3833_v45 }
  0x57   :  { %971 = vmatpush1.bf16.msra.mxu1 %v402_v46  ;;  %792 = vmatprep.mubr.bf16.mxu1 %v3789_v24  ;;  %v76_v46 = vld [vmem:[%s6826_s1 + $0x128] sm:$0xff] }
  0x58   :  { %972 = vmatprep.subr.bf16.mxu1 %v396_v47  ;;  %v79_v47 = vld [vmem:[%s6826_s1 + $0x140] sm:$0xff] }
  0x59   :  { %v3971_v55 = vpack.c.bf16 %v79_v47, %v76_v46  ;;  %v255_v46 = vld [vmem:[%s6825_s0 + $0x480] sm:$0xff]  ;;  %v262_v47 = vld [vmem:[%s6825_s0 + $0x4b8] sm:$0xff] }
  0x5a   :  { %v437_v50 = vpack.c.bf16 %v262_v47, %v255_v46  ;;  %v306_v46 = vld [vmem:[%s6825_s0 + $0x618] sm:$0xff] }
  0x5b   :  { %973 = vmatpush1.bf16.msra.mxu1 %v395_v62  ;;  %v311_v62 = vld [vmem:[%s6825_s0 + $0x640] sm:$0xff] }
  0x5c   :  { %974 = vmatprep.subr.bf16.mxu1 %v389_v2  ;;  %v305_v2 = vld [vmem:[%s6825_s0 + $0x610] sm:$0xff]  ;;  %v465_v8 = vpack.c.bf16 %v318_v0, %v311_v62  ;;  %v248_v62 = vld [vmem:[%s6825_s0 + $0x448] sm:$0xff] }
  0x5d   :  { %577 = vmatmul.mubr.bf16.gmra.mxu0 %v3875_v7  ;;  %v228_v0 = vld [vmem:[%s6825_s0 + $0x3a8] sm:$0xff] }
  0x5e   :  { %793 = vmatmul.mubr.bf16.gmra.mxu1 %v3825_v42  ;;  %586 = vmatprep.mubr.bf16.mxu0 %v3883_v10 }
  0x5f   :  { %975 = vmatpush1.bf16.msra.mxu1 %v388_v11  ;;  %802 = vmatprep.mubr.bf16.mxu1 %v3833_v45  ;;  %v85_v11 = vld [vmem:[%s6826_s1 + $0x170] sm:$0xff] }
  0x60   :  { %976 = vmatprep.subr.bf16.mxu1 %v382_v12  ;;  %v459_v12 = vpack.c.bf16 %v305_v2, %v298_v1  ;;  %v4015_v18 = vpack.c.bf16 %v85_v11, %v82_v9  ;;  %v235_v1 = vld [vmem:[%s6825_s0 + $0x3e0] sm:$0xff]  ;;  %v486_v2 = vpack.c.bf16 %v360_v54, %v353_v52  ;;  %v285_v52 = vld [vmem:[%s6825_s0 + $0x570] sm:$0xff]  ;;  %v292_v54 = vld [vmem:[%s6825_s0 + $0x5a8] sm:$0xff] }
  0x61   :  { %v227_v9 = vld [vmem:[%s6825_s0 + $0x3a0] sm:$0xff] }
  0x62   :  { %v339_v11 = vld [vmem:[%s6825_s0 + $0x720] sm:$0xff] }
  0x63   :  { %977 = vmatpush1.bf16.msra.mxu1 %v381_v19  ;;  %v458_v19 = vpack.c.bf16 %v304_v14, %v297_v13  ;;  %v424_v13 = vpack.c.bf16 %v235_v1, %v228_v0  ;;  %v234_v14 = vld [vmem:[%s6825_s0 + $0x3d8] sm:$0xff]  ;;  %v180_v0 = vld [vmem:[%s6825_s0 + $0x228] sm:$0xff]  ;;  %v271_v1 = vld [vmem:[%s6825_s0 + $0x500] sm:$0xff] }
  0x64   :  { %978 = vmatprep.subr.bf16.mxu1 %v375_v26  ;;  %v290_v26 = vld [vmem:[%s6825_s0 + $0x598] sm:$0xff] }
  0x65   :  { %587 = vmatmul.mubr.bf16.gmra.mxu0 %v3919_v29 }
  0x66   :  { %803 = vmatmul.mubr.bf16.gmra.mxu1 %v3875_v7  ;;  %596 = vmatprep.mubr.bf16.mxu0 %v3927_v33 }
  0x67   :  { %979 = vmatpush1.bf16.msra.mxu1 %v374_v35  ;;  %812 = vmatprep.mubr.bf16.mxu1 %v3883_v10  ;;  %v451_v35 = vpack.c.bf16 %v290_v26, %v283_v22  ;;  %v480_v22 = vpack.c.bf16 %v347_v6, %v340_v4 }
  0x68   :  { %980 = vmatprep.subr.bf16.mxu1 %v368_v36  ;;  %v445_v36 = vpack.c.bf16 %v277_v28, %v270_v27  ;;  %v423_v27 = vpack.c.bf16 %v234_v14, %v227_v9  ;;  %v4121_v28 = vpack.c.bf16 %v362_v17, %v355_v16  ;;  %v166_v9 = vld [vmem:[%s6825_s0 + $0x1b8] sm:$0xff]  ;;  %v145_v16 = vld [vmem:[%s6825_s0 + $0x110] sm:$0xff]  ;;  %v152_v17 = vld [vmem:[%s6825_s0 + $0x148] sm:$0xff] }
  0x6b   :  { %981 = vmatpush1.bf16.msra.mxu1 %v367_v44  ;;  %v438_v44 = vpack.c.bf16 %v263_v41, %v256_v40  ;;  %v201_v41 = vld [vmem:[%s6825_s0 + $0x2d0] sm:$0xff] }
  0x6c   :  { %982 = vmatprep.subr.bf16.mxu1 %v473_v48  ;;  %v242_v48 = vld [vmem:[%s6825_s0 + $0x418] sm:$0xff] }
  0x6d   :  { %597 = vmatmul.mubr.bf16.gmra.mxu0 %v3963_v51 }
  0x6e   :  { %813 = vmatmul.mubr.bf16.gmra.mxu1 %v3919_v29  ;;  %606 = vmatprep.mubr.bf16.mxu0 %v3971_v55 }
  0x6f   :  { %983 = vmatpush2.bf16.msra.mxu1 %v472_v59  ;;  %822 = vmatprep.mubr.bf16.mxu1 %v3927_v33  ;;  %v431_v59 = vpack.c.bf16 %v249_v49, %v242_v48  ;;  %v187_v49 = vld [vmem:[%s6825_s0 + $0x260] sm:$0xff] }
  0x70   :  { %984 = vmatprep.subr.bf16.mxu1 %v466_v61  ;;  %v241_v61 = vld [vmem:[%s6825_s0 + $0x410] sm:$0xff] }
  0x73   :  { %985 = vmatpush2.bf16.msra.mxu1 %v465_v8  ;;  %v430_v8 = vpack.c.bf16 %v248_v62, %v241_v61  ;;  %v453_v61 = vpack.c.bf16 %v292_v54, %v285_v52  ;;  %v173_v62 = vld [vmem:[%s6825_s0 + $0x1f0] sm:$0xff] }
  0x74   :  { %986 = vmatprep.subr.bf16.mxu1 %v459_v12  ;;  %v346_v12 = vld [vmem:[%s6825_s0 + $0x758] sm:$0xff]  ;;  %v397_v4 = vpack.c.bf16 %v180_v0, %v173_v62 }
  0x75   :  { %607 = vmatmul.mubr.bf16.gmra.mxu0 %v4007_v15  ;;  %v479_v26 = vpack.c.bf16 %v346_v12, %v339_v11  ;;  %v257_v11 = vld [vmem:[%s6825_s0 + $0x490] sm:$0xff]  ;;  %v264_v12 = vld [vmem:[%s6825_s0 + $0x4c8] sm:$0xff] }
  0x76   :  { %823 = vmatmul.mubr.bf16.gmra.mxu1 %v3963_v51  ;;  %616 = vmatprep.mubr.bf16.mxu0 %v4015_v18  ;;  %v439_v14 = vpack.c.bf16 %v264_v12, %v257_v11 }
  0x77   :  { %987 = vmatpush2.bf16.msra.mxu1 %v458_v19  ;;  %832 = vmatprep.mubr.bf16.mxu1 %v3971_v55  ;;  %v327_v19 = vld [vmem:[%s6825_s0 + $0x6c0] sm:$0xff] }
  0x78   :  { %988 = vmatprep.subr.bf16.mxu1 %v452_v21  ;;  %v334_v21 = vld [vmem:[%s6825_s0 + $0x6f8] sm:$0xff] }
  0x79   :  { %v474_v30 = vpack.c.bf16 %v334_v21, %v327_v19  ;;  %v243_v19 = vld [vmem:[%s6825_s0 + $0x420] sm:$0xff]  ;;  %v250_v21 = vld [vmem:[%s6825_s0 + $0x458] sm:$0xff] }
  0x7b   :  { %989 = vmatpush2.bf16.msra.mxu1 %v451_v35  ;;  %v222_v35 = vld [vmem:[%s6825_s0 + $0x378] sm:$0xff] }
  0x7c   :  { %990 = vmatprep.subr.bf16.mxu1 %v445_v36  ;;  %v313_v36 = vld [vmem:[%s6825_s0 + $0x650] sm:$0xff]  ;;  %v418_v38 = vpack.c.bf16 %v222_v35, %v215_v31  ;;  %v236_v35 = vld [vmem:[%s6825_s0 + $0x3e8] sm:$0xff] }
  0x7d   :  { %617 = vmatmul.mubr.bf16.gmra.mxu0 %v4045_v39  ;;  %v467_v40 = vpack.c.bf16 %v320_v37, %v313_v36  ;;  %v229_v31 = vld [vmem:[%s6825_s0 + $0x3b0] sm:$0xff] }
  0x7e   :  { %833 = vmatmul.mubr.bf16.gmra.mxu1 %v4007_v15  ;;  %885 = vmatprep.mubr.bf16.mxu0 %v3180_v3  ;;  %v425_v37 = vpack.c.bf16 %v236_v35, %v229_v31 }
  0x7f   :  { %991 = vmatpush2.bf16.msra.mxu1 %v444_v43  ;;  %842 = vmatprep.mubr.bf16.mxu1 %v4015_v18  ;;  %v208_v43 = vld [vmem:[%s6825_s0 + $0x308] sm:$0xff] }
  0x80   :  { %992 = vmatprep.subr.bf16.mxu1 %v438_v44  ;;  %v299_v44 = vld [vmem:[%s6825_s0 + $0x5e0] sm:$0xff]  ;;  %v411_v47 = vpack.c.bf16 %v208_v43, %v201_v41  ;;  %v341_v43 = vld [vmem:[%s6825_s0 + $0x730] sm:$0xff] }
  0x81   :  { %v460_v48 = vpack.c.bf16 %v306_v46, %v299_v44  ;;  %v348_v44 = vld [vmem:[%s6825_s0 + $0x768] sm:$0xff] }
  0x82   :  { %v481_v46 = vpack.c.bf16 %v348_v44, %v341_v43 }
  0x83   :  { %993 = vmatpush2.bf16.msra.mxu1 %v437_v50  ;;  %v194_v50 = vld [vmem:[%s6825_s0 + $0x298] sm:$0xff] }
  0x84   :  { %994 = vmatprep.subr.bf16.mxu1 %v431_v59  ;;  %v404_v59 = vpack.c.bf16 %v194_v50, %v187_v49 }
  0x85   :  { %3022 = vmatmul.mubr.msk.bf16.vlgmr.msra.gmra.mxu0 %vm489_vm0, %v3282_v34 }
  0x86   :  { %843 = vmatmul.mubr.bf16.gmra.mxu1 %v4045_v39  ;;  %1092 = vmatpush1.bf16.msra.mxu0 %v486_v2  ;;  %v278_v2 = vld [vmem:[%s6825_s0 + $0x538] sm:$0xff] }
  0x87   :  { %995 = vmatpush2.bf16.msra.mxu1 %v430_v8  ;;  %895 = vmatprep.mubr.bf16.mxu0 %v3180_v3  ;;  %v446_v6 = vpack.c.bf16 %v278_v2, %v271_v1  ;;  %v159_v8 = vld [vmem:[%s6825_s0 + $0x180] sm:$0xff] }
  0x88   :  { %996 = vmatprep.subr.bf16.mxu1 %v424_v13  ;;  %998 = vmatprep.mubr.bf16.mxu1 %v3603_v58  ;;  %v390_v13 = vpack.c.bf16 %v166_v9, %v159_v8 }
  0x89   :  { %1093 = vmatprep.subr.bf16.mxu0 %v480_v22  ;;  %v383_v22 = vpack.c.bf16 %v152_v17, %v145_v16 }
  0x8a   :  { %1094 = vmatpush1.bf16.msra.mxu0 %v479_v26  ;;  %v432_v26 = vpack.c.bf16 %v250_v21, %v243_v19 }
  0x8b   :  { %997 = vmatpush2.bf16.msra.mxu1 %v423_v27  ;;  %3120 = vmatprep.subr.bf16.mxu0 %v4121_v28  ;;  %v131_v27 = vld [vmem:[%s6825_s0 + $0xa0] sm:$0xff] }
  0x8c   :  { %3046 = vmatprep.subr.bf16.mxu1 %v474_v30  ;;  %v138_v30 = vld [vmem:[%s6825_s0 + $0xd8] sm:$0xff] }
  0x8d   :  { %3023 = vmatmul.mubr.msk.bf16.gmra.mxu0 %vm489_vm0, %v3359_v5  ;;  %v376_v36 = vpack.c.bf16 %v138_v30, %v131_v27 }
  0x8e   :  { %999 = vmatmul.mubr.bf16.vlgmr.msra.gmra.mxu1 %v3722_v53  ;;  %905 = vmatprep.mubr.bf16.mxu0 %v3180_v3 }
  0x8f   :  { %1008 = vmatprep.mubr.bf16.mxu1 %v3735_v63  ;;  %3047 = vmatpush3.bf16.msra.mxu1 %v418_v38  ;;  %v117_v38 = vld [vmem:[%s6825_s0 + $0x30] sm:$0xff] }
  0x90   :  { %3048 = vmatprep.subr.bf16.mxu1 %v467_v40  ;;  %v124_v40 = vld [vmem:[%s6825_s0 + $0x68] sm:$0xff] }
  0x91   :  { %v369_v41 = vpack.c.bf16 %v124_v40, %v117_v38 }
  0x93   :  { %3049 = vmatpush3.bf16.msra.mxu1 %v411_v47 }
  0x94   :  { %3050 = vmatprep.subr.bf16.mxu1 %v460_v48 }
  0x95   :  { %3024 = vmatmul.mubr.msk.bf16.gmra.mxu0 %vm489_vm0, %v3418_v32 }
  0x96   :  { %1009 = vmatmul.mubr.bf16.gmra.mxu1 %v3781_v20  ;;  %915 = vmatprep.mubr.bf16.mxu0 %v3180_v3 }
  0x97   :  { %1018 = vmatprep.mubr.bf16.mxu1 %v3789_v24  ;;  %3051 = vmatpush3.bf16.msra.mxu1 %v404_v59 }
  0x98   :  { %3052 = vmatprep.subr.bf16.mxu1 %v453_v61 }
  0x9b   :  { %3053 = vmatpush3.bf16.msra.mxu1 %v397_v4 }
  0x9c   :  { %3054 = vmatprep.subr.bf16.mxu1 %v446_v6 }
  0x9d   :  { %3025 = vmatmul.mubr.msk.bf16.gmra.mxu0 %vm489_vm0, %v3477_v60 }
  0x9e   :  { %1019 = vmatmul.mubr.bf16.gmra.mxu1 %v3825_v42  ;;  %925 = vmatprep.mubr.bf16.mxu0 %v3180_v3 }
  0x9f   :  { %1028 = vmatprep.mubr.bf16.mxu1 %v3833_v45  ;;  %3055 = vmatpush3.bf16.msra.mxu1 %v390_v13 }
  0xa0   :  { %3056 = vmatprep.subr.bf16.mxu1 %v439_v14 }
  0xa3   :  { %3057 = vmatpush3.bf16.msra.mxu1 %v383_v22 }
  0xa4   :  { %3058 = vmatprep.subr.bf16.mxu1 %v432_v26 }
  0xa5   :  { %3026 = vmatmul.mubr.msk.bf16.gmra.mxu0 %vm489_vm0, %v3536_v25 }
  0xa6   :  { %1029 = vmatmul.mubr.bf16.gmra.mxu1 %v3875_v7  ;;  %935 = vmatprep.mubr.bf16.mxu0 %v3180_v3 }
  0xa7   :  { %1038 = vmatprep.mubr.bf16.mxu1 %v3883_v10  ;;  %3059 = vmatpush3.bf16.msra.mxu1 %v376_v36 }
  0xa8   :  { %3060 = vmatprep.subr.bf16.mxu1 %v425_v37 }
  0xab   :  { %3061 = vmatpush3.bf16.msra.mxu1 %v369_v41 }
  0xac   :  { %3140 = vmatprep.subr.bf16.mxu1 %v4121_v28 }
  0xad   :  { %3027 = vmatmul.mubr.msk.bf16.gmra.mxu0 %vm489_vm0, %v3601_v56 }
  0xae   :  { %1039 = vmatmul.mubr.bf16.gmra.mxu1 %v3919_v29  ;;  %945 = vmatprep.mubr.bf16.mxu0 %v3180_v3 }
  0xaf   :  { %1048 = vmatprep.mubr.bf16.mxu1 %v3927_v33 }
  0xb5   :  { %3028 = vmatmul.mubr.msk.bf16.gmra.mxu0 %vm489_vm0, %v3663_v23 }
  0xb6   :  { %1049 = vmatmul.mubr.bf16.gmra.mxu1 %v3963_v51  ;;  %955 = vmatprep.mubr.bf16.mxu0 %v3180_v3 }
  0xb7   :  { %1058 = vmatprep.mubr.bf16.mxu1 %v3971_v55 }
  0xbd   :  { %3029 = vmatmul.mubr.msk.bf16.gmra.mxu0 %vm489_vm0, %v3730_v57 }
  0xbe   :  { %1059 = vmatmul.mubr.bf16.gmra.mxu1 %v4007_v15  ;;  %1111 = vmatprep.mubr.bf16.mxu0 %v3180_v3 }
  0xbf   :  { %1068 = vmatprep.mubr.bf16.mxu1 %v4015_v18 }
  0xc5   :  { %3030 = vmatmul.mubr.msk.bf16.vlgmr.msra.gmra.mxu0 %vm489_vm0, %v3282_v34 }
  0xc6   :  { %1069 = vmatmul.mubr.bf16.gmra.mxu1 %v4045_v39  ;;  %3121 = vmatpush3.bf16.msra.mxu0 %v4121_v28 }
  0xc7   :  { %1121 = vmatprep.mubr.bf16.mxu0 %v3180_v3  ;;  %1224 = vmatprep.mubr.bf16.mxu1 %v3603_v58 }
  0xc8   :  { %3122 = vmatprep.subr.bf16.mxu0 %v481_v46 }
  0xca   :  { %3123 = vmatpush3.bf16.msra.mxu0 %v481_v46 }
  0xcd   :  { %3031 = vmatmul.mubr.msk.bf16.gmra.mxu0 %vm489_vm0, %v3359_v5 }
  0xce   :  { %v661_v47 = vpop.f32.mrf.mxu1  ;;  %1225 = vmatmul.mubr.bf16.vlgmr.msra.gmra.mxu1 %v3722_v53  ;;  %1131 = vmatprep.mubr.bf16.mxu0 %v3180_v3 }
  0xcf   :  { %1232 = vmatprep.mubr.bf16.mxu1 %v3735_v63  ;;  %3142 = vmatpush3.bf16.msra.mxu1 %v4121_v28 }
  0xd0   :  { %v4269_v48 = vpop.f32.mrf.mxu1  ;;  %3141 = vmatprep.subr.bf16.mxu1 %v481_v46 }
  0xd2   :  { %v4271_v49 = vpop.f32.mrf.mxu1 }
  0xd3   :  { %3143 = vmatpush3.bf16.msra.mxu1 %v481_v46 }
  0xd4   :  { %v4273_v58 = vpop.f32.mrf.mxu1 }
  0xd5   :  { %3032 = vmatmul.mubr.msk.bf16.gmra.mxu0 %vm489_vm0, %v3418_v32 }
  0xd6   :  { %v4277_v50 = vpop.f32.mrf.mxu1  ;;  %1233 = vmatmul.mubr.bf16.gmra.mxu1 %v3781_v20  ;;  %1141 = vmatprep.mubr.bf16.mxu0 %v3180_v3 }
  0xd7   :  { %1240 = vmatprep.mubr.bf16.mxu1 %v3789_v24 }
  0xd8   :  { %v4282_v53 = vpop.f32.mrf.mxu1 }
  0xda   :  { %v4284_v63 = vpop.f32.mrf.mxu1 }
  0xdc   :  { %v4286_v28 = vpop.f32.mrf.mxu1 }
  0xdd   :  { %3033 = vmatmul.mubr.msk.bf16.gmra.mxu0 %vm489_vm0, %v3477_v60 }
  0xde   :  { %v4290_v52 = vpop.f32.mrf.mxu1  ;;  %1241 = vmatmul.mubr.bf16.gmra.mxu1 %v3825_v42  ;;  %1151 = vmatprep.mubr.bf16.mxu0 %v3180_v3 }
  0xdf   :  { %1248 = vmatprep.mubr.bf16.mxu1 %v3833_v45 }
  0xe0   :  { %v4295_v20 = vpop.f32.mrf.mxu1 }
  0xe2   :  { %v4297_v24 = vpop.f32.mrf.mxu1 }
  0xe4   :  { %v4299_v54 = vpop.f32.mrf.mxu1 }
  0xe5   :  { %3034 = vmatmul.mubr.msk.bf16.gmra.mxu0 %vm489_vm0, %v3536_v25 }
  0xe6   :  { %v4303_v59 = vpop.f32.mrf.mxu1  ;;  %1249 = vmatmul.mubr.bf16.gmra.mxu1 %v3875_v7  ;;  %1161 = vmatprep.mubr.bf16.mxu0 %v3180_v3 }
  0xe7   :  { %1256 = vmatprep.mubr.bf16.mxu1 %v3883_v10 }
  0xe8   :  { %v4308_v42 = vpop.f32.mrf.mxu1 }
  0xea   :  { %v4310_v45 = vpop.f32.mrf.mxu1 }
  0xec   :  { %v4312_v61 = vpop.f32.mrf.mxu1 }
  0xed   :  { %3035 = vmatmul.mubr.msk.bf16.gmra.mxu0 %vm489_vm0, %v3601_v56 }
  0xee   :  { %v4316_v62 = vpop.f32.mrf.mxu1  ;;  %1257 = vmatmul.mubr.bf16.gmra.mxu1 %v3919_v29  ;;  %1171 = vmatprep.mubr.bf16.mxu0 %v3180_v3 }
  0xef   :  { %1264 = vmatprep.mubr.bf16.mxu1 %v3927_v33 }
  0xf0   :  { %v4321_v7 = vpop.f32.mrf.mxu1 }
  0xf2   :  { %v4323_v10 = vpop.f32.mrf.mxu1 }
  0xf4   :  { %v4325_v0 = vpop.f32.mrf.mxu1 }
  0xf5   :  { %3036 = vmatmul.mubr.msk.bf16.gmra.mxu0 %vm489_vm0, %v3663_v23 }
  0xf6   :  { %v4329_v1 = vpop.f32.mrf.mxu1  ;;  %1265 = vmatmul.mubr.bf16.gmra.mxu1 %v3963_v51  ;;  %1181 = vmatprep.mubr.bf16.mxu0 %v3180_v3 }
  0xf7   :  { %1272 = vmatprep.mubr.bf16.mxu1 %v3971_v55 }
  0xf8   :  { %v4334_v29 = vpop.f32.mrf.mxu1 }
  0xfa   :  { %v4336_v33 = vpop.f32.mrf.mxu1 }
  0xfc   :  { %v4338_v2 = vpop.f32.mrf.mxu1 }
  0xfd   :  { %3037 = vmatmul.mubr.msk.bf16.gmra.mxu0 %vm489_vm0, %v3730_v57 }
  0xfe   :  { %v4342_v4 = vpop.f32.mrf.mxu1  ;;  %1273 = vmatmul.mubr.bf16.gmra.mxu1 %v4007_v15  ;;  %3124 = vmatprep.mubr.msk.bf16.mxu0 %vm489_vm0, %v3282_v34 }
  0xff   :  { %1280 = vmatprep.mubr.bf16.mxu1 %v4015_v18 }
 0x100   :  { %v4348_v3 = vpop.f32.mrf.mxu1 }
 0x102   :  { %v4350_v51 = vpop.f32.mrf.mxu1 }
 0x104   :  { %v4352_v55 = vpop.f32.mrf.mxu1 }
 0x105   :  { %v548_v6 = vpop.f32.mrf.mxu0  ;;  %3125 = vmatmul.mubr.msk.bf16.vlgmr.msra.gmra.mxu0 %vm489_vm0, %v3359_v5 }
 0x106   :  { %v662_v8 = vadd.f32 %v661_v47, %v548_v6  ;;  %v4356_v9 = vpop.f32.mrf.mxu1  ;;  %1281 = vmatmul.mubr.bf16.gmra.mxu1 %v4045_v39  ;;  %3128 = vmatprep.mubr.msk.bf16.mxu0 %vm489_vm0, %v3418_v32 }
 0x107   :  { %v550_v34 = vpop.f32.mrf.mxu0  ;;  %3136 = vmatprep.mubr.msk.bf16.mxu1 %vm489_vm0, %v3663_v23 }
 0x108   :  { %1389 = vst [vmem:[%s6827_s4] sm:$0xff] %v662_v8  ;;  %v664_v15 = vadd.f32 %v4269_v48, %v550_v34  ;;  %v4367_v18 = vpop.f32.mrf.mxu1 }
 0x109   :  { %v552_v5 = vpop.f32.mrf.mxu0 }
 0x10a   :  { %1390 = vst [vmem:[%s6827_s4 + $0x8] sm:$0xff] %v664_v15  ;;  %v4372_v39 = vadd.f32 %v664_v15, %v662_v8  ;;  %v666_v32 = vadd.f32 %v4271_v49, %v552_v5  ;;  %v4375_v11 = vpop.f32.mrf.mxu1 }
 0x10b   :  { %v554_v23 = vpop.f32.mrf.mxu0 }
 0x10c   :  { %1397 = vst [vmem:[%s6827_s4 + $0x38] sm:$0xff] %v666_v32  ;;  %v668_v12 = vadd.f32 %v4273_v58, %v554_v23  ;;  %v4381_v13 = vpop.f32.mrf.mxu1 }
 0x10d   :  { %v558_v14 = vpop.f32.mrf.mxu0  ;;  %3129 = vmatmul.mubr.msk.bf16.gmra.mxu0 %vm489_vm0, %v3477_v60 }
 0x10e   :  { %1398 = vst [vmem:[%s6827_s4 + $0x40] sm:$0xff] %v668_v12  ;;  %v4388_v16 = vadd.f32 %v668_v12, %v666_v32  ;;  %v672_v17 = vadd.f32 %v4277_v50, %v558_v14  ;;  %v4391_v19 = vpop.f32.mrf.mxu1  ;;  %3137 = vmatmul.mubr.msk.bf16.vlgmr.msra.gmra.mxu1 %vm489_vm0, %v3730_v57  ;;  %3132 = vmatprep.mubr.msk.bf16.mxu0 %vm489_vm0, %v3536_v25 }
 0x10f   :  { %v560_v21 = vpop.f32.mrf.mxu0 }
 0x110   :  { %1404 = vst [vmem:[%s6827_s4 + $0x70] sm:$0xff] %v672_v17  ;;  %v674_v60 = vadd.f32 %v4282_v53, %v560_v21  ;;  %v4401_v22 = vpop.f32.mrf.mxu1 }
 0x111   :  { %v562_v26 = vpop.f32.mrf.mxu0 }
 0x112   :  { %1405 = vst [vmem:[%s6827_s4 + $0x78] sm:$0xff] %v674_v60  ;;  %v4406_v27 = vadd.f32 %v674_v60, %v672_v17  ;;  %v676_v57 = vadd.f32 %v4284_v63, %v562_v26  ;;  %v4409_v30 = vpop.f32.mrf.mxu1 }
 0x113   :  { %v564_v25 = vpop.f32.mrf.mxu0 }
 0x114   :  { %1411 = vst [vmem:[%s6827_s4 + $0xa8] sm:$0xff] %v676_v57  ;;  %v678_v31 = vadd.f32 %v4286_v28, %v564_v25  ;;  %v4415_v35 = vpop.f32.mrf.mxu1 }
 0x115   :  { %v568_v36 = vpop.f32.mrf.mxu0  ;;  %3133 = vmatmul.mubr.msk.bf16.gmra.mxu0 %vm489_vm0, %v3601_v56 }
 0x116   :  { %1412 = vst [vmem:[%s6827_s4 + $0xb0] sm:$0xff] %v678_v31  ;;  %v4422_v37 = vadd.f32 %v678_v31, %v676_v57  ;;  %v682_v38 = vadd.f32 %v4290_v52, %v568_v36  ;;  %v4425_v40 = vpop.f32.mrf.mxu1 }
 0x117   :  { %v570_v41 = vpop.f32.mrf.mxu0 }
 0x118   :  { %1418 = vst [vmem:[%s6827_s4 + $0xe0] sm:$0xff] %v682_v38  ;;  %v684_v43 = vadd.f32 %v4295_v20, %v570_v41  ;;  %v4431_v44 = vpop.f32.mrf.mxu1 }
 0x119   :  { %v572_v56 = vpop.f32.mrf.mxu0 }
 0x11a   :  { %1419 = vst [vmem:[%s6827_s4 + $0xe8] sm:$0xff] %v684_v43  ;;  %v4436_v46 = vadd.f32 %v684_v43, %v682_v38  ;;  %v686_v47 = vadd.f32 %v4297_v24, %v572_v56  ;;  %v4439_v48 = vpop.f32.mrf.mxu1 }
 0x11b   :  { %v574_v49 = vpop.f32.mrf.mxu0 }
 0x11c   :  { %1425 = vst [vmem:[%s6827_s4 + $0x118] sm:$0xff] %v686_v47  ;;  %v688_v58 = vadd.f32 %v4299_v54, %v574_v49  ;;  %v4445_v50 = vpop.f32.mrf.mxu1 }
 0x11d   :  { %v578_v53 = vpop.f32.mrf.mxu0 }
 0x11e   :  { %1426 = vst [vmem:[%s6827_s4 + $0x120] sm:$0xff] %v688_v58  ;;  %v4450_v63 = vadd.f32 %v688_v58, %v686_v47  ;;  %v692_v28 = vadd.f32 %v4303_v59, %v578_v53  ;;  %v4453_v52 = vpop.f32.mrf.mxu1 }
 0x11f   :  { %v580_v20 = vpop.f32.mrf.mxu0 }
 0x120   :  { %1432 = vst [vmem:[%s6827_s4 + $0x150] sm:$0xff] %v692_v28  ;;  %v694_v24 = vadd.f32 %v4308_v42, %v580_v20  ;;  %v4459_v54 = vpop.f32.mrf.mxu1 }
 0x121   :  { %v582_v6 = vpop.f32.mrf.mxu0 }
 0x122   :  { %1433 = vst [vmem:[%s6827_s4 + $0x158] sm:$0xff] %v694_v24  ;;  %v4464_v8 = vadd.f32 %v694_v24, %v692_v28  ;;  %v696_v59 = vadd.f32 %v4310_v45, %v582_v6  ;;  %v4467_v34 = vpop.f32.mrf.mxu1 }
 0x123   :  { %v584_v15 = vpop.f32.mrf.mxu0 }
 0x124   :  { %1439 = vst [vmem:[%s6827_s4 + $0x188] sm:$0xff] %v696_v59  ;;  %v698_v42 = vadd.f32 %v4312_v61, %v584_v15  ;;  %v4473_v5 = vpop.f32.mrf.mxu1 }
 0x125   :  { %v588_v32 = vpop.f32.mrf.mxu0 }
 0x126   :  { %1440 = vst [vmem:[%s6827_s4 + $0x190] sm:$0xff] %v698_v42  ;;  %v4478_v23 = vadd.f32 %v698_v42, %v696_v59  ;;  %v702_v45 = vadd.f32 %v4316_v62, %v588_v32  ;;  %v4481_v12 = vpop.f32.mrf.mxu1 }
 0x127   :  { %v590_v14 = vpop.f32.mrf.mxu0 }
 0x128   :  { %1446 = vst [vmem:[%s6827_s4 + $0x1c0] sm:$0xff] %v702_v45  ;;  %v704_v61 = vadd.f32 %v4321_v7, %v590_v14  ;;  %v4487_v17 = vpop.f32.mrf.mxu1 }
 0x129   :  { %v592_v21 = vpop.f32.mrf.mxu0 }
 0x12a   :  { %1447 = vst [vmem:[%s6827_s4 + $0x1c8] sm:$0xff] %v704_v61  ;;  %v4492_v60 = vadd.f32 %v704_v61, %v702_v45  ;;  %v706_v62 = vadd.f32 %v4323_v10, %v592_v21  ;;  %v4495_v26 = vpop.f32.mrf.mxu1 }
 0x12b   :  { %v594_v57 = vpop.f32.mrf.mxu0 }
 0x12c   :  { %1453 = vst [vmem:[%s6827_s4 + $0x1f8] sm:$0xff] %v706_v62  ;;  %v708_v7 = vadd.f32 %v4325_v0, %v594_v57  ;;  %v4501_v25 = vpop.f32.mrf.mxu1 }
 0x12d   :  { %v598_v31 = vpop.f32.mrf.mxu0 }
 0x12e   :  { %1454 = vst [vmem:[%s6827_s4 + $0x200] sm:$0xff] %v708_v7  ;;  %v4506_v36 = vadd.f32 %v708_v7, %v706_v62  ;;  %v712_v10 = vadd.f32 %v4329_v1, %v598_v31  ;;  %v4509_v38 = vpop.f32.mrf.mxu1 }
 0x12f   :  { %v600_v41 = vpop.f32.mrf.mxu0 }
 0x130   :  { %1460 = vst [vmem:[%s6827_s4 + $0x230] sm:$0xff] %v712_v10  ;;  %v714_v0 = vadd.f32 %v4334_v29, %v600_v41  ;;  %v4515_v43 = vpop.f32.mrf.mxu1 }
 0x131   :  { %v602_v56 = vpop.f32.mrf.mxu0 }
 0x132   :  { %1461 = vst [vmem:[%s6827_s4 + $0x238] sm:$0xff] %v714_v0  ;;  %v4520_v47 = vadd.f32 %v714_v0, %v712_v10  ;;  %v716_v1 = vadd.f32 %v4336_v33, %v602_v56  ;;  %v4523_v49 = vpop.f32.mrf.mxu1 }
 0x133   :  { %v604_v58 = vpop.f32.mrf.mxu0 }
 0x134   :  { %1467 = vst [vmem:[%s6827_s4 + $0x268] sm:$0xff] %v716_v1  ;;  %v718_v29 = vadd.f32 %v4338_v2, %v604_v58  ;;  %v4529_v53 = vpop.f32.mrf.mxu1 }
 0x135   :  { %v608_v28 = vpop.f32.mrf.mxu0 }
 0x136   :  { %1468 = vst [vmem:[%s6827_s4 + $0x270] sm:$0xff] %v718_v29  ;;  %v4534_v20 = vadd.f32 %v718_v29, %v716_v1  ;;  %v722_v33 = vadd.f32 %v4342_v4, %v608_v28  ;;  %v4537_v24 = vpop.f32.mrf.mxu1 }
 0x137   :  { %v610_v6 = vpop.f32.mrf.mxu0 }
 0x138   :  { %1474 = vst [vmem:[%s6827_s4 + $0x2a0] sm:$0xff] %v722_v33  ;;  %v724_v2 = vadd.f32 %v4348_v3, %v610_v6  ;;  %v4543_v59 = vpop.f32.mrf.mxu1 }
 0x139   :  { %v612_v15 = vpop.f32.mrf.mxu0 }
 0x13a   :  { %1475 = vst [vmem:[%s6827_s4 + $0x2a8] sm:$0xff] %v724_v2  ;;  %v4548_v42 = vadd.f32 %v724_v2, %v722_v33  ;;  %v726_v4 = vadd.f32 %v4350_v51, %v612_v15  ;;  %v4551_v32 = vpop.f32.mrf.mxu1 }
 0x13b   :  { %v614_v45 = vpop.f32.mrf.mxu0 }
 0x13c   :  { %1481 = vst [vmem:[%s6827_s4 + $0x2d8] sm:$0xff] %v726_v4  ;;  %v728_v3 = vadd.f32 %v4352_v55, %v614_v45  ;;  %v4557_v14 = vpop.f32.mrf.mxu1 }
 0x13d   :  { %v618_v61 = vpop.f32.mrf.mxu0 }
 0x13e   :  { %1482 = vst [vmem:[%s6827_s4 + $0x2e0] sm:$0xff] %v728_v3  ;;  %v4562_v21 = vadd.f32 %v728_v3, %v726_v4  ;;  %v732_v51 = vadd.f32 %v4356_v9, %v618_v61  ;;  %v4565_v62 = vpop.f32.mrf.mxu1 }
 0x13f   :  { %v620_v57 = vpop.f32.mrf.mxu0 }
 0x140   :  { %1488 = vst [vmem:[%s6827_s4 + $0x310] sm:$0xff] %v732_v51  ;;  %v734_v55 = vadd.f32 %v4367_v18, %v620_v57  ;;  %v4571_v7 = vpop.f32.mrf.mxu1 }
 0x141   :  { %v622_v31 = vpop.f32.mrf.mxu0 }
 0x142   :  { %1489 = vst [vmem:[%s6827_s4 + $0x318] sm:$0xff] %v734_v55  ;;  %v4576_v10 = vadd.f32 %v734_v55, %v732_v51  ;;  %v736_v9 = vadd.f32 %v4375_v11, %v622_v31  ;;  %v4579_v41 = vpop.f32.mrf.mxu1 }
 0x143   :  { %v624_v0 = vpop.f32.mrf.mxu0 }
 0x144   :  { %1495 = vst [vmem:[%s6827_s4 + $0x348] sm:$0xff] %v736_v9  ;;  %v738_v18 = vadd.f32 %v4381_v13, %v624_v0  ;;  %v4585_v56 = vpop.f32.mrf.mxu1 }
 0x145   :  { %v887_v1 = vpop.f32.mrf.mxu0 }
 0x146   :  { %1496 = vst [vmem:[%s6827_s4 + $0x350] sm:$0xff] %v738_v18  ;;  %v4590_v58 = vadd.f32 %v738_v18, %v736_v9  ;;  %v4592_v29 = vpop.f32.mrf.mxu1  ;;  %v888_v11 = vadd.f32 %v887_v1, %v4391_v19 }
 0x147   :  { %v889_v28 = vpop.f32.mrf.mxu0 }
 0x148   :  { %1391 = vst [vmem:[%s6827_s4 + $0x10] sm:$0xff] %v888_v11  ;;  %v1519_v13 = vadd.f32 %v4372_v39, %v888_v11  ;;  %v4599_v33 = vpop.f32.mrf.mxu1  ;;  %v890_v6 = vadd.f32 %v889_v28, %v4401_v22 }
 0x149   :  { %v891_v2 = vpop.f32.mrf.mxu0 }
 0x14a   :  { %1392 = vst [vmem:[%s6827_s4 + $0x18] sm:$0xff] %v890_v6  ;;  %v4605_v15 = vadd.f32 %v1519_v13, %v890_v6  ;;  %v4607_v4 = vpop.f32.mrf.mxu1  ;;  %v892_v19 = vadd.f32 %v891_v2, %v4409_v30 }
 0x14b   :  { %v893_v45 = vpop.f32.mrf.mxu0 }
 0x14c   :  { %1399 = vst [vmem:[%s6827_s4 + $0x48] sm:$0xff] %v892_v19  ;;  %v1528_v39 = vadd.f32 %v4388_v16, %v892_v19  ;;  %v4614_v3 = vpop.f32.mrf.mxu1  ;;  %v894_v22 = vadd.f32 %v893_v45, %v4415_v35 }
 0x14d   :  { %v897_v61 = vpop.f32.mrf.mxu0 }
 0x14e   :  { %1400 = vst [vmem:[%s6827_s4 + $0x50] sm:$0xff] %v894_v22  ;;  %v4620_v51 = vadd.f32 %v1528_v39, %v894_v22  ;;  %v898_v30 = vadd.f32 %v897_v61, %v4425_v40  ;;  %v4623_v57 = vpop.f32.mrf.mxu1 }
 0x14f   :  { %v899_v55 = vpop.f32.mrf.mxu0 }
 0x150   :  { %1406 = vst [vmem:[%s6827_s4 + $0x80] sm:$0xff] %v898_v30  ;;  %v1537_v16 = vadd.f32 %v4406_v27, %v898_v30  ;;  %v900_v35 = vadd.f32 %v899_v55, %v4431_v44  ;;  %v4630_v31 = vpop.f32.mrf.mxu1 }
 0x151   :  { %v901_v9 = vpop.f32.mrf.mxu0 }
 0x152   :  { %1407 = vst [vmem:[%s6827_s4 + $0x88] sm:$0xff] %v900_v35  ;;  %v4635_v0 = vadd.f32 %v1537_v16, %v900_v35  ;;  %v902_v40 = vadd.f32 %v901_v9, %v4439_v48  ;;  %v4638_v18 = vpop.f32.mrf.mxu1 }
 0x153   :  { %v903_v1 = vpop.f32.mrf.mxu0 }
 0x154   :  { %1413 = vst [vmem:[%s6827_s4 + $0xb8] sm:$0xff] %v902_v40  ;;  %v1546_v27 = vadd.f32 %v4422_v37, %v902_v40  ;;  %v904_v44 = vadd.f32 %v903_v1, %v4445_v50  ;;  %v4645_v11 = vpop.f32.mrf.mxu1 }
 0x155   :  { %v907_v28 = vpop.f32.mrf.mxu0 }
 0x156   :  { %1414 = vst [vmem:[%s6827_s4 + $0xc0] sm:$0xff] %v904_v44  ;;  %v4650_v13 = vadd.f32 %v1546_v27, %v904_v44  ;;  %v908_v48 = vadd.f32 %v907_v28, %v4453_v52  ;;  %v4653_v6 = vpop.f32.mrf.mxu1 }
 0x157   :  { %v909_v2 = vpop.f32.mrf.mxu0 }
 0x158   :  { %1420 = vst [vmem:[%s6827_s4 + $0xf0] sm:$0xff] %v908_v48  ;;  %v1555_v37 = vadd.f32 %v4436_v46, %v908_v48  ;;  %v910_v50 = vadd.f32 %v909_v2, %v4459_v54  ;;  %v4660_v19 = vpop.f32.mrf.mxu1 }
 0x159   :  { %v911_v45 = vpop.f32.mrf.mxu0 }
 0x15a   :  { %1421 = vst [vmem:[%s6827_s4 + $0xf8] sm:$0xff] %v910_v50  ;;  %v4665_v39 = vadd.f32 %v1555_v37, %v910_v50  ;;  %v912_v52 = vadd.f32 %v911_v45, %v4467_v34  ;;  %v4668_v22 = vpop.f32.mrf.mxu1 }
 0x15b   :  { %v913_v61 = vpop.f32.mrf.mxu0 }
 0x15c   :  { %1427 = vst [vmem:[%s6827_s4 + $0x128] sm:$0xff] %v912_v52  ;;  %v1564_v46 = vadd.f32 %v4450_v63, %v912_v52  ;;  %v914_v54 = vadd.f32 %v913_v61, %v4473_v5  ;;  %v4675_v30 = vpop.f32.mrf.mxu1 }
 0x15d   :  { %v917_v55 = vpop.f32.mrf.mxu0 }
 0x15e   :  { %1428 = vst [vmem:[%s6827_s4 + $0x130] sm:$0xff] %v914_v54  ;;  %v4680_v16 = vadd.f32 %v1564_v46, %v914_v54  ;;  %v918_v34 = vadd.f32 %v917_v55, %v4481_v12  ;;  %v4683_v35 = vpop.f32.mrf.mxu1 }
 0x15f   :  { %v919_v9 = vpop.f32.mrf.mxu0 }
 0x160   :  { %6923 = vst [vmem:[#allocation3_spill] sm:$0xff] %v4680_v16  ;;  %1434 = vst [vmem:[%s6827_s4 + $0x160] sm:$0xff] %v918_v34  ;;  %v1573_v63 = vadd.f32 %v4464_v8, %v918_v34  ;;  %v920_v5 = vadd.f32 %v919_v9, %v4487_v17  ;;  %v4690_v40 = vpop.f32.mrf.mxu1  ;;  %v3181_v9 = vmov 0.0  }
 0x161   :  { %v921_v1 = vpop.f32.mrf.mxu0  ;;  %25 = vst.msk [vmem:[#allocation2 + $0x10] sm:$0xff] %vm22_vm1, %v3181_v9  ;;  %23 = vst.msk [vmem:[#allocation2] sm:$0xff] %vm22_vm1, %v3181_v9 }
 0x162   :  { %1435 = vst [vmem:[%s6827_s4 + $0x168] sm:$0xff] %v920_v5  ;;  %v4695_v27 = vadd.f32 %v1573_v63, %v920_v5  ;;  %v922_v12 = vadd.f32 %v921_v1, %v4495_v26  ;;  %v4698_v44 = vpop.f32.mrf.mxu1  ;;  %24 = vst.msk [vmem:[#allocation2 + $0x8] sm:$0xff] %vm22_vm1, %v3181_v9 }
 0x163   :  { %v923_v28 = vpop.f32.mrf.mxu0  ;;  %26 = vst.msk [vmem:[#allocation2 + $0x18] sm:$0xff] %vm22_vm1, %v3181_v9  ;;  %27 = vst.msk [vmem:[#allocation2 + $0x20] sm:$0xff] %vm22_vm1, %v3181_v9 }
 0x164   :  { %1441 = vst [vmem:[%s6827_s4 + $0x198] sm:$0xff] %v922_v12  ;;  %v1582_v8 = vadd.f32 %v4478_v23, %v922_v12  ;;  %v924_v17 = vadd.f32 %v923_v28, %v4501_v25  ;;  %v4705_v48 = vpop.f32.mrf.mxu1  ;;  %28 = vst.msk [vmem:[#allocation2 + $0x28] sm:$0xff] %vm22_vm1, %v3181_v9 }
 0x165   :  { %v927_v2 = vpop.f32.mrf.mxu0  ;;  %29 = vst.msk [vmem:[#allocation2 + $0x30] sm:$0xff] %vm22_vm1, %v3181_v9  ;;  %30 = vst.msk [vmem:[#allocation2 + $0x38] sm:$0xff] %vm22_vm1, %v3181_v9 }
 0x166   :  { %1442 = vst [vmem:[%s6827_s4 + $0x1a0] sm:$0xff] %v924_v17  ;;  %v4710_v37 = vadd.f32 %v1582_v8, %v924_v17  ;;  %v928_v26 = vadd.f32 %v927_v2, %v4509_v38  ;;  %v4713_v50 = vpop.f32.mrf.mxu1  ;;  %31 = vst.msk [vmem:[#allocation2 + $0x40] sm:$0xff] %vm22_vm1, %v3181_v9 }
 0x167   :  { %v929_v45 = vpop.f32.mrf.mxu0  ;;  %32 = vst.msk [vmem:[#allocation2 + $0x48] sm:$0xff] %vm22_vm1, %v3181_v9  ;;  %33 = vst.msk [vmem:[#allocation2 + $0x50] sm:$0xff] %vm22_vm1, %v3181_v9 }
 0x168   :  { %1448 = vst [vmem:[%s6827_s4 + $0x1d0] sm:$0xff] %v928_v26  ;;  %v1591_v23 = vadd.f32 %v4492_v60, %v928_v26  ;;  %v930_v25 = vadd.f32 %v929_v45, %v4515_v43  ;;  %v4720_v52 = vpop.f32.mrf.mxu1  ;;  %34 = vst.msk [vmem:[#allocation2 + $0x58] sm:$0xff] %vm22_vm1, %v3181_v9 }
 0x169   :  { %v931_v61 = vpop.f32.mrf.mxu0  ;;  %35 = vst.msk [vmem:[#allocation2 + $0x60] sm:$0xff] %vm22_vm1, %v3181_v9  ;;  %36 = vst.msk [vmem:[#allocation2 + $0x68] sm:$0xff] %vm22_vm1, %v3181_v9 }
 0x16a   :  { %1449 = vst [vmem:[%s6827_s4 + $0x1d8] sm:$0xff] %v930_v25  ;;  %v4725_v46 = vadd.f32 %v1591_v23, %v930_v25  ;;  %v932_v38 = vadd.f32 %v931_v61, %v4523_v49  ;;  %v4728_v54 = vpop.f32.mrf.mxu1  ;;  %37 = vst.msk [vmem:[#allocation2 + $0x70] sm:$0xff] %vm22_vm1, %v3181_v9 }
 0x16b   :  { %v933_v55 = vpop.f32.mrf.mxu0  ;;  %38 = vst.msk [vmem:[#allocation2 + $0x78] sm:$0xff] %vm22_vm1, %v3181_v9 }
 0x16c   :  { %6924 = vst [vmem:[#allocation4_spill] sm:$0xff] %v4725_v46  ;;  %1455 = vst [vmem:[%s6827_s4 + $0x208] sm:$0xff] %v932_v38  ;;  %v1600_v60 = vadd.f32 %v4506_v36, %v932_v38  ;;  %v934_v43 = vadd.f32 %v933_v55, %v4529_v53  ;;  %v4735_v34 = vpop.f32.mrf.mxu1 }
 0x16d   :  { %v937_v36 = vpop.f32.mrf.mxu0 }
 0x16e   :  { %1456 = vst [vmem:[%s6827_s4 + $0x210] sm:$0xff] %v934_v43  ;;  %v4756_v49 = vadd.f32 %v1600_v60, %v934_v43  ;;  %v938_v53 = vadd.f32 %v937_v36, %v4537_v24  ;;  %v4759_v63 = vpop.f32.mrf.mxu1 }
 0x16f   :  { %v939_v5 = vpop.f32.mrf.mxu0 }
 0x170   :  { %6925 = vst [vmem:[#allocation5_spill] sm:$0xff] %v4756_v49  ;;  %1462 = vst [vmem:[%s6827_s4 + $0x240] sm:$0xff] %v938_v53  ;;  %v1609_v1 = vadd.f32 %v4520_v47, %v938_v53  ;;  %v940_v12 = vadd.f32 %v939_v5, %v4543_v59  ;;  %v4766_v28 = vpop.f32.mrf.mxu1 }
 0x171   :  { %v941_v8 = vpop.f32.mrf.mxu0 }
 0x172   :  { %1463 = vst [vmem:[%s6827_s4 + $0x248] sm:$0xff] %v940_v12  ;;  %v4771_v17 = vadd.f32 %v1609_v1, %v940_v12  ;;  %v942_v24 = vadd.f32 %v941_v8, %v4551_v32  ;;  %v4774_v2 = vpop.f32.mrf.mxu1 }
 0x173   :  { %v943_v26 = vpop.f32.mrf.mxu0 }
 0x174   :  { %6926 = vst [vmem:[#allocation6_spill] sm:$0xff] %v4771_v17  ;;  %1469 = vst [vmem:[%s6827_s4 + $0x278] sm:$0xff] %v942_v24  ;;  %v1618_v47 = vadd.f32 %v4534_v20, %v942_v24  ;;  %v944_v59 = vadd.f32 %v943_v26, %v4557_v14  ;;  %v4781_v45 = vpop.f32.mrf.mxu1 }
 0x175   :  { %v947_v23 = vpop.f32.mrf.mxu0 }
 0x176   :  { %1470 = vst [vmem:[%s6827_s4 + $0x280] sm:$0xff] %v944_v59  ;;  %v4786_v25 = vadd.f32 %v1618_v47, %v944_v59  ;;  %v948_v32 = vadd.f32 %v947_v23, %v4565_v62  ;;  %v4789_v61 = vpop.f32.mrf.mxu1 }
 0x177   :  { %v949_v38 = vpop.f32.mrf.mxu0 }
 0x178   :  { %6927 = vst [vmem:[#allocation7_spill] sm:$0xff] %v4786_v25  ;;  %1476 = vst [vmem:[%s6827_s4 + $0x2b0] sm:$0xff] %v948_v32  ;;  %v1627_v20 = vadd.f32 %v4548_v42, %v948_v32  ;;  %v950_v14 = vadd.f32 %v949_v38, %v4571_v7  ;;  %v4796_v55 = vpop.f32.mrf.mxu1 }
 0x179   :  { %v951_v60 = vpop.f32.mrf.mxu0 }
 0x17a   :  { %1477 = vst [vmem:[%s6827_s4 + $0x2b8] sm:$0xff] %v950_v14  ;;  %v4801_v43 = vadd.f32 %v1627_v20, %v950_v14  ;;  %v952_v62 = vadd.f32 %v951_v60, %v4579_v41  ;;  %v4804_v9 = vpop.f32.mrf.mxu1 }
 0x17b   :  { %v953_v36 = vpop.f32.mrf.mxu0 }
 0x17c   :  { %6928 = vst [vmem:[#allocation8_spill] sm:$0xff] %v4801_v43  ;;  %1483 = vst [vmem:[%s6827_s4 + $0x2e8] sm:$0xff] %v952_v62  ;;  %v1636_v42 = vadd.f32 %v4562_v21, %v952_v62  ;;  %v954_v7 = vadd.f32 %v953_v36, %v4585_v56  ;;  %v4811_v53 = vpop.f32.mrf.mxu1 }
 0x17d   :  { %v957_v5 = vpop.f32.mrf.mxu0 }
 0x17e   :  { %1484 = vst [vmem:[%s6827_s4 + $0x2f0] sm:$0xff] %v954_v7  ;;  %v4816_v1 = vadd.f32 %v1636_v42, %v954_v7  ;;  %v958_v41 = vadd.f32 %v957_v5, %v4592_v29  ;;  %v4819_v12 = vpop.f32.mrf.mxu1 }
 0x17f   :  { %v959_v8 = vpop.f32.mrf.mxu0 }
 0x180   :  { %6929 = vst [vmem:[#allocation9_spill] sm:$0xff] %v4816_v1  ;;  %1490 = vst [vmem:[%s6827_s4 + $0x320] sm:$0xff] %v958_v41  ;;  %v1645_v21 = vadd.f32 %v4576_v10, %v958_v41  ;;  %v960_v56 = vadd.f32 %v959_v8, %v4599_v33  ;;  %v4826_v24 = vpop.f32.mrf.mxu1 }
 0x181   :  { %6930 = vst [vmem:[#allocation10_spill] sm:$0xff] %v4826_v24  ;;  %v961_v26 = vpop.f32.mrf.mxu0 }
 0x182   :  { %1491 = vst [vmem:[%s6827_s4 + $0x328] sm:$0xff] %v960_v56  ;;  %v4831_v47 = vadd.f32 %v1645_v21, %v960_v56  ;;  %v962_v29 = vadd.f32 %v961_v26, %v4607_v4  ;;  %v4834_v59 = vpop.f32.mrf.mxu1 }
 0x183   :  { %v963_v23 = vpop.f32.mrf.mxu0 }
 0x184   :  { %6931 = vst [vmem:[#allocation11_spill] sm:$0xff] %v4831_v47  ;;  %1497 = vst [vmem:[%s6827_s4 + $0x358] sm:$0xff] %v962_v29  ;;  %v1654_v10 = vadd.f32 %v4590_v58, %v962_v29  ;;  %v964_v33 = vadd.f32 %v963_v23, %v4614_v3  ;;  %v4841_v32 = vpop.f32.mrf.mxu1 }
 0x185   :  { %v4843_v38 = vpop.f32.mrf.mxu0 }
 0x186   :  { %1498 = vst [vmem:[%s6827_s4 + $0x360] sm:$0xff] %v964_v33  ;;  %v4848_v4 = vadd.f32 %v1654_v10, %v964_v33  ;;  %v4850_v20 = vpop.f32.mrf.mxu1 }
 0x187   :  { %v4852_v14 = vpop.f32.mrf.mxu0 }
 0x188   :  { %6932 = vst [vmem:[#allocation12_spill] sm:$0xff] %v4848_v4  ;;  %v4854_v60 = vpop.f32.mrf.mxu1 }
 0x189   :  { %v4856_v62 = vpop.f32.mrf.mxu0 }
 0x18a   :  { %v4858_v58 = vpop.f32.mrf.mxu1 }
 0x18b   :  { %v4860_v3 = vpop.f32.mrf.mxu0 }
 0x18c   :  { %v4862_v36 = vpop.f32.mrf.mxu1 }
 0x18d   :  { %v4864_v42 = vpop.f32.mrf.mxu0 }
 0x18e   :  { %v4866_v7 = vpop.f32.mrf.mxu1 }
 0x18f   :  { %v4868_v5 = vpop.f32.mrf.mxu0 }
 0x190   :  { %v4870_v41 = vpop.f32.mrf.mxu1 }
 0x191   :  { %v4872_v8 = vpop.f32.mrf.mxu0 }
 0x192   :  { %v4874_v21 = vpop.f32.mrf.mxu1 }
 0x193   :  { %v4876_v56 = vpop.f32.mrf.mxu0 }
 0x194   :  { %v4878_v26 = vpop.f32.mrf.mxu1 }
 0x195   :  { %v1133_v29 = vpop.f32.mrf.mxu0 }
 0x196   :  { %v4881_v23 = vadd.f32 %v1133_v29, %v4683_v35  ;;  %v4883_v10 = vpop.f32.mrf.mxu1 }
 0x197   :  { %v1135_v33 = vpop.f32.mrf.mxu0 }
 0x198   :  { %1422 = vst [vmem:[%s6827_s4 + $0x100] sm:$0xff] %v4881_v23  ;;  %v4890_v49 = vadd.f32 %v1135_v33, %v4690_v40  ;;  %v4892_v47 = vpop.f32.mrf.mxu1 }
 0x199   :  { %v1137_v25 = vpop.f32.mrf.mxu0 }
 0x19a   :  { %1423 = vst [vmem:[%s6827_s4 + $0x108] sm:$0xff] %v4890_v49  ;;  %v4899_v35 = vadd.f32 %v1137_v25, %v4698_v44  ;;  %v4901_v29 = vpop.f32.mrf.mxu1 }
 0x19b   :  { %v1139_v46 = vpop.f32.mrf.mxu0 }
 0x19c   :  { %1429 = vst [vmem:[%s6827_s4 + $0x138] sm:$0xff] %v4899_v35  ;;  %v4908_v40 = vadd.f32 %v1139_v46, %v4705_v48  ;;  %v4910_v33 = vpop.f32.mrf.mxu1 }
 0x19d   :  { %v4912_v4 = vpop.f32.mrf.mxu0 }
 0x19e   :  { %6933 = vst [vmem:[#allocation13_spill] sm:$0xff] %v4908_v40  ;;  %1430 = vst [vmem:[%s6827_s4 + $0x140] sm:$0xff] %v4908_v40  ;;  %v4918_v44 = vpop.f32.mrf.mxu1 }
 0x19f   :  { %v4920_v25 = vpop.f32.mrf.mxu0 }
 0x1a0   :  { %v4922_v17 = vpop.f32.mrf.mxu1 }
 0x1a1   :  { %v1147_v1 = vpop.f32.mrf.mxu0 }
 0x1a2   :  { %v4925_v24 = vadd.f32 %v1147_v1, %v4728_v54  ;;  %v4927_v48 = vpop.f32.mrf.mxu1 }
 0x1a3   :  { %6934 = vst [vmem:[#allocation14_spill] sm:$0xff] %v4927_v48  ;;  %v1149_v46 = vpop.f32.mrf.mxu0 }
 0x1a4   :  { %1443 = vst [vmem:[%s6827_s4 + $0x1a8] sm:$0xff] %v4925_v24  ;;  %v4934_v40 = vadd.f32 %v1149_v46, %v4735_v34  ;;  %v4936_v43 = vpop.f32.mrf.mxu1 }
 0x1a5   :  { %6936 = vst [vmem:[#allocation16_spill] sm:$0xff] %v4936_v43  ;;  %v1153_v16 = vpop.f32.mrf.mxu0 }
 0x1a6   :  { %6935 = vst [vmem:[#allocation15_spill] sm:$0xff] %v4934_v40  ;;  %1444 = vst [vmem:[%s6827_s4 + $0x1b0] sm:$0xff] %v4934_v40  ;;  %v4943_v54 = vadd.f32 %v1153_v16, %v4759_v63  ;;  %v4945_v1 = vpop.f32.mrf.mxu1 }
 0x1a7   :  { %v1155_v48 = vpop.f32.mrf.mxu0 }
 0x1a8   :  { %6937 = vst [vmem:[#allocation17_spill] sm:$0xff] %v4943_v54  ;;  %1450 = vst [vmem:[%s6827_s4 + $0x1e0] sm:$0xff] %v4943_v54  ;;  %v4952_v34 = vadd.f32 %v1155_v48, %v4766_v28  ;;  %v4954_v46 = vpop.f32.mrf.mxu1 }
 0x1a9   :  { %v1157_v43 = vpop.f32.mrf.mxu0 }
 0x1aa   :  { %6938 = vst [vmem:[#allocation18_spill] sm:$0xff] %v4952_v34  ;;  %1451 = vst [vmem:[%s6827_s4 + $0x1e8] sm:$0xff] %v4952_v34  ;;  %v4961_v16 = vadd.f32 %v1157_v43, %v4774_v2  ;;  %v4963_v63 = vpop.f32.mrf.mxu1 }
 0x1ab   :  { %v1159_v40 = vpop.f32.mrf.mxu0 }
 0x1ac   :  { %6939 = vst [vmem:[#allocation19_spill] sm:$0xff] %v4961_v16  ;;  %1457 = vst [vmem:[%s6827_s4 + $0x218] sm:$0xff] %v4961_v16  ;;  %v4970_v28 = vadd.f32 %v1159_v40, %v4781_v45  ;;  %v4972_v48 = vpop.f32.mrf.mxu1 }
 0x1ad   :  { %v1163_v54 = vpop.f32.mrf.mxu0 }
 0x1ae   :  { %6940 = vst [vmem:[#allocation20_spill] sm:$0xff] %v4970_v28  ;;  %1458 = vst [vmem:[%s6827_s4 + $0x220] sm:$0xff] %v4970_v28  ;;  %v4979_v2 = vadd.f32 %v1163_v54, %v4789_v61  ;;  %v4981_v43 = vpop.f32.mrf.mxu1 }
 0x1af   :  { %v1165_v34 = vpop.f32.mrf.mxu0 }
 0x1b0   :  { %6941 = vst [vmem:[#allocation21_spill] sm:$0xff] %v4979_v2  ;;  %1464 = vst [vmem:[%s6827_s4 + $0x250] sm:$0xff] %v4979_v2  ;;  %v4988_v45 = vadd.f32 %v1165_v34, %v4796_v55  ;;  %v4990_v40 = vpop.f32.mrf.mxu1 }
 0x1b1   :  { %6943 = vst [vmem:[#allocation23_spill] sm:$0xff] %v4990_v40  ;;  %v1167_v16 = vpop.f32.mrf.mxu0 }
 0x1b2   :  { %6942 = vst [vmem:[#allocation22_spill] sm:$0xff] %v4988_v45  ;;  %1465 = vst [vmem:[%s6827_s4 + $0x258] sm:$0xff] %v4988_v45  ;;  %v4997_v61 = vadd.f32 %v1167_v16, %v4804_v9  ;;  %v4999_v54 = vpop.f32.mrf.mxu1 }
 0x1b3   :  { %6945 = vst [vmem:[#allocation25_spill] sm:$0xff] %v4999_v54  ;;  %v1169_v28 = vpop.f32.mrf.mxu0 }
 0x1b4   :  { %6944 = vst [vmem:[#allocation24_spill] sm:$0xff] %v4997_v61  ;;  %1471 = vst [vmem:[%s6827_s4 + $0x288] sm:$0xff] %v4997_v61  ;;  %v5006_v55 = vadd.f32 %v1169_v28, %v4811_v53  ;;  %v5008_v34 = vpop.f32.mrf.mxu1 }
 0x1b5   :  { %6947 = vst [vmem:[#allocation27_spill] sm:$0xff] %v5008_v34  ;;  %v5010_v2 = vpop.f32.mrf.mxu0 }
 0x1b6   :  { %6946 = vst [vmem:[#allocation26_spill] sm:$0xff] %v5006_v55  ;;  %1472 = vst [vmem:[%s6827_s4 + $0x290] sm:$0xff] %v5006_v55  ;;  %v5016_v9 = vpop.f32.mrf.mxu1 }
 0x1b7   :  { %v5018_v16 = vpop.f32.mrf.mxu0 }
 0x1b8   :  { %v5020_v45 = vpop.f32.mrf.mxu1 }
 0x1b9   :  { %v1177_v54 = vpop.f32.mrf.mxu0 }
 0x1ba   :  { %v5023_v61 = vadd.f32 %v1177_v54, %v4834_v59  ;;  %v5025_v53 = vpop.f32.mrf.mxu1 }
 0x1bb   :  { %6949 = vst [vmem:[#allocation29_spill] sm:$0xff] %v5025_v53  ;;  %v1179_v28 = vpop.f32.mrf.mxu0  ;;  %v5047_v53 = vadd.f32 %v4864_v42, %v4653_v6  ;;  %v5079_v42 = vadd.f32 %v4872_v8, %v4668_v22 }
 0x1bc   :  { %6948 = vst [vmem:[#allocation28_spill] sm:$0xff] %v5023_v61  ;;  %1485 = vst [vmem:[%s6827_s4 + $0x2f8] sm:$0xff] %v5023_v61  ;;  %v5032_v55 = vadd.f32 %v1179_v28, %v4841_v32  ;;  %v5034_v34 = vpop.f32.mrf.mxu1  ;;  %v5051_v32 = vadd.f32 %v4843_v38, %v4623_v57 }
 0x1bd   :  { %v1183_v40 = vpop.f32.mrf.mxu0  ;;  %v1539_v38 = vadd.f32 %v4635_v0, %v5047_v53 }
 0x1be   :  { %1486 = vst [vmem:[%s6827_s4 + $0x300] sm:$0xff] %v5032_v55  ;;  %v5041_v59 = vadd.f32 %v1183_v40, %v4850_v20  ;;  %v5043_v54 = vpop.f32.mrf.mxu1 }
 0x1bf   :  { %v1185_v61 = vpop.f32.mrf.mxu0 }
 0x1c0   :  { %1492 = vst [vmem:[%s6827_s4 + $0x330] sm:$0xff] %v5041_v59  ;;  %v5058_v28 = vadd.f32 %v1185_v61, %v4854_v60  ;;  %v5060_v20 = vpop.f32.mrf.mxu1  ;;  %v5075_v60 = vadd.f32 %v4868_v5, %v4660_v19  ;;  %v5112_v5 = vadd.f32 %v4876_v56, %v4675_v30  ;;  %v5127_v56 = vadd.f32 %v4860_v3, %v4645_v11 }
 0x1c1   :  { %v1187_v40 = vpop.f32.mrf.mxu0 }
 0x1c2   :  { %6950 = vst [vmem:[#allocation30_spill] sm:$0xff] %v5058_v28  ;;  %1493 = vst [vmem:[%s6827_s4 + $0x338] sm:$0xff] %v5058_v28  ;;  %v5067_v6 = vadd.f32 %v1187_v40, %v4858_v58  ;;  %v5069_v57 = vpop.f32.mrf.mxu1  ;;  %v1521_v28 = vadd.f32 %v4605_v15, %v5051_v32  ;;  %v5085_v58 = vadd.f32 %v4852_v14, %v4630_v31 }
 0x1c3   :  { %v1189_v61 = vpop.f32.mrf.mxu0  ;;  %v3070_v40 = vadd.f32 %v4892_v47, %v4883_v10  ;;  %v5100_v15 = vadd.f32 %v4856_v62, %v4638_v18  ;;  %v3064_v31 = vadd.f32 %v4870_v41, %v4866_v7  ;;  %v1540_v62 = vadd.f32 %v1539_v38, %v5075_v60 }
 0x1c4   :  { %1499 = vst [vmem:[%s6827_s4 + $0x368] sm:$0xff] %v5067_v6  ;;  %v5094_v0 = vadd.f32 %v1189_v61, %v4862_v36  ;;  %v5096_v19 = vpop.f32.mrf.mxu1  ;;  %v1548_v36 = vadd.f32 %v4650_v13, %v5079_v42  ;;  %v3073_v7 = vadd.f32 %v4910_v33, %v4901_v29  ;;  %v1522_v13 = vadd.f32 %v1521_v28, %v5085_v58 }
 0x1c5   :  { %v3126_v22 = vpop.f32.mrf.mxu0  ;;  %v1530_v30 = vadd.f32 %v4620_v51, %v5100_v15  ;;  %v5131_v29 = vadd.f32 %v4912_v4, %v4713_v50  ;;  %v3067_v61 = vadd.f32 %v4878_v26, %v4874_v21  ;;  %v3082_v4 = vadd.f32 %v4954_v46, %v4945_v1 }
 0x1c6   :  { %1500 = vst [vmem:[%s6827_s4 + $0x370] sm:$0xff] %v5094_v0  ;;  %v3104_v47 = vpop.f32.mrf.mxu1  ;;  %v1332_v14 = vadd.f32 %v3126_v22, %v3070_v40  ;;  %v1549_v11 = vadd.f32 %v1548_v36, %v5112_v5  ;;  %v5153_v36 = vadd.f32 %v4920_v25, %v4720_v52  ;;  %v1557_v46 = vadd.f32 %v4665_v39, %v4881_v23 }
 0x1c7   :  { %v1323_v18 = vpop.f32.mrf.mxu0  ;;  %v1584_v52 = vadd.f32 %v4710_v37, %v4925_v24  ;;  %v3100_v25 = vadd.f32 %v5060_v20, %v5043_v54  ;;  %v3085_v23 = vadd.f32 %v4972_v48, %v4963_v63  ;;  %v5180_v54 = vadd.f32 %v5010_v2, %v4819_v12 }
 0x1c8   :  { %1410 = vst.msk [vmem:[%s6827_s4 + $0xa0] sm:$0xff] %vm1395_vm2, %v1332_v14  ;;  %v3105_v41 = vpop.f32.mrf.mxu1  ;;  %v1324_v8 = vadd.f32 %v3064_v31, %v1323_v18  ;;  %v1541_v10 = vsel %vm1395_vm2, %v1332_v14, 0.0  ;;  %v1531_v14 = vadd.f32 %v1530_v30, %v5127_v56  ;;  %v6951_v30 = vld [vmem:[#allocation3_spill] sm:$0xff] }
 0x1c9   :  { %v3127_v33 = vpop.f32.mrf.mxu0  ;;  %v1542_v38 = vadd.f32 %v1541_v10, %v1540_v62  ;;  %v3106_v3 = vadd.f32 %v3105_v41, %v3104_v47  ;;  %v1575_v47 = vadd.f32 %v4695_v27, %v5131_v29  ;;  %v3076_v62 = vadd.f32 %v4922_v17, %v4918_v44 }
 0x1ca   :  { %1396 = vst.msk [vmem:[%s6827_s4 + $0x30] sm:$0xff] %vm1395_vm2, %v1324_v8  ;;  %v3107_v28 = vpop.f32.mrf.mxu1  ;;  %v1335_v51 = vadd.f32 %v3127_v33, %v3073_v7  ;;  %v1523_v40 = vsel %vm1395_vm2, %v1324_v8, 0.0  ;;  %v1566_v33 = vadd.f32 %v6951_v30, %v4899_v35 }
 0x1cb   :  { %v1326_v22 = vpop.f32.mrf.mxu0  ;;  %1543 = vadd.xlane.f32.xlu1 %v1542_v38  ;;  %v1524_v50 = vadd.f32 %v1523_v40, %v1522_v13  ;;  %v1576_v24 = vadd.f32 %v1575_v47, %v5153_v36  ;;  %v1558_v13 = vadd.f32 %v1557_v46, %v4890_v49  ;;  %v6952_v38 = vld [vmem:[#allocation14_spill] sm:$0xff] }
 0x1cc   :  { %1417 = vst.msk [vmem:[%s6827_s4 + $0xd8] sm:$0xff] %vm1395_vm2, %v1335_v51  ;;  %v3108_v21 = vpop.f32.mrf.mxu1  ;;  %v1327_v26 = vadd.f32 %v3067_v61, %v1326_v22  ;;  %v1550_v31 = vsel %vm1395_vm2, %v1335_v51, 0.0  ;;  %v6953_v61 = vld [vmem:[#allocation16_spill] sm:$0xff]  ;;  %v3094_v22 = vadd.f32 %v5020_v45, %v5016_v9 }
 0x1cd   :  { %v3130_v18 = vpop.f32.mrf.mxu0  ;;  %1525 = vadd.xlane.f32.xlu0 %v1524_v50  ;;  %v1551_v1 = vadd.f32 %v1550_v31, %v1549_v11  ;;  %v3109_v20 = vadd.f32 %v3108_v21, %v3107_v28  ;;  %v3079_v51 = vadd.f32 %v6953_v61, %v6952_v38  ;;  %v6954_v28 = vld [vmem:[#allocation15_spill] sm:$0xff]  ;;  %v3103_v11 = vadd.f32 %v5096_v19, %v5069_v57  ;;  %v6955_v21 = vld [vmem:[#allocation8_spill] sm:$0xff]  ;;  %v6956_v31 = vld [vmem:[#allocation10_spill] sm:$0xff] }
 0x1ce   :  { %1403 = vst.msk [vmem:[%s6827_s4 + $0x68] sm:$0xff] %vm1395_vm2, %v1327_v26  ;;  %v1348_v7 = vadd.f32 %v3130_v18, %v3082_v4  ;;  %v3138_v27 = vpop.f32.mrf.mxu1  ;;  %v1532_v41 = vsel %vm1395_vm2, %v1327_v26, 0.0  ;;  %v1585_v40 = vadd.f32 %v1584_v52, %v6954_v28  ;;  %v1629_v26 = vadd.f32 %v6955_v21, %v5180_v54  ;;  %v6957_v18 = vld [vmem:[#allocation23_spill] sm:$0xff] }
 0x1cf   :  { %v5168_v8 = vadd.f32 %v3138_v27, %v3106_v3  ;;  %v1339_v39 = vpop.f32.mrf.mxu0  ;;  %1552 = vadd.xlane.f32.xlu1 %v1551_v1  ;;  %v1533_v17 = vadd.f32 %v1532_v41, %v1531_v14  ;;  %v5215_v14 = vadd.f32 %v5018_v16, %v6956_v31  ;;  %v3088_v1 = vadd.f32 %v6957_v18, %v4981_v43  ;;  %v6959_v27 = vld [vmem:[#allocation28_spill] sm:$0xff]  ;;  %v6960_v41 = vld [vmem:[#allocation9_spill] sm:$0xff]  ;;  %v6973_v18 = vld [vmem:[#allocation11_spill] sm:$0xff] }
 0x1d0   :  { %1438 = vst.msk [vmem:[%s6827_s4 + $0x180] sm:$0xff] %vm1395_vm2, %v1348_v7  ;;  %v1340_v44 = vadd.f32 %v3076_v62, %v1339_v39  ;;  %v1371_v10 = vpop.f32.mrf.mxu1  ;;  %v1577_v37 = vsel %vm1395_vm2, %v1348_v7, 0.0  ;;  %v6958_v62 = vld [vmem:[#allocation13_spill] sm:$0xff]  ;;  %v1638_v52 = vadd.f32 %v6960_v41, %v6959_v27  ;;  %v6976_v27 = vld [vmem:[#allocation26_spill] sm:$0xff] }
 0x1d1   :  { %1494 = vst.msk [vmem:[%s6827_s4 + $0x340] sm:$0xff] %vm1395_vm2, %v5168_v8  ;;  %v1372_v63 = vadd.f32 %v3100_v25, %v1371_v10  ;;  %v3131_v48 = vpop.f32.mrf.mxu0  ;;  %1534 = vadd.xlane.f32.xlu0 %v1533_v17  ;;  %v1578_v3 = vadd.f32 %v1577_v37, %v1576_v24  ;;  %v1567_v7 = vadd.f32 %v1566_v33, %v6958_v62  ;;  %v6961_v39 = vld [vmem:[#allocation29_spill] sm:$0xff]  ;;  %v6963_v37 = vld [vmem:[#allocation6_spill] sm:$0xff]  ;;  %v6965_v33 = vld [vmem:[#allocation27_spill] sm:$0xff] }
 0x1d2   :  { %1424 = vst.msk [vmem:[%s6827_s4 + $0x110] sm:$0xff] %vm1395_vm2, %v1340_v44  ;;  %v1351_v12 = vadd.f32 %v3131_v48, %v3085_v23  ;;  %v3139_v2 = vpop.f32.mrf.mxu1  ;;  %v1559_v19 = vsel %vm1395_vm2, %v1340_v44, 0.0  ;;  %v3097_v17 = vadd.f32 %v5034_v34, %v6961_v39  ;;  %v6962_v10 = vld [vmem:[#allocation21_spill] sm:$0xff]  ;;  %v6974_v62 = vld [vmem:[#allocation19_spill] sm:$0xff] }
 0x1d3   :  { %1480 = vst.msk [vmem:[%s6827_s4 + $0x2d0] sm:$0xff] %vm1395_vm2, %v1372_v63  ;;  %v1383_v49 = vadd.f32 %v3139_v2, %v3109_v20  ;;  %v1342_v35 = vpop.f32.mrf.mxu0  ;;  %v1560_v43 = vadd.f32 %v1559_v19, %v1558_v13  ;;  %v1631_v44 = vsel %vm1395_vm2, %v1372_v63, 0.0  ;;  %v1611_v24 = vadd.f32 %v6963_v37, %v6962_v10  ;;  %v6964_v13 = vld [vmem:[#allocation25_spill] sm:$0xff]  ;;  %v6971_v19 = vld [vmem:[#allocation7_spill] sm:$0xff] }
 0x1d4   :  { %1445 = vst.msk [vmem:[%s6827_s4 + $0x1b8] sm:$0xff] %vm1395_vm2, %v1351_v12  ;;  %v1343_v50 = vadd.f32 %v3079_v51, %v1342_v35  ;;  %v1374_v4 = vpop.f32.mrf.mxu1  ;;  %v1586_v57 = vsel %vm1395_vm2, %v1351_v12, 0.0  ;;  %v1630_v20 = vadd.f32 %v1629_v26, %v5215_v14  ;;  %v3091_v38 = vadd.f32 %v6965_v33, %v6964_v13  ;;  %v6966_v51 = vld [vmem:[#allocation12_spill] sm:$0xff]  ;;  %v6967_v35 = vld [vmem:[#allocation17_spill] sm:$0xff]  ;;  %v1505_v13 = vld [vmem:[#allocation2 + $0x18] sm:$0xff] }
 0x1d5   :  { %1501 = vst.msk [vmem:[%s6827_s4 + $0x378] sm:$0xff] %vm1395_vm2, %v1383_v49  ;;  %v1375_v45 = vadd.f32 %v3103_v11, %v1374_v4  ;;  %v3134_v9 = vpop.f32.mrf.mxu0  ;;  %1579 = vadd.xlane.f32.xlu0 %v1578_v3  ;;  %v1587_v47 = vadd.f32 %v1586_v57, %v1585_v40  ;;  %v1639_v63 = vadd.f32 %v1638_v52, %v5032_v55  ;;  %v6968_v3 = vld [vmem:[#allocation4_spill] sm:$0xff]  ;;  %v1649_v52 = vsel %vm1395_vm2, %v5168_v8, 0.0  ;;  %v1504_v37 = vld [vmem:[#allocation2 + $0x10] sm:$0xff] }
 0x1d6   :  { %1431 = vst.msk [vmem:[%s6827_s4 + $0x148] sm:$0xff] %vm1395_vm2, %v1343_v50  ;;  %v1364_v46 = vadd.f32 %v3134_v9, %v3094_v22  ;;  %v1568_v16 = vsel %vm1395_vm2, %v1343_v50, 0.0  ;;  %v1656_v12 = vadd.f32 %v6966_v51, %v5067_v6  ;;  %v1632_v28 = vadd.f32 %v1631_v44, %v1630_v20  ;;  %v6969_v50 = vld [vmem:[#allocation22_spill] sm:$0xff]  ;;  %v6970_v57 = vld [vmem:[#allocation24_spill] sm:$0xff]  ;;  %v1502_v20 = vld [vmem:[#allocation2] sm:$0xff] }
 0x1d7   :  { %1487 = vst.msk [vmem:[%s6827_s4 + $0x308] sm:$0xff] %vm1395_vm2, %v1375_v45  ;;  %v1355_v25 = vpop.f32.mrf.mxu0  ;;  %1588 = vadd.xlane.f32.xlu1 %v1587_v47  ;;  %v1569_v30 = vadd.f32 %v1568_v16, %v1567_v7  ;;  %v1640_v61 = vsel %vm1395_vm2, %v1375_v45, 0.0  ;;  %v1593_v22 = vadd.f32 %v6968_v3, %v6967_v35  ;;  %v1612_v4 = vadd.f32 %v1611_v24, %v6969_v50  ;;  %v6972_v9 = vld [vmem:[#allocation18_spill] sm:$0xff]  ;;  %v1508_v51 = vld [vmem:[#allocation2 + $0x30] sm:$0xff]  ;;  %v1506_v3 = vld [vmem:[#allocation2 + $0x20] sm:$0xff] }
 0x1d8   :  { %1466 = vst.msk [vmem:[%s6827_s4 + $0x260] sm:$0xff] %vm1395_vm2, %v1364_v46  ;;  %v1356_v23 = vadd.f32 %v3088_v1, %v1355_v25  ;;  %v1613_v11 = vsel %vm1395_vm2, %v1364_v46, 0.0  ;;  %v1641_v55 = vadd.f32 %v1640_v61, %v1639_v63  ;;  %v1658_v6 = vsel %vm1395_vm2, %v1383_v49, 0.0  ;;  %v6975_v49 = vld [vmem:[#allocation5_spill] sm:$0xff]  ;;  %v6977_v25 = vld [vmem:[#allocation30_spill] sm:$0xff] }
 0x1d9   :  { %v3135_v48 = vpop.f32.mrf.mxu0  ;;  %1561 = vadd.xlane.f32.xlu0 %v1560_v43  ;;  %v1620_v21 = vadd.f32 %v6971_v19, %v6970_v57  ;;  %v1657_v26 = vadd.f32 %v1656_v12, %v5094_v0  ;;  %v1614_v31 = vadd.f32 %v1613_v11, %v1612_v4  ;;  %v1594_v47 = vadd.f32 %v1593_v22, %v6972_v9 }
 0x1da   :  { %1452 = vst.msk [vmem:[%s6827_s4 + $0x1f0] sm:$0xff] %vm1395_vm2, %v1356_v23  ;;  %v1367_v34 = vadd.f32 %v3135_v48, %v3097_v17  ;;  %v1595_v45 = vsel %vm1395_vm2, %v1356_v23, 0.0  ;;  %v1647_v1 = vadd.f32 %v6973_v18, %v5041_v59  ;;  %v1602_v7 = vadd.f32 %v6975_v49, %v6974_v62  ;;  %v6978_v17 = vld [vmem:[#allocation20_spill] sm:$0xff]  ;;  %v1512_v62 = vld [vmem:[#allocation2 + $0x50] sm:$0xff] }
 0x1db   :  { %v1358_v2 = vpop.f32.mrf.mxu0  ;;  %1570 = vadd.xlane.f32.xlu1 %v1569_v30  ;;  %v1659_v46 = vadd.f32 %v1658_v6, %v1657_v26  ;;  %v1621_v41 = vadd.f32 %v1620_v21, %v6976_v27  ;;  %v1596_v0 = vadd.f32 %v1595_v45, %v1594_v47  ;;  %v1507_v6 = vld [vmem:[#allocation2 + $0x28] sm:$0xff] }
 0x1dc   :  { %1473 = vst.msk [vmem:[%s6827_s4 + $0x298] sm:$0xff] %vm1395_vm2, %v1367_v34  ;;  %v1359_v40 = vadd.f32 %v3091_v38, %v1358_v2  ;;  %v1622_v16 = vsel %vm1395_vm2, %v1367_v34, 0.0  ;;  %v1648_v43 = vadd.f32 %v1647_v1, %v6977_v25  ;;  %v1603_v23 = vadd.f32 %v1602_v7, %v6978_v17  ;;  %v1503_v38 = vld [vmem:[#allocation2 + $0x8] sm:$0xff]  ;;  %v1509_v2 = vld [vmem:[#allocation2 + $0x38] sm:$0xff] }
 0x1dd   :  { %1633 = vadd.xlane.f32.xlu0 %v1632_v28  ;;  %v1623_v39 = vadd.f32 %v1622_v16, %v1621_v41  ;;  %v1515_v18 = vld [vmem:[#allocation2 + $0x68] sm:$0xff]  ;;  %v1517_v41 = vld [vmem:[#allocation2 + $0x78] sm:$0xff] }
 0x1de   :  { %1459 = vst.msk [vmem:[%s6827_s4 + $0x228] sm:$0xff] %vm1395_vm2, %v1359_v40  ;;  %v1604_v59 = vsel %vm1395_vm2, %v1359_v40, 0.0  ;;  %v1650_v44 = vadd.f32 %v1649_v52, %v1648_v43  ;;  %v1510_v43 = vld [vmem:[#allocation2 + $0x40] sm:$0xff]  ;;  %v1513_v17 = vld [vmem:[#allocation2 + $0x58] sm:$0xff] }
 0x1df   :  { %1642 = vadd.xlane.f32.xlu1 %v1641_v55  ;;  %v1605_v10 = vadd.f32 %v1604_v59, %v1603_v23 }
 0x1e1   :  { %1615 = vadd.xlane.f32.xlu0 %v1614_v31  ;;  %v1514_v31 = vld [vmem:[#allocation2 + $0x60] sm:$0xff] }
 0x1e3   :  { %1660 = vadd.xlane.f32.xlu1 %v1659_v46 }
 0x1e5   :  { %1597 = vadd.xlane.f32.xlu0 %v1596_v0 }
 0x1e7   :  { %1624 = vadd.xlane.f32.xlu1 %v1623_v39 }
 0x1e9   :  { %1651 = vadd.xlane.f32.xlu0 %v1650_v44 }
 0x1eb   :  { %1606 = vadd.xlane.f32.xlu1 %v1605_v10  ;;  %v1516_v10 = vld [vmem:[#allocation2 + $0x70] sm:$0xff] }
 0x254   :  { %v1544_v24 = vpop.xlane.xlu1 %1543 }
 0x255   :  { %v1664_v48 = vadd.f32 %v1544_v24, %v1504_v37 }
 0x256   :  { %v1526_v30 = vpop.xlane.xlu0 %1525 }
 0x257   :  { %1681 = vst.msk [vmem:[#allocation2 + $0x10] sm:$0xff] %vm22_vm1, %v1664_v48  ;;  %v1662_v8 = vadd.f32 %v1526_v30, %v1502_v20  ;;  %v1511_v20 = vld [vmem:[#allocation2 + $0x48] sm:$0xff] }
 0x258   :  { %v1553_v33 = vpop.xlane.xlu1 %1552 }
 0x259   :  { %1679 = vst.msk [vmem:[#allocation2] sm:$0xff] %vm22_vm1, %v1662_v8  ;;  %v1665_v34 = vadd.f32 %v1553_v33, %v1505_v13 }
 0x25a   :  { %v1535_v61 = vpop.xlane.xlu0 %1534 }
 0x25b   :  { %1682 = vst.msk [vmem:[#allocation2 + $0x18] sm:$0xff] %vm22_vm1, %v1665_v34  ;;  %v1663_v63 = vadd.f32 %v1535_v61, %v1503_v38 }
 0x25d   :  { %1680 = vst.msk [vmem:[#allocation2 + $0x8] sm:$0xff] %vm22_vm1, %v1663_v63 }
 0x25e   :  { %v1580_v12 = vpop.xlane.xlu0 %1579  ;;  %v1700_v28 = vld [vmem:[#allocation2 + $0x10] sm:$0xff] }
 0x25f   :  { %v1668_v40 = vadd.f32 %v1580_v12, %v1508_v51  ;;  %v1716_v11 = vmul.f32 0.0012755102, %v1700_v28 }
 0x260   :  { %v1589_v35 = vpop.xlane.xlu1 %1588  ;;  %v1698_v22 = vld [vmem:[#allocation2] sm:$0xff] }
 0x261   :  { %1685 = vst.msk [vmem:[#allocation2 + $0x30] sm:$0xff] %vm22_vm1, %v1668_v40  ;;  %v1669_v50 = vadd.f32 %v1589_v35, %v1509_v2  ;;  %1854 = vperm.xlu1 %3146, %v1716_v11   ;;  %v1714_v4 = vmul.f32 0.0012755102, %v1698_v22 }
 0x262   :  { %v1562_v55 = vpop.xlane.xlu0 %1561  ;;  %v1701_v57 = vld [vmem:[#allocation2 + $0x18] sm:$0xff] }
 0x263   :  { %1686 = vst.msk [vmem:[#allocation2 + $0x38] sm:$0xff] %vm22_vm1, %v1669_v50  ;;  %v1666_v19 = vadd.f32 %v1562_v55, %v1506_v3  ;;  %1844 = vperm.xlu0 %3147, %v1714_v4   ;;  %v1717_v21 = vmul.f32 0.0012755102, %v1701_v57 }
 0x264   :  { %v1571_v26 = vpop.xlane.xlu1 %1570  ;;  %v1699_v45 = vld [vmem:[#allocation2 + $0x8] sm:$0xff] }
 0x265   :  { %1683 = vst.msk [vmem:[#allocation2 + $0x20] sm:$0xff] %vm22_vm1, %v1666_v19  ;;  %v1667_v9 = vadd.f32 %v1571_v26, %v1507_v6  ;;  %1859 = vperm.xlu1 %3146, %v1717_v21   ;;  %v1715_v46 = vmul.f32 0.0012755102, %v1699_v45  ;;  %v1745_v45 = vld [vmem:[%s6827_s4 + $0x78] sm:$0xff] }
 0x266   :  { %v1634_v47 = vpop.xlane.xlu0 %1633 }
 0x267   :  { %1684 = vst.msk [vmem:[#allocation2 + $0x28] sm:$0xff] %vm22_vm1, %v1667_v9  ;;  %v1674_v1 = vadd.f32 %v1634_v47, %v1514_v31  ;;  %v1744_v31 = vld [vmem:[%s6827_s4 + $0x70] sm:$0xff]  ;;  %v1746_v9 = vld [vmem:[%s6827_s4 + $0x80] sm:$0xff]  ;;  %v1747_v47 = vld [vmem:[%s6827_s4 + $0x88] sm:$0xff] }
 0x268   :  { %v1643_v16 = vpop.xlane.xlu1 %1642  ;;  %v1704_v49 = vld [vmem:[#allocation2 + $0x30] sm:$0xff] }
 0x269   :  { %1691 = vst.msk [vmem:[#allocation2 + $0x60] sm:$0xff] %vm22_vm1, %v1674_v1  ;;  %v1675_v7 = vadd.f32 %v1643_v16, %v1515_v18  ;;  %1849 = vperm.xlu1 %3146, %v1715_v46   ;;  %v1720_v52 = vmul.f32 0.0012755102, %v1704_v49  ;;  %v1750_v18 = vld [vmem:[%s6827_s4 + $0xa0] sm:$0xff] }
 0x26a   :  { %v1616_v27 = vpop.xlane.xlu0 %1615  ;;  %v1705_v22 = vld [vmem:[#allocation2 + $0x38] sm:$0xff] }
 0x26b   :  { %1692 = vst.msk [vmem:[#allocation2 + $0x68] sm:$0xff] %vm22_vm1, %v1675_v7  ;;  %v1672_v0 = vadd.f32 %v1616_v27, %v1512_v62  ;;  %v1721_v50 = vmul.f32 0.0012755102, %v1705_v22 }
 0x26c   :  { %v1661_v25 = vpop.xlane.xlu1 %1660  ;;  %v1702_v12 = vld [vmem:[#allocation2 + $0x20] sm:$0xff] }
 0x26d   :  { %1689 = vst.msk [vmem:[#allocation2 + $0x50] sm:$0xff] %vm22_vm1, %v1672_v0  ;;  %v1677_v39 = vadd.f32 %v1661_v25, %v1517_v41  ;;  %1874 = vperm.xlu1 %3146, %v1720_v52   ;;  %v1718_v40 = vmul.f32 0.0012755102, %v1702_v12  ;;  %v1730_v0 = vld [vmem:[%s6827_s4] sm:$0xff]  ;;  %v1752_v12 = vld [vmem:[%s6827_s4 + $0xb0] sm:$0xff] }
 0x26e   :  { %v1598_v59 = vpop.xlane.xlu0 %1597  ;;  %v1703_v4 = vld [vmem:[#allocation2 + $0x28] sm:$0xff] }
 0x26f   :  { %1694 = vst.msk [vmem:[#allocation2 + $0x78] sm:$0xff] %vm22_vm1, %v1677_v39  ;;  %v1670_v23 = vadd.f32 %v1598_v59, %v1510_v43  ;;  %v1719_v55 = vmul.f32 0.0012755102, %v1703_v4  ;;  %v1731_v43 = vld [vmem:[%s6827_s4 + $0x8] sm:$0xff]  ;;  %v1732_v39 = vld [vmem:[%s6827_s4 + $0x10] sm:$0xff] }
 0x270   :  { %v1625_v44 = vpop.xlane.xlu1 %1624  ;;  %v1710_v11 = vld [vmem:[#allocation2 + $0x60] sm:$0xff] }
 0x271   :  { %1687 = vst.msk [vmem:[#allocation2 + $0x40] sm:$0xff] %vm22_vm1, %v1670_v23  ;;  %v1673_v37 = vadd.f32 %v1625_v44, %v1513_v17  ;;  %v1726_v3 = vmul.f32 0.0012755102, %v1710_v11 }
 0x272   :  { %v1652_v24 = vpop.xlane.xlu0 %1651  ;;  %v1711_v48 = vld [vmem:[#allocation2 + $0x68] sm:$0xff] }
 0x273   :  { %1690 = vst.msk [vmem:[#allocation2 + $0x58] sm:$0xff] %vm22_vm1, %v1673_v37  ;;  %v1676_v30 = vadd.f32 %v1652_v24, %v1516_v10  ;;  %v1727_v13 = vmul.f32 0.0012755102, %v1711_v48 }
 0x274   :  { %v1607_v8 = vpop.xlane.xlu1 %1606  ;;  %v1708_v6 = vld [vmem:[#allocation2 + $0x50] sm:$0xff] }
 0x275   :  { %1693 = vst.msk [vmem:[#allocation2 + $0x70] sm:$0xff] %vm22_vm1, %v1676_v30  ;;  %v1671_v33 = vadd.f32 %v1607_v8, %v1511_v20  ;;  %1909 = vperm.xlu0 %3147, %v1727_v13   ;;  %v1724_v57 = vmul.f32 0.0012755102, %v1708_v6  ;;  %v1736_v20 = vld [vmem:[%s6827_s4 + $0x30] sm:$0xff] }
 0x276   :  { %v1713_v28 = vld [vmem:[#allocation2 + $0x78] sm:$0xff] }
 0x277   :  { %1688 = vst.msk [vmem:[#allocation2 + $0x48] sm:$0xff] %vm22_vm1, %v1671_v33  ;;  %v1729_v35 = vmul.f32 0.0012755102, %v1713_v28 }
 0x278   :  { %v1706_v19 = vld [vmem:[#allocation2 + $0x40] sm:$0xff] }
 0x279   :  { %v1722_v21 = vmul.f32 0.0012755102, %v1706_v19 }
 0x27a   :  { %v1709_v38 = vld [vmem:[#allocation2 + $0x58] sm:$0xff] }
 0x27b   :  { %v1725_v34 = vmul.f32 0.0012755102, %v1709_v38 }
 0x27c   :  { %v1712_v61 = vld [vmem:[#allocation2 + $0x70] sm:$0xff] }
 0x27d   :  { %1899 = vperm.xlu0 %3147, %v1725_v34   ;;  %v1728_v63 = vmul.f32 0.0012755102, %v1712_v61 }
 0x27e   :  { %v1707_v51 = vld [vmem:[#allocation2 + $0x48] sm:$0xff] }
 0x27f   :  { %1914 = vperm.xlu1 %3146, %v1728_v63   ;;  %v1723_v2 = vmul.f32 0.0012755102, %v1707_v51  ;;  %v1751_v51 = vld [vmem:[%s6827_s4 + $0xa8] sm:$0xff] }
 0x281   :  { %1889 = vperm.xlu0 %3147, %v1723_v2  }
 0x283   :  { %1864 = vperm.xlu1 %3146, %v1718_v40   ;;  %v1753_v40 = vld [vmem:[%s6827_s4 + $0xb8] sm:$0xff] }
 0x285   :  { %1919 = vperm.xlu0 %3147, %v1729_v35  }
 0x287   :  { %1904 = vperm.xlu1 %3146, %v1726_v3  }
 0x28b   :  { %1879 = vperm.xlu1 %3146, %v1721_v50   ;;  %v1754_v50 = vld [vmem:[%s6827_s4 + $0xc0] sm:$0xff] }
 0x28f   :  { %1869 = vperm.xlu1 %3146, %v1719_v55  }
 0x293   :  { %1894 = vperm.xlu1 %3146, %v1724_v57  }
 0x297   :  { %1884 = vperm.xlu1 %3146, %v1722_v21   ;;  %v1757_v21 = vld [vmem:[%s6827_s4 + $0xd8] sm:$0xff] }
 0x2dc   :  { %v1855_v26 = vpop.permute.xlu1 %1854 }
 0x2dd   :  { %v5315_v1 = vsub.f32 %v1744_v31, %v1855_v26  ;;  %v5317_v46 = vsub.f32 %v1745_v45, %v1855_v26  ;;  %v5319_v16 = vsub.f32 %v1746_v9, %v1855_v26  ;;  %v5321_v49 = vsub.f32 %v1747_v47, %v1855_v26 }
 0x2de   :  { %v1845_v62 = vpop.permute.xlu0 %1844  ;;  %v5323_v7 = vsub.f32 %v1750_v18, %v1855_v26  ;;  %v5333_v52 = vsub.f32 %v5047_v53, %v1855_v26  ;;  %v5336_v25 = vsub.f32 %v5075_v60, %v1855_v26  ;;  %v1733_v53 = vld [vmem:[%s6827_s4 + $0x18] sm:$0xff] }
 0x2df   :  { %v2048_v27 = vmul.f32 %v5315_v1, %v5315_v1  ;;  %v2049_v41 = vmul.f32 %v5317_v46, %v5317_v46  ;;  %v5344_v59 = vsub.f32 %v1730_v0, %v1845_v62  ;;  %v2050_v23 = vmul.f32 %v5319_v16, %v5319_v16  ;;  %v1738_v0 = vld [vmem:[%s6827_s4 + $0x40] sm:$0xff] }
 0x2e0   :  { %v1860_v17 = vpop.permute.xlu1 %1859  ;;  %v5351_v60 = vsub.f32 %v1731_v43, %v1845_v62  ;;  %v5353_v10 = vsub.f32 %v1732_v39, %v1845_v62  ;;  %v2051_v37 = vmul.f32 %v5321_v49, %v5321_v49  ;;  %v2054_v24 = vmul.f32 %v5323_v7, %v5323_v7 }
 0x2e1   :  { %v2164_v44 = vadd.f32 %v2049_v41, %v2048_v27  ;;  %v5362_v48 = vsub.f32 %v1733_v53, %v1845_v62  ;;  %v5365_v30 = vsub.f32 %v5051_v32, %v1845_v62  ;;  %v5367_v8 = vsub.f32 %v1736_v20, %v1845_v62 }
 0x2e2   :  { %v2034_v33 = vmul.f32 %v5344_v59, %v5344_v59  ;;  %v2035_v38 = vmul.f32 %v5351_v60, %v5351_v60  ;;  %v2052_v34 = vmul.f32 %v5333_v52, %v5333_v52  ;;  %v2053_v61 = vmul.f32 %v5336_v25, %v5336_v25 }
 0x2e3   :  { %v2165_v13 = vadd.f32 %v2164_v44, %v2050_v23  ;;  %v5378_v63 = vsub.f32 %v5085_v58, %v1845_v62  ;;  %v2036_v32 = vmul.f32 %v5353_v10, %v5353_v10  ;;  %v5391_v11 = vsub.f32 %v1751_v51, %v1860_v17  ;;  %v1739_v23 = vld [vmem:[%s6827_s4 + $0x48] sm:$0xff] }
 0x2e4   :  { %v2146_v28 = vadd.f32 %v2035_v38, %v2034_v33  ;;  %v5393_v58 = vsub.f32 %v1752_v12, %v1860_v17  ;;  %v2169_v35 = vsel %vm1395_vm2, %v2054_v24, 0.0  ;;  %v2037_v3 = vmul.f32 %v5362_v48, %v5362_v48  ;;  %v1850_v55 = vpop.permute.xlu1 %1849  ;;  %v1743_v51 = vld [vmem:[%s6827_s4 + $0x68] sm:$0xff] }
 0x2e5   :  { %v2166_v2 = vadd.f32 %v2165_v13, %v2051_v37  ;;  %v2038_v22 = vmul.f32 %v5365_v30, %v5365_v30  ;;  %v5403_v4 = vsub.f32 %v1753_v40, %v1860_v17  ;;  %v2040_v57 = vmul.f32 %v5367_v8, %v5367_v8 }
 0x2e6   :  { %v2147_v19 = vadd.f32 %v2146_v28, %v2036_v32  ;;  %v5410_v26 = vsub.f32 %v1754_v50, %v1860_v17  ;;  %v5413_v31 = vsub.f32 %v5079_v42, %v1860_v17  ;;  %v5415_v45 = vsub.f32 %v1757_v21, %v1860_v17  ;;  %v1737_v42 = vld [vmem:[%s6827_s4 + $0x38] sm:$0xff]  ;;  %v1772_v21 = vld [vmem:[%s6827_s4 + $0x150] sm:$0xff] }
 0x2e7   :  { %v2167_v6 = vadd.f32 %v2166_v2, %v2052_v34  ;;  %v2055_v9 = vmul.f32 %v5391_v11, %v5391_v11  ;;  %v2056_v47 = vmul.f32 %v5393_v58, %v5393_v58  ;;  %v2039_v62 = vmul.f32 %v5378_v63, %v5378_v63  ;;  %v1740_v34 = vld [vmem:[%s6827_s4 + $0x50] sm:$0xff] }
 0x2e8   :  { %v2148_v27 = vadd.f32 %v2147_v19, %v2037_v3  ;;  %v5424_v41 = vsub.f32 %v5112_v5, %v1860_v17  ;;  %v2057_v43 = vmul.f32 %v5403_v4, %v5403_v4  ;;  %v5437_v44 = vsub.f32 %v1737_v42, %v1850_v55 }
 0x2e9   :  { %v2168_v18 = vadd.f32 %v2167_v6, %v2053_v61  ;;  %v2173_v39 = vadd.f32 %v2056_v47, %v2055_v9  ;;  %v5439_v5 = vsub.f32 %v1738_v0, %v1850_v55  ;;  %v2151_v37 = vsel %vm1395_vm2, %v2040_v57, 0.0  ;;  %v1875_v61 = vpop.permute.xlu1 %1874  ;;  %v1773_v9 = vld [vmem:[%s6827_s4 + $0x158] sm:$0xff] }
 0x2ea   :  { %v2149_v53 = vadd.f32 %v2148_v27, %v2038_v22  ;;  %v5442_v24 = vsub.f32 %v1739_v23, %v1850_v55  ;;  %v2058_v20 = vmul.f32 %v5410_v26, %v5410_v26  ;;  %v2059_v13 = vmul.f32 %v5413_v31, %v5413_v31 }
 0x2eb   :  { %v2170_v17 = vadd.f32 %v2169_v35, %v2168_v18  ;;  %v2061_v33 = vmul.f32 %v5415_v45, %v5415_v45  ;;  %v2174_v38 = vadd.f32 %v2173_v39, %v2057_v43  ;;  %v5456_v12 = vsub.f32 %v1740_v34, %v1850_v55 }
 0x2ec   :  { %v2150_v32 = vadd.f32 %v2149_v53, %v2039_v62  ;;  %v2041_v2 = vmul.f32 %v5437_v44, %v5437_v44  ;;  %v2042_v28 = vmul.f32 %v5439_v5, %v5439_v5  ;;  %v2060_v40 = vmul.f32 %v5424_v41, %v5424_v41 }
 0x2ed   :  { %2171 = vadd.xlane.f32.xlu0 %v2170_v17  ;;  %v2175_v35 = vadd.f32 %v2174_v38, %v2058_v20  ;;  %v5465_v3 = vsub.f32 %v5100_v15, %v1850_v55  ;;  %v5467_v22 = vsub.f32 %v1743_v51, %v1850_v55  ;;  %v5470_v6 = vsub.f32 %v5127_v56, %v1850_v55  ;;  %v1774_v15 = vld [vmem:[%s6827_s4 + $0x160] sm:$0xff]  ;;  %v1775_v17 = vld [vmem:[%s6827_s4 + $0x168] sm:$0xff] }
 0x2ee   :  { %v2152_v50 = vadd.f32 %v2151_v37, %v2150_v32  ;;  %v2043_v57 = vmul.f32 %v5442_v24, %v5442_v24  ;;  %v2155_v19 = vadd.f32 %v2042_v28, %v2041_v2  ;;  %v5483_v18 = vsub.f32 %v1772_v21, %v1875_v61  ;;  %v1821_v28 = vld [vmem:[%s6827_s4 + $0x2d8] sm:$0xff] }
 0x2ef   :  { %v2176_v47 = vadd.f32 %v2175_v35, %v2059_v13  ;;  %v5485_v56 = vsub.f32 %v1773_v9, %v1875_v61  ;;  %v5487_v55 = vsub.f32 %v1774_v15, %v1875_v61  ;;  %v2178_v62 = vsel %vm1395_vm2, %v2061_v33, 0.0  ;;  %v1778_v13 = vld [vmem:[%s6827_s4 + $0x180] sm:$0xff] }
 0x2f0   :  { %6979 = vst [vmem:[#allocation3_spill] sm:$0xff] %v5483_v18  ;;  %2153 = vadd.xlane.f32.xlu1 %v2152_v50  ;;  %v2044_v27 = vmul.f32 %v5456_v12, %v5456_v12  ;;  %v2156_v42 = vadd.f32 %v2155_v19, %v2043_v57  ;;  %v1910_v0 = vpop.permute.xlu0 %1909  ;;  %v2045_v39 = vmul.f32 %v5465_v3, %v5465_v3 }
 0x2f1   :  { %6980 = vst [vmem:[#allocation14_spill] sm:$0xff] %v5485_v56  ;;  %6981 = vst [vmem:[#allocation16_spill] sm:$0xff] %v5487_v55  ;;  %v2177_v43 = vadd.f32 %v2176_v47, %v2060_v40  ;;  %v2047_v23 = vmul.f32 %v5467_v22, %v5467_v22  ;;  %v2076_v53 = vmul.f32 %v5483_v18, %v5483_v18  ;;  %v1822_v40 = vld [vmem:[%s6827_s4 + $0x2e0] sm:$0xff] }
 0x2f2   :  { %v2046_v37 = vmul.f32 %v5470_v6, %v5470_v6  ;;  %v2157_v20 = vadd.f32 %v2156_v42, %v2044_v27  ;;  %v5506_v33 = vsub.f32 %v1775_v17, %v1875_v61  ;;  %v2077_v38 = vmul.f32 %v5485_v56, %v5485_v56  ;;  %v1827_v27 = vld [vmem:[%s6827_s4 + $0x308] sm:$0xff]  ;;  %v1824_v17 = vld [vmem:[%s6827_s4 + $0x2f0] sm:$0xff] }
 0x2f3   :  { %v2179_v34 = vadd.f32 %v2178_v62, %v2177_v43  ;;  %v5511_v32 = vsub.f32 %v5131_v29, %v1875_v61  ;;  %v5513_v51 = vsub.f32 %v1778_v13, %v1875_v61  ;;  %v2078_v2 = vmul.f32 %v5487_v55, %v5487_v55  ;;  %v1823_v62 = vld [vmem:[%s6827_s4 + $0x2e8] sm:$0xff] }
 0x2f4   :  { %6982 = vst [vmem:[#allocation15_spill] sm:$0xff] %v5506_v33  ;;  %v2158_v35 = vadd.f32 %v2157_v20, %v2045_v39  ;;  %v2200_v50 = vadd.f32 %v2077_v38, %v2076_v53  ;;  %v5523_v57 = vsub.f32 %v1821_v28, %v1910_v0  ;;  %v5525_v19 = vsub.f32 %v1822_v40, %v1910_v0  ;;  %v1825_v53 = vld [vmem:[%s6827_s4 + $0x2f8] sm:$0xff] }
 0x2f5   :  { %6983 = vst [vmem:[#allocation8_spill] sm:$0xff] %v5511_v32  ;;  %6984 = vst [vmem:[#allocation10_spill] sm:$0xff] %v5513_v51  ;;  %2180 = vadd.xlane.f32.xlu1 %v2179_v34  ;;  %v2160_v29 = vsel %vm1395_vm2, %v2047_v23, 0.0  ;;  %v5529_v9 = vsub.f32 %v5153_v36, %v1875_v61  ;;  %v2079_v15 = vmul.f32 %v5506_v33, %v5506_v33 }
 0x2f6   :  { %6985 = vst [vmem:[#allocation23_spill] sm:$0xff] %v5523_v57  ;;  %6986 = vst [vmem:[#allocation13_spill] sm:$0xff] %v5525_v19  ;;  %v2159_v21 = vadd.f32 %v2158_v35, %v2046_v37  ;;  %v2201_v47 = vadd.f32 %v2200_v50, %v2078_v2  ;;  %v2080_v42 = vmul.f32 %v5511_v32, %v5511_v32  ;;  %v1826_v37 = vld [vmem:[%s6827_s4 + $0x300] sm:$0xff] }
 0x2f7   :  { %6987 = vst [vmem:[#allocation28_spill] sm:$0xff] %v5529_v9  ;;  %v2082_v43 = vmul.f32 %v5513_v51, %v5513_v51  ;;  %v5543_v36 = vsub.f32 %v1823_v62, %v1910_v0  ;;  %v5545_v61 = vsub.f32 %v1827_v27, %v1910_v0  ;;  %v2125_v20 = vmul.f32 %v5523_v57, %v5523_v57  ;;  %v1828_v62 = vld [vmem:[%s6827_s4 + $0x310] sm:$0xff] }
 0x2f8   :  { %v2161_v39 = vadd.f32 %v2160_v29, %v2159_v21  ;;  %v2202_v23 = vadd.f32 %v2201_v47, %v2079_v15  ;;  %v2126_v13 = vmul.f32 %v5525_v19, %v5525_v19  ;;  %v5562_v34 = vsub.f32 %v1824_v17, %v1910_v0  ;;  %v1758_v21 = vld [vmem:[%s6827_s4 + $0xe0] sm:$0xff]  ;;  %v1832_v51 = vld [vmem:[%s6827_s4 + $0x330] sm:$0xff]  ;;  %v5769_v18 = vpop.permute.xlu0 %1899 }
 0x2f9   :  { %6988 = vst [vmem:[#allocation9_spill] sm:$0xff] %v5543_v36  ;;  %6989 = vst [vmem:[#allocation29_spill] sm:$0xff] %v5545_v61  ;;  %v5564_v2 = vsub.f32 %v1825_v53, %v1910_v0  ;;  %v5566_v28 = vsub.f32 %v1826_v37, %v1910_v0  ;;  %v2081_v40 = vmul.f32 %v5529_v9, %v5529_v9  ;;  %v2205_v50 = vsel %vm1395_vm2, %v2082_v43, 0.0  ;;  %v1760_v43 = vld [vmem:[%s6827_s4 + $0xf0] sm:$0xff]  ;;  %v1829_v53 = vld [vmem:[%s6827_s4 + $0x318] sm:$0xff] }
 0x2fa   :  { %v5560_v38 = vpop.permute.xlu1 %1914  ;;  %6990 = vst [vmem:[#allocation21_spill] sm:$0xff] %v5562_v34  ;;  %2162 = vadd.xlane.f32.xlu0 %v2161_v39  ;;  %v2203_v35 = vadd.f32 %v2202_v23, %v2080_v42  ;;  %v2127_v15 = vmul.f32 %v5543_v36, %v5543_v36  ;;  %v2131_v47 = vmul.f32 %v5545_v61, %v5545_v61  ;;  %v1759_v42 = vld [vmem:[%s6827_s4 + $0xe8] sm:$0xff] }
 0x2fb   :  { %6991 = vst [vmem:[#allocation6_spill] sm:$0xff] %v5564_v2  ;;  %6992 = vst [vmem:[#allocation25_spill] sm:$0xff] %v5566_v28  ;;  %v2263_v0 = vadd.f32 %v2126_v13, %v2125_v20  ;;  %v2128_v39 = vmul.f32 %v5562_v34, %v5562_v34  ;;  %v5591_v23 = vmul.f32 %v5564_v2, %v5564_v2  ;;  %v1761_v13 = vld [vmem:[%s6827_s4 + $0xf8] sm:$0xff] }
 0x2fc   :  { %v2204_v29 = vadd.f32 %v2203_v35, %v2081_v40  ;;  %v5595_v17 = vmul.f32 %v5566_v28, %v5566_v28  ;;  %v5601_v37 = vsub.f32 %v1828_v62, %v5560_v38  ;;  %v1764_v40 = vld [vmem:[%s6827_s4 + $0x110] sm:$0xff]  ;;  %v1830_v62 = vld [vmem:[%s6827_s4 + $0x320] sm:$0xff] }
 0x2fd   :  { %v5626_v34 = vsub.f32 %v1830_v62, %v5560_v38 }
 0x2fe   :  { %v1865_v27 = vpop.permute.xlu1 %1864  ;;  %v2206_v20 = vadd.f32 %v2205_v50, %v2204_v29  ;;  %v5623_v29 = vsub.f32 %v1829_v53, %v5560_v38  ;;  %v2264_v53 = vadd.f32 %v2263_v0, %v2127_v15  ;;  %v1815_v15 = vld [vmem:[%s6827_s4 + $0x2a8] sm:$0xff] }
 0x2ff   :  { %v5609_v35 = vsub.f32 %v1758_v21, %v1865_v27  ;;  %v5611_v61 = vsub.f32 %v1759_v42, %v1865_v27  ;;  %v5613_v28 = vsub.f32 %v1760_v43, %v1865_v27  ;;  %v5618_v2 = vsub.f32 %v1761_v13, %v1865_v27  ;;  %v1762_v21 = vld [vmem:[%s6827_s4 + $0x100] sm:$0xff]  ;;  %v1763_v42 = vld [vmem:[%s6827_s4 + $0x108] sm:$0xff] }
 0x300   :  { %v5620_v50 = vsub.f32 %v1764_v40, %v1865_v27  ;;  %2207 = vadd.xlane.f32.xlu0 %v2206_v20  ;;  %v5639_v40 = vsel %vm1395_vm2, %v2131_v47, 0.0  ;;  %v1831_v20 = vld [vmem:[%s6827_s4 + $0x328] sm:$0xff]  ;;  %v5644_v36 = vsub.f32 %v1762_v21, %v1865_v27  ;;  %v5646_v19 = vsub.f32 %v1763_v42, %v1865_v27  ;;  %v1816_v47 = vld [vmem:[%s6827_s4 + $0x2b0] sm:$0xff]  ;;  %v1817_v21 = vld [vmem:[%s6827_s4 + $0x2b8] sm:$0xff] }
 0x301   :  { %6993 = vst [vmem:[#allocation27_spill] sm:$0xff] %v5609_v35  ;;  %6994 = vst [vmem:[#allocation12_spill] sm:$0xff] %v5611_v61  ;;  %v2062_v43 = vmul.f32 %v5609_v35, %v5609_v35  ;;  %v2063_v13 = vmul.f32 %v5611_v61, %v5611_v61  ;;  %v2064_v57 = vmul.f32 %v5613_v28, %v5613_v28  ;;  %v1814_v61 = vld [vmem:[%s6827_s4 + $0x2a0] sm:$0xff] }
 0x302   :  { %6995 = vst [vmem:[#allocation17_spill] sm:$0xff] %v5613_v28  ;;  %6996 = vst [vmem:[#allocation4_spill] sm:$0xff] %v5618_v2  ;;  %v1905_v62 = vpop.permute.xlu1 %1904  ;;  %v5660_v0 = vsub.f32 %v1831_v20, %v5560_v38  ;;  %v2065_v9 = vmul.f32 %v5618_v2, %v5618_v2  ;;  %v5681_v20 = vsub.f32 %v1832_v51, %v5560_v38 }
 0x303   :  { %6997 = vst [vmem:[#allocation22_spill] sm:$0xff] %v5620_v50  ;;  %6998 = vst [vmem:[#allocation24_spill] sm:$0xff] %v5644_v36  ;;  %v2182_v27 = vadd.f32 %v2063_v13, %v2062_v43  ;;  %v5665_v42 = vsub.f32 %v1814_v61, %v1905_v62  ;;  %v5667_v28 = vsub.f32 %v1815_v15, %v1905_v62  ;;  %v1820_v15 = vld [vmem:[%s6827_s4 + $0x2d0] sm:$0xff] }
 0x304   :  { %6999 = vst [vmem:[#allocation7_spill] sm:$0xff] %v5646_v19  ;;  %v5669_v35 = vsub.f32 %v1816_v47, %v1905_v62  ;;  %v2068_v43 = vmul.f32 %v5620_v50, %v5620_v50  ;;  %v5678_v13 = vsub.f32 %v1817_v21, %v1905_v62  ;;  %v5687_v47 = vsub.f32 %v5180_v54, %v1905_v62  ;;  %v1779_v54 = vld [vmem:[%s6827_s4 + $0x188] sm:$0xff] }
 0x305   :  { %7000 = vst [vmem:[#allocation18_spill] sm:$0xff] %v5665_v42  ;;  %7001 = vst [vmem:[#allocation11_spill] sm:$0xff] %v5667_v28  ;;  %v2183_v61 = vadd.f32 %v2182_v27, %v2064_v57  ;;  %v2118_v32 = vmul.f32 %v5665_v42, %v5665_v42  ;;  %v2119_v2 = vmul.f32 %v5667_v28, %v5667_v28 }
 0x306   :  { %7002 = vst [vmem:[#allocation19_spill] sm:$0xff] %v5669_v35  ;;  %7003 = vst [vmem:[#allocation5_spill] sm:$0xff] %v5678_v13  ;;  %v1880_v50 = vpop.permute.xlu1 %1879  ;;  %v2066_v21 = vmul.f32 %v5644_v36, %v5644_v36  ;;  %v2067_v51 = vmul.f32 %v5646_v19, %v5646_v19  ;;  %v5697_v57 = vsub.f32 %v1820_v15, %v1905_v62  ;;  %v1780_v36 = vld [vmem:[%s6827_s4 + $0x190] sm:$0xff]  ;;  %v1781_v15 = vld [vmem:[%s6827_s4 + $0x198] sm:$0xff]  ;;  %v2187_v55 = vsel %vm1395_vm2, %v2068_v43, 0.0 }
 0x307   :  { %7004 = vst [vmem:[#allocation26_spill] sm:$0xff] %v5687_v47  ;;  %v5702_v27 = vadd.f32 %v2264_v53, %v2128_v39  ;;  %v2184_v33 = vadd.f32 %v2183_v61, %v2065_v9  ;;  %v2120_v42 = vmul.f32 %v5669_v35, %v5669_v35  ;;  %v2254_v28 = vadd.f32 %v2119_v2, %v2118_v32 }
 0x308   :  { %7005 = vst [vmem:[#allocation30_spill] sm:$0xff] %v5697_v57  ;;  %v5712_v19 = vsub.f32 %v1779_v54, %v1880_v50  ;;  %v5716_v39 = vsub.f32 %v5215_v14, %v1905_v62  ;;  %v5718_v9 = vsub.f32 %v1780_v36, %v1880_v50  ;;  %v5720_v53 = vsub.f32 %v1781_v15, %v1880_v50  ;;  %v1782_v54 = vld [vmem:[%s6827_s4 + $0x1a0] sm:$0xff]  ;;  %v1783_v36 = vld [vmem:[%s6827_s4 + $0x1a8] sm:$0xff] }
 0x309   :  { %v2185_v32 = vadd.f32 %v2184_v33, %v2066_v21  ;;  %v2121_v2 = vmul.f32 %v5678_v13, %v5678_v13  ;;  %v2122_v61 = vmul.f32 %v5687_v47, %v5687_v47  ;;  %v2255_v35 = vadd.f32 %v2254_v28, %v2120_v42  ;;  %v1785_v33 = vld [vmem:[%s6827_s4 + $0x1b8] sm:$0xff] }
 0x30a   :  { %7006 = vst [vmem:[#allocation20_spill] sm:$0xff] %v5712_v19  ;;  %7007 = vst [vmem:[#allocation31_spill] sm:$0xff] %v5716_v39  ;;  %v1870_v43 = vpop.permute.xlu1 %1869  ;;  %v2124_v14 = vmul.f32 %v5697_v57, %v5697_v57  ;;  %v5737_v62 = vsub.f32 %v1782_v54, %v1880_v50  ;;  %v2083_v28 = vmul.f32 %v5712_v19, %v5712_v19  ;;  %v1765_v13 = vld [vmem:[%s6827_s4 + $0x118] sm:$0xff]  ;;  %v1784_v19 = vld [vmem:[%s6827_s4 + $0x1b0] sm:$0xff] }
 0x30b   :  { %7008 = vst [vmem:[#allocation32_spill] sm:$0xff] %v5718_v9  ;;  %7009 = vst [vmem:[#allocation33_spill] sm:$0xff] %v5720_v53  ;;  %v2084_v42 = vmul.f32 %v5718_v9, %v5718_v9  ;;  %v2186_v21 = vadd.f32 %v2185_v32, %v2067_v51  ;;  %v2256_v15 = vadd.f32 %v2255_v35, %v2121_v2  ;;  %v1766_v35 = vld [vmem:[%s6827_s4 + $0x120] sm:$0xff] }
 0x30c   :  { %7010 = vst [vmem:[#allocation34_spill] sm:$0xff] %v5737_v62  ;;  %v5743_v47 = vsub.f32 %v1783_v36, %v1880_v50  ;;  %v5745_v57 = vsub.f32 %v1785_v33, %v1880_v50  ;;  %v2123_v54 = vmul.f32 %v5716_v39, %v5716_v39  ;;  %v2085_v9 = vmul.f32 %v5720_v53, %v5720_v53  ;;  %v1767_v39 = vld [vmem:[%s6827_s4 + $0x128] sm:$0xff] }
 0x30d   :  { %v2209_v51 = vadd.f32 %v2084_v42, %v2083_v28  ;;  %v5760_v32 = vsub.f32 %v1765_v13, %v1870_v43  ;;  %v2188_v2 = vadd.f32 %v2187_v55, %v2186_v21  ;;  %v2257_v36 = vadd.f32 %v2256_v15, %v2122_v61  ;;  %v1768_v21 = vld [vmem:[%s6827_s4 + $0x130] sm:$0xff]  ;;  %v1770_v15 = vld [vmem:[%s6827_s4 + $0x140] sm:$0xff] }
 0x30e   :  { %7011 = vst [vmem:[#allocation35_spill] sm:$0xff] %v5743_v47  ;;  %7012 = vst [vmem:[#allocation36_spill] sm:$0xff] %v5745_v57  ;;  %v5762_v33 = vsub.f32 %v1784_v19, %v1880_v50  ;;  %v5767_v56 = vsub.f32 %v1766_v35, %v1870_v43  ;;  %v2259_v28 = vsel %vm1395_vm2, %v2124_v14, 0.0  ;;  %v2086_v42 = vmul.f32 %v5737_v62, %v5737_v62  ;;  %v1895_v55 = vpop.permute.xlu1 %1894  ;;  %v1769_v14 = vld [vmem:[%s6827_s4 + $0x138] sm:$0xff] }
 0x30f   :  { %7013 = vst [vmem:[#allocation37_spill] sm:$0xff] %v5760_v32  ;;  %v2210_v53 = vadd.f32 %v2209_v51, %v2085_v9  ;;  %v5774_v13 = vsub.f32 %v1767_v39, %v1870_v43  ;;  %2189 = vadd.xlane.f32.xlu0 %v2188_v2  ;;  %v2258_v19 = vadd.f32 %v2257_v36, %v2123_v54  ;;  %v1771_v54 = vld [vmem:[%s6827_s4 + $0x148] sm:$0xff] }
 0x310   :  { %7014 = vst [vmem:[#allocation38_spill] sm:$0xff] %v5762_v33  ;;  %7015 = vst [vmem:[#allocation39_spill] sm:$0xff] %v5767_v56  ;;  %v2087_v50 = vmul.f32 %v5743_v47, %v5743_v47  ;;  %v2089_v61 = vmul.f32 %v5745_v57, %v5745_v57  ;;  %v2069_v39 = vmul.f32 %v5760_v32, %v5760_v32  ;;  %v1800_v57 = vld [vmem:[%s6827_s4 + $0x230] sm:$0xff] }
 0x311   :  { %7016 = vst [vmem:[#allocation40_spill] sm:$0xff] %v5774_v13  ;;  %v2211_v9 = vadd.f32 %v2210_v53, %v2086_v42  ;;  %v5794_v51 = vsub.f32 %v1768_v21, %v1870_v43  ;;  %v5796_v35 = vsub.f32 %v1769_v14, %v1870_v43  ;;  %v2070_v2 = vmul.f32 %v5767_v56, %v5767_v56 }
 0x312   :  { %v2260_v36 = vadd.f32 %v2259_v28, %v2258_v19  ;;  %v2088_v32 = vmul.f32 %v5762_v33, %v5762_v33  ;;  %v5802_v53 = vsub.f32 %v1770_v15, %v1870_v43  ;;  %v5804_v42 = vsub.f32 %v1771_v54, %v1870_v43  ;;  %v1801_v28 = vld [vmem:[%s6827_s4 + $0x238] sm:$0xff]  ;;  %v1802_v19 = vld [vmem:[%s6827_s4 + $0x240] sm:$0xff] }
 0x313   :  { %7017 = vst [vmem:[#allocation41_spill] sm:$0xff] %v5794_v51  ;;  %7018 = vst [vmem:[#allocation42_spill] sm:$0xff] %v5796_v35  ;;  %v2212_v47 = vadd.f32 %v2211_v9, %v2087_v50  ;;  %v2071_v21 = vmul.f32 %v5774_v13, %v5774_v13  ;;  %v2191_v14 = vadd.f32 %v2070_v2, %v2069_v39  ;;  %v2214_v43 = vsel %vm1395_vm2, %v2089_v61, 0.0  ;;  %v5826_v39 = vpop.permute.xlu0 %1889  ;;  %v1803_v61 = vld [vmem:[%s6827_s4 + $0x248] sm:$0xff] }
 0x314   :  { %7019 = vst [vmem:[#allocation43_spill] sm:$0xff] %v5802_v53  ;;  %7020 = vst [vmem:[#allocation44_spill] sm:$0xff] %v5804_v42  ;;  %v5817_v15 = vsub.f32 %v1800_v57, %v1895_v55  ;;  %2261 = vadd.xlane.f32.xlu0 %v2260_v36  ;;  %v2266_v50 = vadd.f32 %v5702_v27, %v5591_v23  ;;  %v5822_v9 = vsub.f32 %v1801_v28, %v1895_v55  ;;  %v1885_v36 = vpop.permute.xlu1 %1884  ;;  %v1804_v27 = vld [vmem:[%s6827_s4 + $0x250] sm:$0xff] }
 0x315   :  { %v5824_v54 = vsub.f32 %v1802_v19, %v1895_v55  ;;  %v2213_v2 = vadd.f32 %v2212_v47, %v2088_v32  ;;  %v2072_v13 = vmul.f32 %v5794_v51, %v5794_v51  ;;  %v2073_v57 = vmul.f32 %v5796_v35, %v5796_v35 }
 0x316   :  { %7021 = vst [vmem:[#allocation45_spill] sm:$0xff] %v5817_v15  ;;  %7022 = vst [vmem:[#allocation46_spill] sm:$0xff] %v5822_v9  ;;  %v2192_v56 = vadd.f32 %v2191_v14, %v2071_v21  ;;  %v2074_v23 = vmul.f32 %v5802_v53, %v5802_v53  ;;  %v5840_v47 = vsub.f32 %v1803_v61, %v1895_v55  ;;  %v1805_v53 = vld [vmem:[%s6827_s4 + $0x258] sm:$0xff]  ;;  %v1806_v61 = vld [vmem:[%s6827_s4 + $0x260] sm:$0xff] }
 0x317   :  { %7023 = vst [vmem:[#allocation47_spill] sm:$0xff] %v5824_v54  ;;  %v2104_v32 = vmul.f32 %v5817_v15, %v5817_v15  ;;  %v2105_v21 = vmul.f32 %v5822_v9, %v5822_v9  ;;  %v2215_v14 = vadd.f32 %v2214_v43, %v2213_v2  ;;  %v2075_v28 = vmul.f32 %v5804_v42, %v5804_v42  ;;  %v1920_v33 = vpop.permute.xlu0 %1919 }
 0x318   :  { %7024 = vst [vmem:[#allocation48_spill] sm:$0xff] %v5840_v47  ;;  %v2193_v19 = vadd.f32 %v2192_v56, %v2072_v13  ;;  %v5854_v35 = vsub.f32 %v1804_v27, %v1895_v55  ;;  %v5856_v51 = vsub.f32 %v1805_v53, %v1895_v55  ;;  %v5858_v15 = vsub.f32 %v1806_v61, %v1895_v55  ;;  %v1786_v56 = vld [vmem:[%s6827_s4 + $0x1c0] sm:$0xff]  ;;  %v1787_v13 = vld [vmem:[%s6827_s4 + $0x1c8] sm:$0xff]  ;;  %v1788_v27 = vld [vmem:[%s6827_s4 + $0x1d0] sm:$0xff] }
 0x319   :  { %v2106_v43 = vmul.f32 %v5824_v54, %v5824_v54  ;;  %v2236_v2 = vadd.f32 %v2105_v21, %v2104_v32  ;;  %2216 = vadd.xlane.f32.xlu1 %v2215_v14  ;;  %v5871_v55 = vsub.f32 %v1786_v56, %v1885_v36  ;;  %v5873_v61 = vsub.f32 %v1787_v13, %v1885_v36 }
 0x31a   :  { %7025 = vst [vmem:[#allocation49_spill] sm:$0xff] %v5854_v35  ;;  %7026 = vst [vmem:[#allocation50_spill] sm:$0xff] %v5856_v51  ;;  %v2194_v53 = vadd.f32 %v2193_v19, %v2073_v57  ;;  %v5875_v54 = vsub.f32 %v1788_v27, %v1885_v36  ;;  %v2267_v32 = vadd.f32 %v2266_v50, %v5595_v17  ;;  %v2196_v14 = vsel %vm1395_vm2, %v2075_v28, 0.0  ;;  %v1789_v19 = vld [vmem:[%s6827_s4 + $0x1d8] sm:$0xff] }
 0x31b   :  { %7027 = vst [vmem:[#allocation51_spill] sm:$0xff] %v5858_v15  ;;  %7028 = vst [vmem:[#allocation52_spill] sm:$0xff] %v5871_v55  ;;  %v2107_v21 = vmul.f32 %v5840_v47, %v5840_v47  ;;  %v2237_v9 = vadd.f32 %v2236_v2, %v2106_v43  ;;  %v2132_v42 = vmul.f32 %v5601_v37, %v5601_v37 }
 0x31c   :  { %7029 = vst [vmem:[#allocation53_spill] sm:$0xff] %v5873_v61  ;;  %7030 = vst [vmem:[#allocation54_spill] sm:$0xff] %v5875_v54  ;;  %v2195_v62 = vadd.f32 %v2194_v53, %v2074_v23  ;;  %v2108_v57 = vmul.f32 %v5854_v35, %v5854_v35  ;;  %v2090_v17 = vmul.f32 %v5871_v55, %v5871_v55  ;;  %v1790_v23 = vld [vmem:[%s6827_s4 + $0x1e0] sm:$0xff] }
 0x31d   :  { %v2109_v50 = vmul.f32 %v5856_v51, %v5856_v51  ;;  %v2238_v43 = vadd.f32 %v2237_v9, %v2107_v21  ;;  %v5895_v2 = vsub.f32 %v1789_v19, %v1885_v36  ;;  %v2091_v28 = vmul.f32 %v5873_v61, %v5873_v61  ;;  %v1835_v9 = vld [vmem:[%s6827_s4 + $0x348] sm:$0xff]  ;;  %v1836_v21 = vld [vmem:[%s6827_s4 + $0x350] sm:$0xff] }
 0x31e   :  { %v2197_v56 = vadd.f32 %v2196_v14, %v2195_v62  ;;  %v2110_v13 = vmul.f32 %v5858_v15, %v5858_v15  ;;  %v5901_v27 = vsub.f32 %v1790_v23, %v1885_v36  ;;  %v2092_v53 = vmul.f32 %v5875_v54, %v5875_v54  ;;  %v1792_v62 = vld [vmem:[%s6827_s4 + $0x1f0] sm:$0xff]  ;;  %v1837_v23 = vld [vmem:[%s6827_s4 + $0x358] sm:$0xff] }
 0x31f   :  { %7031 = vst [vmem:[#allocation55_spill] sm:$0xff] %v5895_v2  ;;  %v2239_v19 = vadd.f32 %v2238_v43, %v2108_v57  ;;  %v2218_v14 = vadd.f32 %v2091_v28, %v2090_v17  ;;  %v5917_v61 = vsub.f32 %v1835_v9, %v1920_v33  ;;  %v5919_v54 = vsub.f32 %v1836_v21, %v1920_v33  ;;  %v1791_v57 = vld [vmem:[%s6827_s4 + $0x1e8] sm:$0xff] }
 0x320   :  { %7032 = vst [vmem:[#allocation56_spill] sm:$0xff] %v5901_v27  ;;  %2198 = vadd.xlane.f32.xlu1 %v2197_v56  ;;  %v2269_v55 = vadd.f32 %v5639_v40, %v2267_v32  ;;  %v5925_v43 = vsub.f32 %v1792_v62, %v1885_v36  ;;  %v5927_v15 = vsub.f32 %v1837_v23, %v1920_v33  ;;  %v1838_v40 = vld [vmem:[%s6827_s4 + $0x360] sm:$0xff]  ;;  %v2241_v32 = vsel %vm1395_vm2, %v2110_v13, 0.0 }
 0x321   :  { %7033 = vst [vmem:[#allocation57_spill] sm:$0xff] %v5917_v61  ;;  %7034 = vst [vmem:[#allocation58_spill] sm:$0xff] %v5919_v54  ;;  %v2133_v17 = vmul.f32 %v5623_v29, %v5623_v29  ;;  %v2240_v28 = vadd.f32 %v2239_v19, %v2109_v50  ;;  %v5931_v51 = vsub.f32 %v1791_v57, %v1885_v36  ;;  %v1841_v57 = vld [vmem:[%s6827_s4 + $0x378] sm:$0xff] }
 0x322   :  { %7035 = vst [vmem:[#allocation59_spill] sm:$0xff] %v5925_v43  ;;  %7036 = vst [vmem:[#allocation60_spill] sm:$0xff] %v5927_v15  ;;  %v2093_v9 = vmul.f32 %v5895_v2, %v5895_v2  ;;  %v2219_v56 = vadd.f32 %v2218_v14, %v2092_v53  ;;  %v5939_v21 = vsub.f32 %v1838_v40, %v1920_v33  ;;  %v1839_v53 = vld [vmem:[%s6827_s4 + $0x368] sm:$0xff] }
 0x323   :  { %7037 = vst [vmem:[#allocation61_spill] sm:$0xff] %v5931_v51  ;;  %v2139_v62 = vmul.f32 %v5917_v61, %v5917_v61  ;;  %v2140_v50 = vmul.f32 %v5919_v54, %v5919_v54  ;;  %v2242_v36 = vadd.f32 %v2241_v32, %v2240_v28  ;;  %v2094_v19 = vmul.f32 %v5901_v27, %v5901_v27 }
 0x324   :  { %7038 = vst [vmem:[#allocation62_spill] sm:$0xff] %v5939_v21  ;;  %v2220_v23 = vadd.f32 %v2219_v56, %v2093_v9  ;;  %v2134_v13 = vmul.f32 %v5626_v34, %v5626_v34  ;;  %2270 = vadd.xlane.f32.xlu1 %v2269_v55  ;;  %v2096_v14 = vmul.f32 %v5925_v43, %v5925_v43  ;;  %v1840_v55 = vld [vmem:[%s6827_s4 + $0x370] sm:$0xff] }
 0x325   :  { %v5957_v28 = vsub.f32 %v1839_v53, %v1920_v33  ;;  %v2141_v9 = vmul.f32 %v5927_v15, %v5927_v15  ;;  %v2281_v56 = vadd.f32 %v2140_v50, %v2139_v62  ;;  %2243 = vadd.xlane.f32.xlu0 %v2242_v36  ;;  %v2095_v40 = vmul.f32 %v5931_v51, %v5931_v51  ;;  %v1834_v53 = vld [vmem:[%s6827_s4 + $0x340] sm:$0xff]  ;;  %v1833_v36 = vld [vmem:[%s6827_s4 + $0x338] sm:$0xff] }
 0x326   :  { %v2221_v32 = vadd.f32 %v2220_v23, %v2094_v19  ;;  %v5966_v54 = vsub.f32 %v1841_v57, %v1920_v33  ;;  %v2272_v61 = vadd.f32 %v2133_v17, %v2132_v42  ;;  %v5971_v43 = vsub.f32 %v1840_v55, %v1920_v33 }
 0x327   :  { %7039 = vst [vmem:[#allocation63_spill] sm:$0xff] %v5957_v28  ;;  %v2142_v62 = vmul.f32 %v5939_v21, %v5939_v21  ;;  %v2282_v50 = vadd.f32 %v2281_v56, %v2141_v9  ;;  %v5979_v19 = vsub.f32 %v1834_v53, %v5560_v38  ;;  %v5982_v57 = vsub.f32 %v1833_v36, %v5560_v38 }
 0x328   :  { %7040 = vst [vmem:[#allocation64_spill] sm:$0xff] %v5966_v54  ;;  %7041 = vst [vmem:[#allocation65_spill] sm:$0xff] %v5971_v43  ;;  %v2222_v23 = vadd.f32 %v2221_v32, %v2095_v40  ;;  %v2135_v42 = vmul.f32 %v5660_v0, %v5660_v0  ;;  %v2273_v33 = vadd.f32 %v2272_v61, %v2134_v13  ;;  %v2223_v17 = vsel %vm1395_vm2, %v2096_v14, 0.0 }
 0x329   :  { %v2143_v9 = vmul.f32 %v5957_v28, %v5957_v28  ;;  %v2283_v56 = vadd.f32 %v2282_v50, %v2142_v62  ;;  %v2145_v21 = vmul.f32 %v5966_v54, %v5966_v54  ;;  %v2136_v40 = vmul.f32 %v5681_v20, %v5681_v20 }
 0x32a   :  { %v2224_v55 = vadd.f32 %v2223_v17, %v2222_v23  ;;  %v2274_v32 = vadd.f32 %v2273_v33, %v2135_v42  ;;  %v2144_v38 = vmul.f32 %v5971_v43, %v5971_v43  ;;  %v2138_v61 = vmul.f32 %v5979_v19, %v5979_v19  ;;  %v2578_v33 = vld [vmem:[%s6828_s3] sm:$0xff] }
 0x32b   :  { %v2284_v53 = vadd.f32 %v2283_v56, %v2143_v9  ;;  %v2137_v13 = vmul.f32 %v5982_v57, %v5982_v57  ;;  %v2286_v50 = vsel %vm1395_vm2, %v2145_v21, 0.0  ;;  %v2579_v9 = vld [vmem:[%s6828_s3 + $0x8] sm:$0xff]  ;;  %v1808_v56 = vld [vmem:[%s6827_s4 + $0x270] sm:$0xff]  ;;  %v1798_v43 = vld [vmem:[%s6827_s4 + $0x220] sm:$0xff] }
 0x32c   :  { %2225 = vadd.xlane.f32.xlu0 %v2224_v55  ;;  %v2275_v14 = vadd.f32 %v2274_v32, %v2136_v40  ;;  %v2277_v17 = vsel %vm1395_vm2, %v2138_v61, 0.0  ;;  %v1807_v21 = vld [vmem:[%s6827_s4 + $0x268] sm:$0xff]  ;;  %v6017_v40 = vsub.f32 %v1808_v56, %v5769_v18  ;;  %v2581_v32 = vld [vmem:[%s6828_s3 + $0x18] sm:$0xff] }
 0x32d   :  { %v2285_v62 = vadd.f32 %v2284_v53, %v2144_v38  ;;  %v6014_v55 = vsub.f32 %v1807_v21, %v5769_v18  ;;  %v1793_v38 = vld [vmem:[%s6827_s4 + $0x1f8] sm:$0xff]  ;;  %v1794_v53 = vld [vmem:[%s6827_s4 + $0x200] sm:$0xff]  ;;  %v1795_v56 = vld [vmem:[%s6827_s4 + $0x208] sm:$0xff] }
 0x32e   :  { %v2276_v36 = vadd.f32 %v2275_v14, %v2137_v13  ;;  %7043 = vst [vmem:[#allocation67_spill] sm:$0xff] %v6017_v40  ;;  %v2112_v13 = vmul.f32 %v6017_v40, %v6017_v40  ;;  %v6033_v14 = vsub.f32 %v1793_v38, %v5826_v39  ;;  %v1810_v21 = vld [vmem:[%s6827_s4 + $0x280] sm:$0xff] }
 0x32f   :  { %v2287_v23 = vadd.f32 %v2286_v50, %v2285_v62  ;;  %7042 = vst [vmem:[#allocation66_spill] sm:$0xff] %v6014_v55  ;;  %v2111_v61 = vmul.f32 %v6014_v55, %v6014_v55  ;;  %v6036_v62 = vsub.f32 %v1794_v53, %v5826_v39  ;;  %v2583_v50 = vld [vmem:[%s6828_s3 + $0x28] sm:$0xff]  ;;  %v6066_v53 = vsub.f32 %v1795_v56, %v5826_v39 }
 0x330   :  { %v2278_v42 = vadd.f32 %v2277_v17, %v2276_v36  ;;  %7044 = vst [vmem:[#allocation68_spill] sm:$0xff] %v6033_v14  ;;  %v1809_v36 = vld [vmem:[%s6827_s4 + $0x278] sm:$0xff] }
 0x331   :  { %2288 = vadd.xlane.f32.xlu1 %v2287_v23  ;;  %7045 = vst [vmem:[#allocation69_spill] sm:$0xff] %v6036_v62  ;;  %v6045_v23 = vsub.f32 %v1809_v36, %v5769_v18  ;;  %v2245_v17 = vadd.f32 %v2112_v13, %v2111_v61  ;;  %7048 = vst [vmem:[#allocation72_spill] sm:$0xff] %v6066_v53  ;;  %v1811_v36 = vld [vmem:[%s6827_s4 + $0x288] sm:$0xff] }
 0x332   :  { %2279 = vadd.xlane.f32.xlu0 %v2278_v42  ;;  %v2097_v42 = vmul.f32 %v6033_v14, %v6033_v14  ;;  %v6078_v54 = vsub.f32 %v1811_v36, %v5769_v18  ;;  %v1812_v36 = vld [vmem:[%s6827_s4 + $0x290] sm:$0xff] }
 0x333   :  { %7046 = vst [vmem:[#allocation70_spill] sm:$0xff] %v6045_v23  ;;  %v2113_v38 = vmul.f32 %v6045_v23, %v6045_v23 }
 0x334   :  { %7049 = vst [vmem:[#allocation73_spill] sm:$0xff] %v6078_v54 }
 0x335   :  { %v2246_v61 = vadd.f32 %v2245_v17, %v2113_v38  ;;  %v2589_v38 = vld [vmem:[%s6828_s3 + $0x58] sm:$0xff] }
 0x342   :  { %2596 = vperm.xlu1 %3146, %v2578_v33   ;;  %v2098_v33 = vmul.f32 %v6036_v62, %v6036_v62  ;;  %v1797_v62 = vld [vmem:[%s6827_s4 + $0x218] sm:$0xff] }
 0x344   :  { %v2227_v13 = vadd.f32 %v2098_v33, %v2097_v42  ;;  %v2099_v42 = vmul.f32 %v6066_v53, %v6066_v53 }
 0x346   :  { %v2228_v56 = vadd.f32 %v2227_v13, %v2099_v42  ;;  %v6105_v13 = vsub.f32 %v1797_v62, %v5826_v39 }
 0x348   :  { %2601 = vperm.xlu0 %3147, %v2579_v9   ;;  %v2585_v9 = vld [vmem:[%s6828_s3 + $0x38] sm:$0xff]  ;;  %7052 = vst [vmem:[#allocation76_spill] sm:$0xff] %v6105_v13 }
 0x34c   :  { %2611 = vperm.xlu0 %3147, %v2581_v32   ;;  %v6061_v32 = vsub.f32 %v1810_v21, %v5769_v18  ;;  %v1796_v21 = vld [vmem:[%s6827_s4 + $0x210] sm:$0xff] }
 0x34d   :  { %v6083_v17 = vsub.f32 %v1796_v21, %v5826_v39  ;;  %v1813_v21 = vld [vmem:[%s6827_s4 + $0x298] sm:$0xff] }
 0x34e   :  { %7047 = vst [vmem:[#allocation71_spill] sm:$0xff] %v6061_v32  ;;  %v6110_v42 = vsub.f32 %v1813_v21, %v5769_v18 }
 0x34f   :  { %7050 = vst [vmem:[#allocation74_spill] sm:$0xff] %v6083_v17 }
 0x350   :  { %2621 = vperm.xlu0 %3147, %v2583_v50   ;;  %v2587_v50 = vld [vmem:[%s6828_s3 + $0x48] sm:$0xff]  ;;  %7053 = vst [vmem:[#allocation77_spill] sm:$0xff] %v6110_v42 }
 0x354   :  { %2631 = vperm.xlu0 %3147, %v2585_v9   ;;  %v2114_v9 = vmul.f32 %v6061_v32, %v6061_v32 }
 0x356   :  { %v2247_v33 = vadd.f32 %v2246_v61, %v2114_v9  ;;  %v2115_v61 = vmul.f32 %v6078_v54, %v6078_v54  ;;  %v2100_v9 = vmul.f32 %v6083_v17, %v6083_v17  ;;  %v1799_v17 = vld [vmem:[%s6827_s4 + $0x228] sm:$0xff] }
 0x358   :  { %2641 = vperm.xlu0 %3147, %v2587_v50   ;;  %v6100_v50 = vsub.f32 %v1812_v36, %v5769_v18  ;;  %v2248_v53 = vadd.f32 %v2247_v33, %v2115_v61  ;;  %v2229_v14 = vadd.f32 %v2228_v56, %v2100_v9  ;;  %v2591_v36 = vld [vmem:[%s6828_s3 + $0x68] sm:$0xff]  ;;  %v6124_v18 = vsub.f32 %v1798_v43, %v5826_v39 }
 0x359   :  { %v2101_v33 = vmul.f32 %v6105_v13, %v6105_v13  ;;  %v2117_v56 = vmul.f32 %v6110_v42, %v6110_v42 }
 0x35a   :  { %7051 = vst [vmem:[#allocation75_spill] sm:$0xff] %v6100_v50  ;;  %v2116_v62 = vmul.f32 %v6100_v50, %v6100_v50  ;;  %7054 = vst [vmem:[#allocation78_spill] sm:$0xff] %v6124_v18  ;;  %v2102_v9 = vmul.f32 %v6124_v18, %v6124_v18 }
 0x35b   :  { %v2230_v61 = vadd.f32 %v2229_v14, %v2101_v33  ;;  %v2250_v28 = vsel %vm1395_vm2, %v2117_v56, 0.0  ;;  %v2586_v33 = vld [vmem:[%s6828_s3 + $0x40] sm:$0xff] }
 0x35c   :  { %2651 = vperm.xlu0 %3147, %v2589_v38   ;;  %v6131_v38 = vsub.f32 %v1799_v17, %v5826_v39  ;;  %v2249_v21 = vadd.f32 %v2248_v53, %v2116_v62  ;;  %v2580_v39 = vld [vmem:[%s6828_s3 + $0x10] sm:$0xff]  ;;  %v2582_v17 = vld [vmem:[%s6828_s3 + $0x20] sm:$0xff] }
 0x35d   :  { %v2231_v54 = vadd.f32 %v2230_v61, %v2102_v9  ;;  %v2588_v61 = vld [vmem:[%s6828_s3 + $0x50] sm:$0xff] }
 0x35e   :  { %7055 = vst [vmem:[#allocation79_spill] sm:$0xff] %v6131_v38  ;;  %v2103_v43 = vmul.f32 %v6131_v38, %v6131_v38  ;;  %v2251_v50 = vadd.f32 %v2250_v28, %v2249_v21 }
 0x360   :  { %2661 = vperm.xlu0 %3147, %v2591_v36   ;;  %v2232_v13 = vsel %vm1395_vm2, %v2103_v43, 0.0 }
 0x361   :  { %v2233_v42 = vadd.f32 %v2232_v13, %v2231_v54  ;;  %v2584_v54 = vld [vmem:[%s6828_s3 + $0x30] sm:$0xff] }
 0x366   :  { %2252 = vadd.xlane.f32.xlu1 %v2251_v50 }
 0x36a   :  { %2234 = vadd.xlane.f32.xlu1 %v2233_v42 }
 0x376   :  { %v2172_v14 = vpop.xlane.xlu0 %2171 }
 0x377   :  { %v2308_v53 = vmul.f32 0.0012755102, %v2172_v14  ;;  %v2590_v14 = vld [vmem:[%s6828_s3 + $0x60] sm:$0xff] }
 0x379   :  { %v2340_v36 = vadd.f32 1e-05, %v2308_v53  ;;  %v2154_v62 = vpop.xlane.xlu1 %2153  ;;  %v2324_v53 = vld [vmem:[%s6829_s2 + $0x10] sm:$0xff] }
 0x37a   :  { %v2306_v28 = vmul.f32 0.0012755102, %v2154_v62 }
 0x37b   :  { %2606 = vperm.xlu1 %3146, %v2580_v39   ;;  %3148 = vrsqrt.f32 %v2340_v36  ;;  %v2322_v36 = vld [vmem:[%s6829_s2] sm:$0xff] }
 0x37c   :  { %v2338_v50 = vadd.f32 1e-05, %v2306_v28 }
 0x37e   :  { %3150 = vrsqrt.f32 %v2338_v50  ;;  %v2181_v13 = vpop.xlane.xlu1 %2180 }
 0x37f   :  { %2616 = vperm.xlu1 %3146, %v2582_v17   ;;  %v2309_v42 = vmul.f32 0.0012755102, %v2181_v13 }
 0x381   :  { %v2341_v56 = vadd.f32 1e-05, %v2309_v42  ;;  %v2325_v42 = vld [vmem:[%s6829_s2 + $0x18] sm:$0xff] }
 0x383   :  { %2626 = vperm.xlu1 %3146, %v2584_v54   ;;  %3152 = vrsqrt.f32 %v2341_v56  ;;  %v2163_v21 = vpop.xlane.xlu0 %2162 }
 0x384   :  { %v2307_v9 = vmul.f32 0.0012755102, %v2163_v21  ;;  %v2323_v21 = vld [vmem:[%s6829_s2 + $0x8] sm:$0xff] }
 0x386   :  { %v2339_v43 = vadd.f32 1e-05, %v2307_v9 }
 0x387   :  { %2636 = vperm.xlu1 %3146, %v2586_v33  }
 0x388   :  { %v3149_v39 = vpop.eup %3148  ;;  %3154 = vrsqrt.f32 %v2339_v43  ;;  %v2328_v43 = vld [vmem:[%s6829_s2 + $0x30] sm:$0xff] }
 0x389   :  { %v2208_v17 = vpop.xlane.xlu0 %2207  ;;  %v2372_v54 = vmul.f32 %v3149_v39, %v2324_v53 }
 0x38a   :  { %v2312_v62 = vmul.f32 0.0012755102, %v2208_v17 }
 0x38b   :  { %2646 = vperm.xlu1 %3146, %v2588_v61   ;;  %v3151_v28 = vpop.eup %3150 }
 0x38c   :  { %v2344_v50 = vadd.f32 1e-05, %v2312_v62  ;;  %v2370_v13 = vmul.f32 %v3151_v28, %v2322_v36 }
 0x38e   :  { %3156 = vrsqrt.f32 %v2344_v50  ;;  %2388 = vperm.xlu0 %3147, %v2370_v13  }
 0x38f   :  { %2656 = vperm.xlu1 %3146, %v2590_v14  }
 0x390   :  { %v3153_v33 = vpop.eup %3152 }
 0x391   :  { %v2373_v56 = vmul.f32 %v3153_v33, %v2325_v42  ;;  %v2329_v42 = vld [vmem:[%s6829_s2 + $0x38] sm:$0xff] }
 0x393   :  { %2398 = vperm.xlu1 %3146, %v2372_v54   ;;  %2403 = vperm.xlu0 %3147, %v2373_v56  }
 0x395   :  { %v3155_v61 = vpop.eup %3154 }
 0x396   :  { %v2371_v9 = vmul.f32 %v3155_v61, %v2323_v21 }
 0x398   :  { %2393 = vperm.xlu1 %3146, %v2371_v9   ;;  %v2190_v17 = vpop.xlane.xlu0 %2189 }
 0x399   :  { %v2310_v9 = vmul.f32 0.0012755102, %v2190_v17 }
 0x39b   :  { %v3157_v39 = vpop.eup %3156  ;;  %v2342_v18 = vadd.f32 1e-05, %v2310_v9 }
 0x39c   :  { %v2376_v14 = vmul.f32 %v3157_v39, %v2328_v43 }
 0x39d   :  { %v2262_v28 = vpop.xlane.xlu0 %2261 }
 0x39e   :  { %2418 = vperm.xlu1 %3146, %v2376_v14   ;;  %v2318_v32 = vmul.f32 0.0012755102, %v2262_v28 }
 0x3a0   :  { %v2350_v55 = vadd.f32 1e-05, %v2318_v32 }
 0x3a2   :  { %v2217_v53 = vpop.xlane.xlu1 %2216 }
 0x3a3   :  { %v2313_v36 = vmul.f32 0.0012755102, %v2217_v53 }
 0x3a5   :  { %v2345_v62 = vadd.f32 1e-05, %v2313_v36 }
 0x3a7   :  { %3158 = vrsqrt.f32 %v2345_v62 }
 0x3a9   :  { %v2199_v54 = vpop.xlane.xlu1 %2198 }
 0x3aa   :  { %v2311_v61 = vmul.f32 0.0012755102, %v2199_v54 }
 0x3ac   :  { %v2343_v36 = vadd.f32 1e-05, %v2311_v61 }
 0x3ad   :  { %v2271_v13 = vpop.xlane.xlu1 %2270 }
 0x3ae   :  { %v2244_v50 = vpop.xlane.xlu0 %2243  ;;  %v2319_v62 = vmul.f32 0.0012755102, %v2271_v13  ;;  %v2337_v13 = vld [vmem:[%s6829_s2 + $0x78] sm:$0xff] }
 0x3b0   :  { %v2351_v40 = vadd.f32 1e-05, %v2319_v62 }
 0x3b4   :  { %v3159_v56 = vpop.eup %3158 }
 0x3b5   :  { %v2226_v33 = vpop.xlane.xlu0 %2225  ;;  %v2377_v21 = vmul.f32 %v3159_v56, %v2329_v42  ;;  %v2316_v42 = vmul.f32 0.0012755102, %v2244_v50  ;;  %v2326_v50 = vld [vmem:[%s6829_s2 + $0x20] sm:$0xff] }
 0x3b6   :  { %v2314_v54 = vmul.f32 0.0012755102, %v2226_v33 }
 0x3b7   :  { %2423 = vperm.xlu0 %3147, %v2377_v21   ;;  %v2348_v17 = vadd.f32 1e-05, %v2316_v42  ;;  %v2332_v42 = vld [vmem:[%s6829_s2 + $0x50] sm:$0xff] }
 0x3b8   :  { %v2346_v56 = vadd.f32 1e-05, %v2314_v54 }
 0x3ba   :  { %v2289_v43 = vpop.xlane.xlu1 %2288 }
 0x3bb   :  { %v2321_v39 = vmul.f32 0.0012755102, %v2289_v43  ;;  %v2280_v14 = vpop.xlane.xlu0 %2279  ;;  %v2335_v43 = vld [vmem:[%s6829_s2 + $0x68] sm:$0xff] }
 0x3bc   :  { %v2320_v53 = vmul.f32 0.0012755102, %v2280_v14  ;;  %v2334_v14 = vld [vmem:[%s6829_s2 + $0x60] sm:$0xff] }
 0x3bd   :  { %v2353_v38 = vadd.f32 1e-05, %v2321_v39 }
 0x3be   :  { %v2352_v23 = vadd.f32 1e-05, %v2320_v53 }
 0x3bf   :  { %3160 = vrsqrt.f32 %v2353_v38  ;;  %v2336_v38 = vld [vmem:[%s6829_s2 + $0x70] sm:$0xff] }
 0x3c0   :  { %3162 = vrsqrt.f32 %v2352_v23 }
 0x3c1   :  { %3164 = vrsqrt.f32 %v2343_v36 }
 0x3c2   :  { %3166 = vrsqrt.f32 %v2342_v18 }
 0x3c3   :  { %3168 = vrsqrt.f32 %v2351_v40 }
 0x3c4   :  { %3170 = vrsqrt.f32 %v2350_v55  ;;  %v2327_v55 = vld [vmem:[%s6829_s2 + $0x28] sm:$0xff] }
 0x3c5   :  { %3172 = vrsqrt.f32 %v2348_v17 }
 0x3c6   :  { %3174 = vrsqrt.f32 %v2346_v56  ;;  %v2330_v56 = vld [vmem:[%s6829_s2 + $0x40] sm:$0xff] }
 0x3cc   :  { %v3161_v23 = vpop.eup %3160 }
 0x3cd   :  { %v3163_v28 = vpop.eup %3162  ;;  %v2385_v21 = vmul.f32 %v3161_v23, %v2337_v13  ;;  %v6202_v23 = vpop.permute.xlu0 %2601 }
 0x3ce   :  { %v3165_v18 = vpop.eup %3164  ;;  %v2384_v32 = vmul.f32 %v3163_v28, %v2336_v38  ;;  %v2592_v38 = vld [vmem:[%s6828_s3 + $0x70] sm:$0xff]  ;;  %v6204_v28 = vpop.permute.xlu1 %2596 }
 0x3cf   :  { %v3167_v40 = vpop.eup %3166  ;;  %2463 = vperm.xlu0 %3147, %v2385_v21   ;;  %v2375_v33 = vmul.f32 %v3165_v18, %v2327_v55 }
 0x3d0   :  { %2458 = vperm.xlu1 %3146, %v2384_v32   ;;  %v3169_v61 = vpop.eup %3168  ;;  %v2374_v9 = vmul.f32 %v3167_v40, %v2326_v50 }
 0x3d1   :  { %v3171_v39 = vpop.eup %3170  ;;  %v2383_v53 = vmul.f32 %v3169_v61, %v2335_v43  ;;  %v6206_v21 = vpop.permute.xlu0 %2611 }
 0x3d2   :  { %v2382_v36 = vmul.f32 %v3171_v39, %v2334_v14  ;;  %v3173_v62 = vpop.eup %3172 }
 0x3d3   :  { %2413 = vperm.xlu0 %3147, %v2375_v33   ;;  %v2380_v17 = vmul.f32 %v3173_v62, %v2332_v42  ;;  %v3175_v54 = vpop.eup %3174 }
 0x3d4   :  { %2408 = vperm.xlu1 %3146, %v2374_v9   ;;  %v2378_v13 = vmul.f32 %v3175_v54, %v2330_v56  ;;  %v2331_v56 = vld [vmem:[%s6829_s2 + $0x48] sm:$0xff] }
 0x3d5   :  { %v6208_v55 = vpop.permute.xlu0 %2621 }
 0x3d7   :  { %2453 = vperm.xlu0 %3147, %v2383_v53  }
 0x3d8   :  { %2448 = vperm.xlu1 %3146, %v2382_v36   ;;  %v2333_v36 = vld [vmem:[%s6829_s2 + $0x58] sm:$0xff] }
 0x3d9   :  { %v6210_v9 = vpop.permute.xlu0 %2631 }
 0x3dc   :  { %2438 = vperm.xlu1 %3146, %v2380_v17  }
 0x3dd   :  { %v6214_v14 = vpop.permute.xlu0 %2641 }
 0x3de   :  { %7056 = vst [vmem:[#allocation80_spill] sm:$0xff] %v6214_v14 }
 0x3e0   :  { %2428 = vperm.xlu1 %3146, %v2378_v13  }
 0x3e1   :  { %v6221_v17 = vpop.permute.xlu0 %2651 }
 0x3e2   :  { %7057 = vst [vmem:[#allocation81_spill] sm:$0xff] %v6221_v17 }
 0x3e4   :  { %2666 = vperm.xlu1 %3146, %v2592_v38  }
 0x3ef   :  { %v2253_v18 = vpop.xlane.xlu1 %2252 }
 0x3f0   :  { %v2317_v32 = vmul.f32 0.0012755102, %v2253_v18 }
 0x3f2   :  { %v2349_v40 = vadd.f32 1e-05, %v2317_v32  ;;  %v6230_v32 = vpop.permute.xlu0 %2661 }
 0x3f3   :  { %v2235_v50 = vpop.xlane.xlu1 %2234 }
 0x3f4   :  { %3176 = vrsqrt.f32 %v2349_v40  ;;  %v2315_v33 = vmul.f32 0.0012755102, %v2235_v50  ;;  %v2593_v40 = vld [vmem:[%s6828_s3 + $0x78] sm:$0xff] }
 0x3f6   :  { %v2347_v61 = vadd.f32 1e-05, %v2315_v33 }
 0x3f7   :  { %v2607_v43 = vpop.permute.xlu1 %2606 }
 0x3f8   :  { %3178 = vrsqrt.f32 %v2347_v61 }
 0x3fb   :  { %v6212_v39 = vpop.permute.xlu1 %2616 }
 0x3ff   :  { %v6216_v53 = vpop.permute.xlu1 %2626 }
 0x401   :  { %v3177_v62 = vpop.eup %3176 }
 0x402   :  { %v2381_v42 = vmul.f32 %v3177_v62, %v2333_v36 }
 0x403   :  { %v6223_v54 = vpop.permute.xlu1 %2636 }
 0x404   :  { %7058 = vst [vmem:[#allocation82_spill] sm:$0xff] %v6223_v54  ;;  %2443 = vperm.xlu0 %3147, %v2381_v42  }
 0x405   :  { %v3179_v13 = vpop.eup %3178 }
 0x406   :  { %v2379_v38 = vmul.f32 %v3179_v13, %v2331_v56 }
 0x407   :  { %v6228_v18 = vpop.permute.xlu1 %2646 }
 0x408   :  { %7059 = vst [vmem:[#allocation83_spill] sm:$0xff] %v6228_v18  ;;  %2433 = vperm.xlu0 %3147, %v2379_v38  }
 0x409   :  { %v2389_v33 = vpop.permute.xlu0 %2388 }
 0x40a   :  { %v2466_v61 = vmul.f32 %v2389_v33, %v5344_v59  ;;  %v2467_v36 = vmul.f32 %v2389_v33, %v5351_v60  ;;  %v2468_v62 = vmul.f32 %v2389_v33, %v5353_v10  ;;  %v2469_v56 = vmul.f32 %v2389_v33, %v5362_v48 }
 0x40b   :  { %v6235_v50 = vpop.permute.xlu1 %2656  ;;  %v2470_v13 = vmul.f32 %v2389_v33, %v5365_v30  ;;  %v2471_v38 = vmul.f32 %v2389_v33, %v5378_v63  ;;  %v2472_v14 = vmul.f32 %v2389_v33, %v5367_v8 }
 0x40c   :  { %2671 = vperm.xlu0 %3147, %v2593_v40   ;;  %v2674_v30 = vadd.f32 %v6204_v28, %v2466_v61 }
 0x40f   :  { %v2399_v42 = vpop.permute.xlu1 %2398 }
 0x410   :  { %v2480_v17 = vmul.f32 %v2399_v42, %v5315_v1  ;;  %v2481_v40 = vmul.f32 %v2399_v42, %v5317_v46  ;;  %v2482_v15 = vmul.f32 %v2399_v42, %v5319_v16  ;;  %v2483_v59 = vmul.f32 %v2399_v42, %v5321_v49 }
 0x411   :  { %v2484_v60 = vmul.f32 %v2399_v42, %v5333_v52  ;;  %v2485_v10 = vmul.f32 %v2399_v42, %v5336_v25  ;;  %v2486_v48 = vmul.f32 %v2399_v42, %v5323_v7  ;;  %v2675_v46 = vadd.f32 %v6204_v28, %v2467_v36  ;;  %v2404_v52 = vpop.permute.xlu0 %2403 }
 0x412   :  { %v2688_v54 = vadd.f32 %v2607_v43, %v2480_v17  ;;  %v2689_v63 = vadd.f32 %v2607_v43, %v2481_v40  ;;  %v2690_v51 = vadd.f32 %v2607_v43, %v2482_v15  ;;  %v2691_v8 = vadd.f32 %v2607_v43, %v2483_v59 }
 0x413   :  { %v2692_v33 = vadd.f32 %v2607_v43, %v2484_v60  ;;  %v2693_v1 = vadd.f32 %v2607_v43, %v2485_v10  ;;  %v2694_v27 = vadd.f32 %v2607_v43, %v2486_v48  ;;  %v2676_v7 = vadd.f32 %v6204_v28, %v2468_v62  ;;  %v2394_v61 = vpop.permute.xlu1 %2393 }
 0x414   :  { %v2800_v16 = vmax.f32 %v2688_v54, 0.0  ;;  %v2801_v2 = vmax.f32 %v2689_v63, 0.0  ;;  %v2802_v49 = vmax.f32 %v2690_v51, 0.0  ;;  %v2803_v18 = vmax.f32 %v2691_v8, 0.0 }
 0x415   :  { %v2804_v35 = vmax.f32 %v2692_v33, 0.0  ;;  %v2805_v25 = vmax.f32 %v2693_v1, 0.0  ;;  %v2806_v47 = vmax.f32 %v2694_v27, 0.0  ;;  %v2677_v51 = vadd.f32 %v6204_v28, %v2469_v56 }
 0x416   :  { %2912 = vst [vmem:[%s6827_s4 + $0x70] sm:$0xff] %v2800_v16  ;;  %2913 = vst [vmem:[%s6827_s4 + $0x78] sm:$0xff] %v2801_v2  ;;  %v2678_v15 = vadd.f32 %v6204_v28, %v2470_v13  ;;  %v2679_v27 = vadd.f32 %v6204_v28, %v2471_v38  ;;  %v2680_v43 = vadd.f32 %v6204_v28, %v2472_v14  ;;  %v2786_v2 = vmax.f32 %v2674_v30, 0.0 }
 0x417   :  { %2914 = vst [vmem:[%s6827_s4 + $0x80] sm:$0xff] %v2802_v49  ;;  %2915 = vst [vmem:[%s6827_s4 + $0x88] sm:$0xff] %v2803_v18  ;;  %v2787_v17 = vmax.f32 %v2675_v46, 0.0  ;;  %v2788_v54 = vmax.f32 %v2676_v7, 0.0  ;;  %v2487_v18 = vmul.f32 %v2404_v52, %v5391_v11  ;;  %v2789_v28 = vmax.f32 %v2677_v51, 0.0 }
 0x418   :  { %2916 = vst [vmem:[%s6827_s4 + $0x90] sm:$0xff] %v2804_v35  ;;  %2917 = vst [vmem:[%s6827_s4 + $0x98] sm:$0xff] %v2805_v25  ;;  %v2790_v14 = vmax.f32 %v2678_v15, 0.0  ;;  %v2791_v36 = vmax.f32 %v2679_v27, 0.0  ;;  %v2792_v62 = vmax.f32 %v2680_v43, 0.0  ;;  %v2488_v35 = vmul.f32 %v2404_v52, %v5393_v58 }
 0x419   :  { %2918 = vst.msk [vmem:[%s6827_s4 + $0xa0] sm:$0xff] %vm1395_vm2, %v2806_v47  ;;  %2898 = vst [vmem:[%s6827_s4] sm:$0xff] %v2786_v2  ;;  %v2489_v11 = vmul.f32 %v2404_v52, %v5403_v4  ;;  %v2490_v47 = vmul.f32 %v2404_v52, %v5410_v26  ;;  %v2491_v42 = vmul.f32 %v2404_v52, %v5413_v31  ;;  %v7061_v2 = vld [vmem:[#allocation14_spill] sm:$0xff] }
 0x41a   :  { %2899 = vst [vmem:[%s6827_s4 + $0x8] sm:$0xff] %v2787_v17  ;;  %2900 = vst [vmem:[%s6827_s4 + $0x10] sm:$0xff] %v2788_v54  ;;  %v2492_v58 = vmul.f32 %v2404_v52, %v5424_v41  ;;  %v2493_v4 = vmul.f32 %v2404_v52, %v5415_v45  ;;  %v2695_v26 = vadd.f32 %v6206_v21, %v2487_v18 }
 0x41b   :  { %2901 = vst [vmem:[%s6827_s4 + $0x18] sm:$0xff] %v2789_v28  ;;  %2902 = vst [vmem:[%s6827_s4 + $0x20] sm:$0xff] %v2790_v14  ;;  %v2473_v31 = vmul.f32 %v2394_v61, %v5437_v44  ;;  %v2696_v56 = vadd.f32 %v6206_v21, %v2488_v35  ;;  %v2697_v13 = vadd.f32 %v6206_v21, %v2489_v11  ;;  %v2419_v44 = vpop.permute.xlu1 %2418  ;;  %v7062_v28 = vld [vmem:[#allocation16_spill] sm:$0xff] }
 0x41c   :  { %2903 = vst [vmem:[%s6827_s4 + $0x28] sm:$0xff] %v2791_v36  ;;  %2904 = vst.msk [vmem:[%s6827_s4 + $0x30] sm:$0xff] %vm1395_vm2, %v2792_v62  ;;  %v2698_v38 = vadd.f32 %v6206_v21, %v2490_v47  ;;  %v2699_v40 = vadd.f32 %v6206_v21, %v2491_v42  ;;  %v2700_v59 = vadd.f32 %v6206_v21, %v2492_v58  ;;  %v2807_v10 = vmax.f32 %v2695_v26, 0.0  ;;  %v7064_v62 = vld [vmem:[#allocation8_spill] sm:$0xff]  ;;  %v7066_v42 = vld [vmem:[#allocation10_spill] sm:$0xff] }
 0x41d   :  { %v2701_v60 = vadd.f32 %v6206_v21, %v2493_v4  ;;  %v2474_v41 = vmul.f32 %v2394_v61, %v5439_v5  ;;  %v2808_v45 = vmax.f32 %v2696_v56, 0.0  ;;  %v2809_v48 = vmax.f32 %v2697_v13, 0.0  ;;  %v7065_v11 = vld [vmem:[#allocation28_spill] sm:$0xff] }
 0x41e   :  { %v2810_v30 = vmax.f32 %v2698_v38, 0.0  ;;  %v2811_v63 = vmax.f32 %v2699_v40, 0.0  ;;  %v2812_v8 = vmax.f32 %v2700_v59, 0.0  ;;  %2919 = vst [vmem:[%s6827_s4 + $0xa8] sm:$0xff] %v2807_v10  ;;  %v2475_v1 = vmul.f32 %v2394_v61, %v5442_v24 }
 0x41f   :  { %v2813_v33 = vmax.f32 %v2701_v60, 0.0  ;;  %v2476_v46 = vmul.f32 %v2394_v61, %v5456_v12  ;;  %2920 = vst [vmem:[%s6827_s4 + $0xb0] sm:$0xff] %v2808_v45  ;;  %2921 = vst [vmem:[%s6827_s4 + $0xb8] sm:$0xff] %v2809_v48  ;;  %v2477_v5 = vmul.f32 %v2394_v61, %v5465_v3  ;;  %v2478_v24 = vmul.f32 %v2394_v61, %v5470_v6  ;;  %v7060_v6 = vld [vmem:[#allocation3_spill] sm:$0xff] }
 0x420   :  { %2922 = vst [vmem:[%s6827_s4 + $0xc0] sm:$0xff] %v2810_v30  ;;  %2923 = vst [vmem:[%s6827_s4 + $0xc8] sm:$0xff] %v2811_v63  ;;  %v2479_v12 = vmul.f32 %v2394_v61, %v5467_v22  ;;  %v2681_v21 = vadd.f32 %v6202_v23, %v2473_v31  ;;  %v2682_v16 = vadd.f32 %v6202_v23, %v2474_v41  ;;  %v7067_v63 = vld [vmem:[#allocation20_spill] sm:$0xff] }
 0x421   :  { %2924 = vst [vmem:[%s6827_s4 + $0xd0] sm:$0xff] %v2812_v8  ;;  %2925 = vst.msk [vmem:[%s6827_s4 + $0xd8] sm:$0xff] %vm1395_vm2, %v2813_v33  ;;  %v2683_v49 = vadd.f32 %v6202_v23, %v2475_v1  ;;  %v2684_v3 = vadd.f32 %v6202_v23, %v2476_v46  ;;  %v2508_v52 = vmul.f32 %v2419_v44, %v7060_v6  ;;  %v7068_v8 = vld [vmem:[#allocation32_spill] sm:$0xff]  ;;  %v7069_v1 = vld [vmem:[#allocation33_spill] sm:$0xff] }
 0x422   :  { %v2685_v22 = vadd.f32 %v6202_v23, %v2477_v5  ;;  %v2686_v25 = vadd.f32 %v6202_v23, %v2478_v24  ;;  %v2687_v7 = vadd.f32 %v6202_v23, %v2479_v12  ;;  %v2793_v51 = vmax.f32 %v2681_v21, 0.0  ;;  %v7063_v23 = vld [vmem:[#allocation15_spill] sm:$0xff]  ;;  %v7070_v5 = vld [vmem:[#allocation34_spill] sm:$0xff] }
 0x423   :  { %v2794_v15 = vmax.f32 %v2682_v16, 0.0  ;;  %v2795_v27 = vmax.f32 %v2683_v49, 0.0  ;;  %v2796_v43 = vmax.f32 %v2684_v3, 0.0  ;;  %v2509_v17 = vmul.f32 %v2419_v44, %v7061_v2  ;;  %v7071_v12 = vld [vmem:[#allocation35_spill] sm:$0xff]  ;;  %v7072_v16 = vld [vmem:[#allocation38_spill] sm:$0xff]  ;;  %v7073_v3 = vld [vmem:[#allocation36_spill] sm:$0xff] }
 0x424   :  { %v2797_v54 = vmax.f32 %v2685_v22, 0.0  ;;  %v2798_v18 = vmax.f32 %v2686_v25, 0.0  ;;  %v2799_v61 = vmax.f32 %v2687_v7, 0.0  ;;  %2905 = vst [vmem:[%s6827_s4 + $0x38] sm:$0xff] %v2793_v51  ;;  %v2510_v14 = vmul.f32 %v2419_v44, %v7062_v28 }
 0x425   :  { %2906 = vst [vmem:[%s6827_s4 + $0x40] sm:$0xff] %v2794_v15  ;;  %2907 = vst [vmem:[%s6827_s4 + $0x48] sm:$0xff] %v2795_v27  ;;  %v2511_v36 = vmul.f32 %v2419_v44, %v7063_v23  ;;  %v2512_v35 = vmul.f32 %v2419_v44, %v7064_v62  ;;  %v2513_v47 = vmul.f32 %v2419_v44, %v7065_v11 }
 0x426   :  { %2908 = vst [vmem:[%s6827_s4 + $0x50] sm:$0xff] %v2796_v43  ;;  %v2514_v58 = vmul.f32 %v2419_v44, %v7066_v42  ;;  %2909 = vst [vmem:[%s6827_s4 + $0x58] sm:$0xff] %v2797_v54  ;;  %v2716_v4 = vadd.f32 %v6216_v53, %v2508_v52  ;;  %v2717_v26 = vadd.f32 %v6216_v53, %v2509_v17 }
 0x427   :  { %2910 = vst [vmem:[%s6827_s4 + $0x60] sm:$0xff] %v2798_v18  ;;  %2911 = vst.msk [vmem:[%s6827_s4 + $0x68] sm:$0xff] %vm1395_vm2, %v2799_v61  ;;  %v2718_v31 = vadd.f32 %v6216_v53, %v2510_v14  ;;  %v2719_v56 = vadd.f32 %v6216_v53, %v2511_v36  ;;  %v2720_v13 = vadd.f32 %v6216_v53, %v2512_v35 }
 0x428   :  { %v2721_v38 = vadd.f32 %v6216_v53, %v2513_v47  ;;  %v2722_v40 = vadd.f32 %v6216_v53, %v2514_v58  ;;  %v2828_v59 = vmax.f32 %v2716_v4, 0.0  ;;  %v2829_v60 = vmax.f32 %v2717_v26, 0.0 }
 0x429   :  { %v2830_v10 = vmax.f32 %v2718_v31, 0.0  ;;  %v2831_v41 = vmax.f32 %v2719_v56, 0.0  ;;  %v2832_v45 = vmax.f32 %v2720_v13, 0.0  ;;  %v7076_v31 = vld [vmem:[#allocation40_spill] sm:$0xff]  ;;  %v7077_v56 = vld [vmem:[#allocation41_spill] sm:$0xff] }
 0x42a   :  { %v2833_v48 = vmax.f32 %v2721_v38, 0.0  ;;  %v2834_v30 = vmax.f32 %v2722_v40, 0.0  ;;  %2940 = vst [vmem:[%s6827_s4 + $0x150] sm:$0xff] %v2828_v59  ;;  %2941 = vst [vmem:[%s6827_s4 + $0x158] sm:$0xff] %v2829_v60  ;;  %v7079_v59 = vld [vmem:[#allocation43_spill] sm:$0xff]  ;;  %v7080_v60 = vld [vmem:[#allocation44_spill] sm:$0xff] }
 0x42b   :  { %2942 = vst [vmem:[%s6827_s4 + $0x160] sm:$0xff] %v2830_v10  ;;  %2943 = vst [vmem:[%s6827_s4 + $0x168] sm:$0xff] %v2831_v41 }
 0x42c   :  { %2944 = vst [vmem:[%s6827_s4 + $0x170] sm:$0xff] %v2832_v45  ;;  %2945 = vst [vmem:[%s6827_s4 + $0x178] sm:$0xff] %v2833_v48 }
 0x42d   :  { %2946 = vst.msk [vmem:[%s6827_s4 + $0x180] sm:$0xff] %vm1395_vm2, %v2834_v30 }
 0x432   :  { %v2424_v53 = vpop.permute.xlu0 %2423 }
 0x433   :  { %v2515_v44 = vmul.f32 %v2424_v53, %v7067_v63  ;;  %v2516_v33 = vmul.f32 %v2424_v53, %v7068_v8  ;;  %v2517_v46 = vmul.f32 %v2424_v53, %v7069_v1  ;;  %v2518_v24 = vmul.f32 %v2424_v53, %v7070_v5 }
 0x434   :  { %v2519_v21 = vmul.f32 %v2424_v53, %v7071_v12  ;;  %v2520_v49 = vmul.f32 %v2424_v53, %v7072_v16  ;;  %v2521_v6 = vmul.f32 %v2424_v53, %v7073_v3  ;;  %v7083_v3 = vld [vmem:[#allocation23_spill] sm:$0xff] }
 0x435   :  { %v2723_v52 = vadd.f32 %v6210_v9, %v2515_v44  ;;  %v2724_v22 = vadd.f32 %v6210_v9, %v2516_v33  ;;  %v2725_v25 = vadd.f32 %v6210_v9, %v2517_v46  ;;  %v2726_v7 = vadd.f32 %v6210_v9, %v2518_v24  ;;  %v7082_v33 = vld [vmem:[#allocation12_spill] sm:$0xff] }
 0x436   :  { %v2727_v51 = vadd.f32 %v6210_v9, %v2519_v21  ;;  %v2728_v15 = vadd.f32 %v6210_v9, %v2520_v49  ;;  %v2729_v27 = vadd.f32 %v6210_v9, %v2521_v6 }
 0x437   :  { %v2835_v43 = vmax.f32 %v2723_v52, 0.0  ;;  %v2836_v2 = vmax.f32 %v2724_v22, 0.0  ;;  %v2837_v17 = vmax.f32 %v2725_v25, 0.0  ;;  %v2838_v54 = vmax.f32 %v2726_v7, 0.0  ;;  %v7085_v22 = vld [vmem:[#allocation9_spill] sm:$0xff] }
 0x438   :  { %v2839_v18 = vmax.f32 %v2727_v51, 0.0  ;;  %v2840_v61 = vmax.f32 %v2728_v15, 0.0  ;;  %v2841_v28 = vmax.f32 %v2729_v27, 0.0  ;;  %v7086_v7 = vld [vmem:[#allocation21_spill] sm:$0xff]  ;;  %v7087_v15 = vld [vmem:[#allocation6_spill] sm:$0xff] }
 0x439   :  { %2947 = vst [vmem:[%s6827_s4 + $0x188] sm:$0xff] %v2835_v43  ;;  %2948 = vst [vmem:[%s6827_s4 + $0x190] sm:$0xff] %v2836_v2  ;;  %v7088_v43 = vld [vmem:[#allocation25_spill] sm:$0xff] }
 0x43a   :  { %2949 = vst [vmem:[%s6827_s4 + $0x198] sm:$0xff] %v2837_v17  ;;  %2950 = vst [vmem:[%s6827_s4 + $0x1a0] sm:$0xff] %v2838_v54  ;;  %v7089_v17 = vld [vmem:[#allocation29_spill] sm:$0xff] }
 0x43b   :  { %2951 = vst [vmem:[%s6827_s4 + $0x1a8] sm:$0xff] %v2839_v18  ;;  %2952 = vst [vmem:[%s6827_s4 + $0x1b0] sm:$0xff] %v2840_v61  ;;  %v7090_v61 = vld [vmem:[#allocation17_spill] sm:$0xff] }
 0x43c   :  { %2953 = vst.msk [vmem:[%s6827_s4 + $0x1b8] sm:$0xff] %vm1395_vm2, %v2841_v28 }
 0x44a   :  { %v6446_v9 = vpop.permute.xlu0 %2463 }
 0x44b   :  { %v2459_v14 = vpop.permute.xlu1 %2458 }
 0x44c   :  { %v6449_v23 = vmul.f32 %v2459_v14, %v5601_v37  ;;  %v6452_v36 = vmul.f32 %v2459_v14, %v5623_v29  ;;  %v6455_v62 = vmul.f32 %v2459_v14, %v5626_v34  ;;  %v6458_v11 = vmul.f32 %v2459_v14, %v5660_v0  ;;  %v7074_v37 = vld [vmem:[#allocation37_spill] sm:$0xff]  ;;  %v7075_v29 = vld [vmem:[#allocation39_spill] sm:$0xff]  ;;  %v7078_v0 = vld [vmem:[#allocation42_spill] sm:$0xff] }
 0x44d   :  { %v6461_v47 = vmul.f32 %v2459_v14, %v5681_v20  ;;  %v6464_v42 = vmul.f32 %v2459_v14, %v5982_v57  ;;  %v6467_v58 = vmul.f32 %v2459_v14, %v5979_v19  ;;  %v7081_v57 = vld [vmem:[#allocation27_spill] sm:$0xff] }
 0x44e   :  { %v2414_v35 = vpop.permute.xlu0 %2413 }
 0x44f   :  { %v2501_v4 = vmul.f32 %v2414_v35, %v7074_v37  ;;  %v2502_v26 = vmul.f32 %v2414_v35, %v7075_v29  ;;  %v2503_v34 = vmul.f32 %v2414_v35, %v7076_v31  ;;  %v2504_v13 = vmul.f32 %v2414_v35, %v7077_v56  ;;  %v2409_v38 = vpop.permute.xlu1 %2408  ;;  %v7091_v56 = vld [vmem:[#allocation4_spill] sm:$0xff] }
 0x450   :  { %v2505_v40 = vmul.f32 %v2414_v35, %v7078_v0  ;;  %v2506_v20 = vmul.f32 %v2414_v35, %v7079_v59  ;;  %v2507_v10 = vmul.f32 %v2414_v35, %v7080_v60  ;;  %v2494_v41 = vmul.f32 %v2409_v38, %v7081_v57  ;;  %v7092_v57 = vld [vmem:[#allocation24_spill] sm:$0xff] }
 0x451   :  { %v2709_v19 = vadd.f32 %v6208_v55, %v2501_v4  ;;  %v2710_v45 = vadd.f32 %v6208_v55, %v2502_v26  ;;  %v2711_v48 = vadd.f32 %v6208_v55, %v2503_v34  ;;  %v2712_v30 = vadd.f32 %v6208_v55, %v2504_v13 }
 0x452   :  { %v2713_v53 = vadd.f32 %v6208_v55, %v2505_v40  ;;  %v2714_v63 = vadd.f32 %v6208_v55, %v2506_v20  ;;  %v2715_v44 = vadd.f32 %v6208_v55, %v2507_v10  ;;  %v2454_v8 = vpop.permute.xlu0 %2453  ;;  %v2495_v1 = vmul.f32 %v2409_v38, %v7082_v33  ;;  %v7084_v55 = vld [vmem:[#allocation13_spill] sm:$0xff] }
 0x453   :  { %v2821_v46 = vmax.f32 %v2709_v19, 0.0  ;;  %v2822_v5 = vmax.f32 %v2710_v45, 0.0  ;;  %v2823_v24 = vmax.f32 %v2711_v48, 0.0  ;;  %v2824_v12 = vmax.f32 %v2712_v30, 0.0  ;;  %v2449_v14 = vpop.permute.xlu1 %2448  ;;  %v7093_v45 = vld [vmem:[#allocation7_spill] sm:$0xff] }
 0x454   :  { %v2825_v21 = vmax.f32 %v2713_v53, 0.0  ;;  %v2826_v16 = vmax.f32 %v2714_v63, 0.0  ;;  %v2827_v49 = vmax.f32 %v2715_v44, 0.0  ;;  %v2557_v6 = vmul.f32 %v2454_v8, %v7083_v3 }
 0x455   :  { %2933 = vst [vmem:[%s6827_s4 + $0x118] sm:$0xff] %v2821_v46  ;;  %2934 = vst [vmem:[%s6827_s4 + $0x120] sm:$0xff] %v2822_v5  ;;  %v2558_v52 = vmul.f32 %v2454_v8, %v7084_v55  ;;  %v2559_v25 = vmul.f32 %v2454_v8, %v7085_v22  ;;  %v2560_v51 = vmul.f32 %v2454_v8, %v7086_v7 }
 0x456   :  { %2935 = vst [vmem:[%s6827_s4 + $0x128] sm:$0xff] %v2823_v24  ;;  %2936 = vst [vmem:[%s6827_s4 + $0x130] sm:$0xff] %v2824_v12  ;;  %v2561_v27 = vmul.f32 %v2454_v8, %v7087_v15  ;;  %v2562_v2 = vmul.f32 %v2454_v8, %v7088_v43  ;;  %v2563_v54 = vmul.f32 %v2454_v8, %v7089_v17 }
 0x457   :  { %2937 = vst [vmem:[%s6827_s4 + $0x138] sm:$0xff] %v2825_v21  ;;  %2938 = vst [vmem:[%s6827_s4 + $0x140] sm:$0xff] %v2826_v16  ;;  %v2765_v18 = vadd.f32 %v6230_v32, %v2557_v6  ;;  %v2496_v28 = vmul.f32 %v2409_v38, %v7090_v61  ;;  %v2766_v35 = vadd.f32 %v6230_v32, %v2558_v52  ;;  %v7096_v6 = vld [vmem:[#allocation11_spill] sm:$0xff] }
 0x458   :  { %2939 = vst.msk [vmem:[%s6827_s4 + $0x148] sm:$0xff] %vm1395_vm2, %v2827_v49  ;;  %v2767_v37 = vadd.f32 %v6230_v32, %v2559_v25  ;;  %v2768_v4 = vadd.f32 %v6230_v32, %v2560_v51  ;;  %v2769_v29 = vadd.f32 %v6230_v32, %v2561_v27  ;;  %v2770_v26 = vadd.f32 %v6230_v32, %v2562_v2  ;;  %v7098_v25 = vld [vmem:[#allocation5_spill] sm:$0xff]  ;;  %v7099_v51 = vld [vmem:[#allocation26_spill] sm:$0xff]  ;;  %v7100_v27 = vld [vmem:[#allocation31_spill] sm:$0xff] }
 0x459   :  { %v2771_v31 = vadd.f32 %v6230_v32, %v2563_v54  ;;  %v2877_v34 = vmax.f32 %v2765_v18, 0.0  ;;  %v2497_v13 = vmul.f32 %v2409_v38, %v7091_v56  ;;  %v2878_v0 = vmax.f32 %v2766_v35, 0.0  ;;  %v7094_v32 = vld [vmem:[#allocation22_spill] sm:$0xff] }
 0x45a   :  { %v2879_v40 = vmax.f32 %v2767_v37, 0.0  ;;  %v2880_v59 = vmax.f32 %v2768_v4, 0.0  ;;  %v2881_v20 = vmax.f32 %v2769_v29, 0.0  ;;  %v2882_v60 = vmax.f32 %v2770_v26, 0.0  ;;  %v7101_v2 = vld [vmem:[#allocation30_spill] sm:$0xff]  ;;  %v7102_v37 = vld [vmem:[#allocation45_spill] sm:$0xff] }
 0x45b   :  { %v2883_v10 = vmax.f32 %v2771_v31, 0.0  ;;  %2989 = vst [vmem:[%s6827_s4 + $0x2d8] sm:$0xff] %v2877_v34  ;;  %v2498_v19 = vmul.f32 %v2409_v38, %v7092_v57  ;;  %v2499_v48 = vmul.f32 %v2409_v38, %v7093_v45  ;;  %2990 = vst [vmem:[%s6827_s4 + $0x2e0] sm:$0xff] %v2878_v0  ;;  %v2500_v30 = vmul.f32 %v2409_v38, %v7094_v32  ;;  %v7105_v57 = vld [vmem:[#allocation48_spill] sm:$0xff]  ;;  %v7106_v45 = vld [vmem:[#allocation49_spill] sm:$0xff] }
 0x45c   :  { %2991 = vst [vmem:[%s6827_s4 + $0x2e8] sm:$0xff] %v2879_v40  ;;  %2992 = vst [vmem:[%s6827_s4 + $0x2f0] sm:$0xff] %v2880_v59  ;;  %v2702_v53 = vadd.f32 %v6212_v39, %v2494_v41  ;;  %v2703_v63 = vadd.f32 %v6212_v39, %v2495_v1  ;;  %v2704_v44 = vadd.f32 %v6212_v39, %v2496_v28  ;;  %v7095_v41 = vld [vmem:[#allocation18_spill] sm:$0xff]  ;;  %v2439_v1 = vpop.permute.xlu1 %2438 }
 0x45d   :  { %2993 = vst [vmem:[%s6827_s4 + $0x2f8] sm:$0xff] %v2881_v20  ;;  %2994 = vst [vmem:[%s6827_s4 + $0x300] sm:$0xff] %v2882_v60  ;;  %v2705_v8 = vadd.f32 %v6212_v39, %v2497_v13  ;;  %v2706_v33 = vadd.f32 %v6212_v39, %v2498_v19  ;;  %v2707_v38 = vadd.f32 %v6212_v39, %v2499_v48  ;;  %v7103_v40 = vld [vmem:[#allocation46_spill] sm:$0xff] }
 0x45e   :  { %2995 = vst.msk [vmem:[%s6827_s4 + $0x308] sm:$0xff] %vm1395_vm2, %v2883_v10  ;;  %v2550_v46 = vmul.f32 %v2449_v14, %v7095_v41  ;;  %v2708_v5 = vadd.f32 %v6212_v39, %v2500_v30  ;;  %v2814_v24 = vmax.f32 %v2702_v53, 0.0  ;;  %v2815_v12 = vmax.f32 %v2703_v63, 0.0  ;;  %v7097_v39 = vld [vmem:[#allocation19_spill] sm:$0xff]  ;;  %v7107_v32 = vld [vmem:[#allocation50_spill] sm:$0xff] }
 0x45f   :  { %v2816_v21 = vmax.f32 %v2704_v44, 0.0  ;;  %v2817_v16 = vmax.f32 %v2705_v8, 0.0  ;;  %v2818_v49 = vmax.f32 %v2706_v33, 0.0  ;;  %v2819_v3 = vmax.f32 %v2707_v38, 0.0  ;;  %v7104_v10 = vld [vmem:[#allocation47_spill] sm:$0xff] }
 0x460   :  { %v2551_v55 = vmul.f32 %v2449_v14, %v7096_v6  ;;  %v2820_v52 = vmax.f32 %v2708_v5, 0.0  ;;  %2926 = vst [vmem:[%s6827_s4 + $0xe0] sm:$0xff] %v2814_v24  ;;  %2927 = vst [vmem:[%s6827_s4 + $0xe8] sm:$0xff] %v2815_v12  ;;  %v2552_v22 = vmul.f32 %v2449_v14, %v7097_v39  ;;  %v2553_v7 = vmul.f32 %v2449_v14, %v7098_v25  ;;  %v2429_v34 = vpop.permute.xlu1 %2428  ;;  %v7108_v53 = vld [vmem:[#allocation51_spill] sm:$0xff]  ;;  %v7111_v6 = vld [vmem:[#allocation53_spill] sm:$0xff] }
 0x461   :  { %2928 = vst [vmem:[%s6827_s4 + $0xf0] sm:$0xff] %v2816_v21  ;;  %v2554_v15 = vmul.f32 %v2449_v14, %v7099_v51  ;;  %2929 = vst [vmem:[%s6827_s4 + $0xf8] sm:$0xff] %v2817_v16  ;;  %v2555_v43 = vmul.f32 %v2449_v14, %v7100_v27  ;;  %v2556_v17 = vmul.f32 %v2449_v14, %v7101_v2  ;;  %v7109_v44 = vld [vmem:[#allocation83_spill] sm:$0xff] }
 0x462   :  { %2930 = vst [vmem:[%s6827_s4 + $0x100] sm:$0xff] %v2818_v49  ;;  %2931 = vst [vmem:[%s6827_s4 + $0x108] sm:$0xff] %v2819_v3  ;;  %v2758_v54 = vadd.f32 %v6235_v50, %v2550_v46  ;;  %v2759_v18 = vadd.f32 %v6235_v50, %v2551_v55  ;;  %v2760_v61 = vadd.f32 %v6235_v50, %v2552_v22  ;;  %v7110_v46 = vld [vmem:[#allocation52_spill] sm:$0xff] }
 0x463   :  { %2932 = vst.msk [vmem:[%s6827_s4 + $0x110] sm:$0xff] %vm1395_vm2, %v2820_v52  ;;  %v2761_v28 = vadd.f32 %v6235_v50, %v2553_v7  ;;  %v2762_v35 = vadd.f32 %v6235_v50, %v2554_v15  ;;  %v2536_v4 = vmul.f32 %v2439_v1, %v7102_v37  ;;  %v2763_v29 = vadd.f32 %v6235_v50, %v2555_v43  ;;  %v7112_v7 = vld [vmem:[#allocation54_spill] sm:$0xff]  ;;  %v7113_v15 = vld [vmem:[#allocation55_spill] sm:$0xff]  ;;  %v7114_v43 = vld [vmem:[#allocation56_spill] sm:$0xff] }
 0x464   :  { %v2764_v14 = vadd.f32 %v6235_v50, %v2556_v17  ;;  %v2870_v26 = vmax.f32 %v2758_v54, 0.0  ;;  %v2871_v31 = vmax.f32 %v2759_v18, 0.0  ;;  %v2872_v56 = vmax.f32 %v2760_v61, 0.0  ;;  %v2667_v52 = vpop.permute.xlu1 %2666  ;;  %v7115_v17 = vld [vmem:[#allocation61_spill] sm:$0xff]  ;;  %v7116_v18 = vld [vmem:[#allocation59_spill] sm:$0xff] }
 0x465   :  { %v2873_v13 = vmax.f32 %v2761_v28, 0.0  ;;  %v2874_v0 = vmax.f32 %v2762_v35, 0.0  ;;  %v2537_v59 = vmul.f32 %v2439_v1, %v7103_v40  ;;  %v2875_v20 = vmax.f32 %v2763_v29, 0.0  ;;  %v7117_v28 = vld [vmem:[#allocation82_spill] sm:$0xff] }
 0x466   :  { %v2876_v60 = vmax.f32 %v2764_v14, 0.0  ;;  %2982 = vst [vmem:[%s6827_s4 + $0x2a0] sm:$0xff] %v2870_v26  ;;  %2983 = vst [vmem:[%s6827_s4 + $0x2a8] sm:$0xff] %v2871_v31  ;;  %v2538_v50 = vmul.f32 %v2439_v1, %v7104_v10  ;;  %v2539_v19 = vmul.f32 %v2439_v1, %v7105_v57  ;;  %v2540_v48 = vmul.f32 %v2439_v1, %v7106_v45 }
 0x467   :  { %2984 = vst [vmem:[%s6827_s4 + $0x2b0] sm:$0xff] %v2872_v56  ;;  %2985 = vst [vmem:[%s6827_s4 + $0x2b8] sm:$0xff] %v2873_v13  ;;  %v2541_v30 = vmul.f32 %v2439_v1, %v7107_v32  ;;  %v2542_v63 = vmul.f32 %v2439_v1, %v7108_v53  ;;  %v2744_v8 = vadd.f32 %v7109_v44, %v2536_v4 }
 0x468   :  { %2986 = vst [vmem:[%s6827_s4 + $0x2c0] sm:$0xff] %v2874_v0  ;;  %2987 = vst [vmem:[%s6827_s4 + $0x2c8] sm:$0xff] %v2875_v20  ;;  %v2745_v33 = vadd.f32 %v7109_v44, %v2537_v59  ;;  %v2746_v38 = vadd.f32 %v7109_v44, %v2538_v50  ;;  %v2747_v41 = vadd.f32 %v7109_v44, %v2539_v19 }
 0x469   :  { %2988 = vst.msk [vmem:[%s6827_s4 + $0x2d0] sm:$0xff] %vm1395_vm2, %v2876_v60  ;;  %v2522_v5 = vmul.f32 %v2429_v34, %v7110_v46  ;;  %v2748_v1 = vadd.f32 %v7109_v44, %v2540_v48  ;;  %v2749_v24 = vadd.f32 %v7109_v44, %v2541_v30  ;;  %v2750_v12 = vadd.f32 %v7109_v44, %v2542_v63  ;;  %v7118_v30 = vld [vmem:[#allocation57_spill] sm:$0xff]  ;;  %v7119_v63 = vld [vmem:[#allocation58_spill] sm:$0xff] }
 0x46a   :  { %v2856_v21 = vmax.f32 %v2744_v8, 0.0  ;;  %v2857_v16 = vmax.f32 %v2745_v33, 0.0  ;;  %v2858_v49 = vmax.f32 %v2746_v38, 0.0  ;;  %v2859_v3 = vmax.f32 %v2747_v41, 0.0  ;;  %v7120_v8 = vld [vmem:[#allocation60_spill] sm:$0xff]  ;;  %v7121_v38 = vld [vmem:[#allocation62_spill] sm:$0xff] }
 0x46b   :  { %v2523_v55 = vmul.f32 %v2429_v34, %v7111_v6  ;;  %v2860_v39 = vmax.f32 %v2748_v1, 0.0  ;;  %v2861_v22 = vmax.f32 %v2749_v24, 0.0  ;;  %v2862_v25 = vmax.f32 %v2750_v12, 0.0  ;;  %v7122_v46 = vld [vmem:[#allocation66_spill] sm:$0xff]  ;;  %v7123_v1 = vld [vmem:[#allocation67_spill] sm:$0xff] }
 0x46c   :  { %2968 = vst [vmem:[%s6827_s4 + $0x230] sm:$0xff] %v2856_v21  ;;  %v2524_v51 = vmul.f32 %v2429_v34, %v7112_v7  ;;  %2969 = vst [vmem:[%s6827_s4 + $0x238] sm:$0xff] %v2857_v16  ;;  %v2525_v27 = vmul.f32 %v2429_v34, %v7113_v15  ;;  %v2526_v2 = vmul.f32 %v2429_v34, %v7114_v43  ;;  %v7124_v12 = vld [vmem:[#allocation70_spill] sm:$0xff]  ;;  %v7125_v16 = vld [vmem:[#allocation71_spill] sm:$0xff] }
 0x46d   :  { %2970 = vst [vmem:[%s6827_s4 + $0x240] sm:$0xff] %v2858_v49  ;;  %2971 = vst [vmem:[%s6827_s4 + $0x248] sm:$0xff] %v2859_v3  ;;  %v2527_v54 = vmul.f32 %v2429_v34, %v7115_v17  ;;  %v2528_v61 = vmul.f32 %v2429_v34, %v7116_v18  ;;  %v2730_v35 = vadd.f32 %v7117_v28, %v2522_v5  ;;  %v7126_v3 = vld [vmem:[#allocation73_spill] sm:$0xff] }
 0x46e   :  { %2972 = vst [vmem:[%s6827_s4 + $0x250] sm:$0xff] %v2860_v39  ;;  %2973 = vst [vmem:[%s6827_s4 + $0x258] sm:$0xff] %v2861_v22  ;;  %v2731_v37 = vadd.f32 %v7117_v28, %v2523_v55  ;;  %v2732_v4 = vadd.f32 %v7117_v28, %v2524_v51  ;;  %v2772_v29 = vadd.f32 %v2667_v52, %v6449_v23  ;;  %v7127_v55 = vld [vmem:[#allocation75_spill] sm:$0xff]  ;;  %v7128_v39 = vld [vmem:[#allocation77_spill] sm:$0xff] }
 0x46f   :  { %2974 = vst.msk [vmem:[%s6827_s4 + $0x260] sm:$0xff] %vm1395_vm2, %v2862_v25  ;;  %v2733_v14 = vadd.f32 %v7117_v28, %v2525_v27  ;;  %v2734_v26 = vadd.f32 %v7117_v28, %v2526_v2  ;;  %v2735_v31 = vadd.f32 %v7117_v28, %v2527_v54  ;;  %v2736_v34 = vadd.f32 %v7117_v28, %v2528_v61  ;;  %v7129_v25 = vld [vmem:[#allocation63_spill] sm:$0xff]  ;;  %v7130_v51 = vld [vmem:[#allocation81_spill] sm:$0xff] }
 0x470   :  { %v2842_v56 = vmax.f32 %v2730_v35, 0.0  ;;  %v2843_v13 = vmax.f32 %v2731_v37, 0.0  ;;  %v2844_v0 = vmax.f32 %v2732_v4, 0.0  ;;  %v2773_v40 = vadd.f32 %v2667_v52, %v6452_v36  ;;  %v7131_v28 = vld [vmem:[#allocation65_spill] sm:$0xff] }
 0x471   :  { %v2845_v59 = vmax.f32 %v2733_v14, 0.0  ;;  %v2846_v20 = vmax.f32 %v2734_v26, 0.0  ;;  %v2847_v60 = vmax.f32 %v2735_v31, 0.0  ;;  %v2848_v10 = vmax.f32 %v2736_v34, 0.0 }
 0x472   :  { %2954 = vst [vmem:[%s6827_s4 + $0x1c0] sm:$0xff] %v2842_v56  ;;  %2955 = vst [vmem:[%s6827_s4 + $0x1c8] sm:$0xff] %v2843_v13  ;;  %v2774_v23 = vadd.f32 %v2667_v52, %v6455_v62  ;;  %v2775_v36 = vadd.f32 %v2667_v52, %v6458_v11  ;;  %v2776_v50 = vadd.f32 %v2667_v52, %v6461_v47  ;;  %v2884_v11 = vmax.f32 %v2772_v29, 0.0  ;;  %v7132_v56 = vld [vmem:[#allocation68_spill] sm:$0xff] }
 0x473   :  { %2956 = vst [vmem:[%s6827_s4 + $0x1d0] sm:$0xff] %v2844_v0  ;;  %v2777_v57 = vadd.f32 %v2667_v52, %v6464_v42  ;;  %2957 = vst [vmem:[%s6827_s4 + $0x1d8] sm:$0xff] %v2845_v59  ;;  %v2778_v62 = vadd.f32 %v2667_v52, %v6467_v58  ;;  %v2885_v47 = vmax.f32 %v2773_v40, 0.0  ;;  %v2571_v53 = vmul.f32 %v6446_v9, %v7118_v30  ;;  %v7133_v0 = vld [vmem:[#allocation69_spill] sm:$0xff]  ;;  %v7134_v59 = vld [vmem:[#allocation72_spill] sm:$0xff] }
 0x474   :  { %2958 = vst [vmem:[%s6827_s4 + $0x1e0] sm:$0xff] %v2846_v20  ;;  %2959 = vst [vmem:[%s6827_s4 + $0x1e8] sm:$0xff] %v2847_v60  ;;  %v2886_v42 = vmax.f32 %v2774_v23, 0.0  ;;  %v2887_v19 = vmax.f32 %v2775_v36, 0.0  ;;  %v2888_v45 = vmax.f32 %v2776_v50, 0.0  ;;  %v2572_v44 = vmul.f32 %v6446_v9, %v7119_v63  ;;  %v7135_v60 = vld [vmem:[#allocation74_spill] sm:$0xff] }
 0x475   :  { %2960 = vst.msk [vmem:[%s6827_s4 + $0x1f0] sm:$0xff] %vm1395_vm2, %v2848_v10  ;;  %v2889_v48 = vmax.f32 %v2777_v57, 0.0  ;;  %v2890_v32 = vmax.f32 %v2778_v62, 0.0  ;;  %2996 = vst [vmem:[%s6827_s4 + $0x310] sm:$0xff] %v2884_v11  ;;  %v2573_v33 = vmul.f32 %v6446_v9, %v7120_v8  ;;  %v6722_v41 = vmul.f32 %v6446_v9, %v7121_v38  ;;  %v7136_v23 = vld [vmem:[#allocation76_spill] sm:$0xff]  ;;  %v7137_v50 = vld [vmem:[#allocation78_spill] sm:$0xff] }
 0x476   :  { %2997 = vst [vmem:[%s6827_s4 + $0x318] sm:$0xff] %v2885_v47  ;;  %2998 = vst [vmem:[%s6827_s4 + $0x320] sm:$0xff] %v2886_v42  ;;  %v2575_v7 = vmul.f32 %v6446_v9, %v7129_v25  ;;  %v2576_v35 = vmul.f32 %v6446_v9, %v7131_v28  ;;  %v7138_v62 = vld [vmem:[#allocation79_spill] sm:$0xff]  ;;  %v7139_v47 = vld [vmem:[#allocation80_spill] sm:$0xff] }
 0x477   :  { %2999 = vst [vmem:[%s6827_s4 + $0x328] sm:$0xff] %v2887_v19  ;;  %3000 = vst [vmem:[%s6827_s4 + $0x330] sm:$0xff] %v2888_v45  ;;  %v7140_v19 = vld [vmem:[#allocation64_spill] sm:$0xff] }
 0x478   :  { %3001 = vst [vmem:[%s6827_s4 + $0x338] sm:$0xff] %v2889_v48  ;;  %3002 = vst.msk [vmem:[%s6827_s4 + $0x340] sm:$0xff] %vm1395_vm2, %v2890_v32  ;;  %v2577_v45 = vmul.f32 %v6446_v9, %v7140_v19 }
 0x47f   :  { %v2444_v58 = vpop.permute.xlu0 %2443 }
 0x480   :  { %v2543_v5 = vmul.f32 %v2444_v58, %v7122_v46  ;;  %v2544_v24 = vmul.f32 %v2444_v58, %v7123_v1  ;;  %v2545_v21 = vmul.f32 %v2444_v58, %v7124_v12  ;;  %v2546_v49 = vmul.f32 %v2444_v58, %v7125_v16 }
 0x481   :  { %v2547_v6 = vmul.f32 %v2444_v58, %v7126_v3  ;;  %v2548_v52 = vmul.f32 %v2444_v58, %v7127_v55  ;;  %v2549_v22 = vmul.f32 %v2444_v58, %v7128_v39 }
 0x482   :  { %v2751_v15 = vadd.f32 %v7130_v51, %v2543_v5  ;;  %v2752_v27 = vadd.f32 %v7130_v51, %v2544_v24  ;;  %v2753_v43 = vadd.f32 %v7130_v51, %v2545_v21  ;;  %v2754_v2 = vadd.f32 %v7130_v51, %v2546_v49 }
 0x483   :  { %v2755_v17 = vadd.f32 %v7130_v51, %v2547_v6  ;;  %v2756_v54 = vadd.f32 %v7130_v51, %v2548_v52  ;;  %v2757_v18 = vadd.f32 %v7130_v51, %v2549_v22  ;;  %v2434_v61 = vpop.permute.xlu0 %2433 }
 0x484   :  { %v2863_v37 = vmax.f32 %v2751_v15, 0.0  ;;  %v2864_v4 = vmax.f32 %v2752_v27, 0.0  ;;  %v2865_v29 = vmax.f32 %v2753_v43, 0.0  ;;  %v2866_v14 = vmax.f32 %v2754_v2, 0.0 }
 0x485   :  { %v2867_v26 = vmax.f32 %v2755_v17, 0.0  ;;  %v2868_v31 = vmax.f32 %v2756_v54, 0.0  ;;  %v2869_v34 = vmax.f32 %v2757_v18, 0.0  ;;  %v2529_v13 = vmul.f32 %v2434_v61, %v7132_v56 }
 0x486   :  { %2975 = vst [vmem:[%s6827_s4 + $0x268] sm:$0xff] %v2863_v37  ;;  %2976 = vst [vmem:[%s6827_s4 + $0x270] sm:$0xff] %v2864_v4  ;;  %v2530_v40 = vmul.f32 %v2434_v61, %v7133_v0  ;;  %v2531_v20 = vmul.f32 %v2434_v61, %v7134_v59  ;;  %v2532_v10 = vmul.f32 %v2434_v61, %v7135_v60 }
 0x487   :  { %2977 = vst [vmem:[%s6827_s4 + $0x278] sm:$0xff] %v2865_v29  ;;  %2978 = vst [vmem:[%s6827_s4 + $0x280] sm:$0xff] %v2866_v14  ;;  %v2533_v36 = vmul.f32 %v2434_v61, %v7136_v23  ;;  %v2534_v57 = vmul.f32 %v2434_v61, %v7137_v50  ;;  %v2535_v11 = vmul.f32 %v2434_v61, %v7138_v62  ;;  %v2672_v48 = vpop.permute.xlu0 %2671 }
 0x488   :  { %2979 = vst [vmem:[%s6827_s4 + $0x288] sm:$0xff] %v2867_v26  ;;  %2980 = vst [vmem:[%s6827_s4 + $0x290] sm:$0xff] %v2868_v31  ;;  %v2737_v42 = vadd.f32 %v7139_v47, %v2529_v13  ;;  %v2738_v32 = vadd.f32 %v7139_v47, %v2530_v40  ;;  %v2739_v58 = vadd.f32 %v7139_v47, %v2531_v20 }
 0x489   :  { %2981 = vst.msk [vmem:[%s6827_s4 + $0x298] sm:$0xff] %vm1395_vm2, %v2869_v34  ;;  %v2740_v30 = vadd.f32 %v7139_v47, %v2532_v10  ;;  %v2741_v63 = vadd.f32 %v7139_v47, %v2533_v36  ;;  %v2742_v8 = vadd.f32 %v7139_v47, %v2534_v57  ;;  %v2743_v38 = vadd.f32 %v7139_v47, %v2535_v11 }
 0x48a   :  { %v2849_v46 = vmax.f32 %v2737_v42, 0.0  ;;  %v2779_v5 = vadd.f32 %v2672_v48, %v2571_v53  ;;  %v2850_v1 = vmax.f32 %v2738_v32, 0.0  ;;  %v2851_v24 = vmax.f32 %v2739_v58, 0.0 }
 0x48b   :  { %v2852_v12 = vmax.f32 %v2740_v30, 0.0  ;;  %v2853_v21 = vmax.f32 %v2741_v63, 0.0  ;;  %v2854_v9 = vmax.f32 %v2742_v8, 0.0  ;;  %v2855_v16 = vmax.f32 %v2743_v38, 0.0 }
 0x48c   :  { %2961 = vst [vmem:[%s6827_s4 + $0x1f8] sm:$0xff] %v2849_v46  ;;  %v2780_v49 = vadd.f32 %v2672_v48, %v2572_v44  ;;  %v2781_v3 = vadd.f32 %v2672_v48, %v2573_v33  ;;  %2962 = vst [vmem:[%s6827_s4 + $0x200] sm:$0xff] %v2850_v1  ;;  %v2782_v53 = vadd.f32 %v2672_v48, %v6722_v41  ;;  %v2891_v55 = vmax.f32 %v2779_v5, 0.0 }
 0x48d   :  { %2963 = vst [vmem:[%s6827_s4 + $0x208] sm:$0xff] %v2851_v24  ;;  %2964 = vst [vmem:[%s6827_s4 + $0x210] sm:$0xff] %v2852_v12  ;;  %v2783_v44 = vadd.f32 %v2672_v48, %v2575_v7  ;;  %v2784_v33 = vadd.f32 %v2672_v48, %v2576_v35  ;;  %v2785_v6 = vadd.f32 %v2672_v48, %v2577_v45 }
 0x48e   :  { %2965 = vst [vmem:[%s6827_s4 + $0x218] sm:$0xff] %v2853_v21  ;;  %2966 = vst [vmem:[%s6827_s4 + $0x220] sm:$0xff] %v2854_v9  ;;  %v2892_v52 = vmax.f32 %v2780_v49, 0.0  ;;  %v2893_v39 = vmax.f32 %v2781_v3, 0.0  ;;  %v2894_v22 = vmax.f32 %v2782_v53, 0.0 }
 0x48f   :  { %2967 = vst.msk [vmem:[%s6827_s4 + $0x228] sm:$0xff] %vm1395_vm2, %v2855_v16  ;;  %v2895_v25 = vmax.f32 %v2783_v44, 0.0  ;;  %v2896_v51 = vmax.f32 %v2784_v33, 0.0  ;;  %v2897_v15 = vmax.f32 %v2785_v6, 0.0  ;;  %3003 = vst [vmem:[%s6827_s4 + $0x348] sm:$0xff] %v2891_v55 }
 0x490   :  { %3004 = vst [vmem:[%s6827_s4 + $0x350] sm:$0xff] %v2892_v52  ;;  %3005 = vst [vmem:[%s6827_s4 + $0x358] sm:$0xff] %v2893_v39 }
 0x491   :  { %3006 = vst [vmem:[%s6827_s4 + $0x360] sm:$0xff] %v2894_v22  ;;  %3007 = vst [vmem:[%s6827_s4 + $0x368] sm:$0xff] %v2895_v25 }
 0x492   :  { %3008 = vst [vmem:[%s6827_s4 + $0x370] sm:$0xff] %v2896_v51  ;;  %3009 = vst.msk [vmem:[%s6827_s4 + $0x378] sm:$0xff] %vm1395_vm2, %v2897_v15 }

</bundles_post_ra>
